<compile_context>
chip_gen: v7x
topology: tpu7x:2x2x1
jax: 0.10.0
libtpu: 0.0.40
codegen_flags: <defaults>
</compile_context>

<pallas_src>
import functools

import jax
import jax.numpy as jnp
from jax.experimental import pallas as pl
from jax.experimental.pallas import tpu as pltpu

IN_FEATURES = 256 * 6 * 6   # 9216
HIDDEN = 200
OUT = 74
OUT_PAD = 128               # 74 padded up to a multiple of 128 (unmasked vst)


def _round_up(x, m):
    return (x + m - 1) // m * m


def _choose_tb(B, tb_max):
    """Batch tile: multiple of 8, capped, aiming for >= 2 tiles (v7x megacore).

    Prefers a tile that divides the 8-rounded batch (no extra pad rows), but
    never shrinks the tile by more than 2x just to avoid a small pad.
    """
    B8 = _round_up(B, 8)
    target = min(tb_max, max(8, _round_up((B8 + 1) // 2, 8)))
    for tb in range(target, max(target // 2, 8) - 1, -8):
        if B8 % tb == 0:
            return tb
    return target


def mlp_kernel(x_ref, w1_ref, b1_ref, w2_ref, b2_ref, out_ref):
    """Fused fc1 + ReLU + fc2 for one batch tile; weights are VMEM-resident."""
    x = x_ref[...].astype(w1_ref.dtype)        # in-VMEM cast -> bf16 MXU fast path
    h = jnp.dot(x, w1_ref[...], preferred_element_type=jnp.float32)
    h = jnp.maximum(h + b1_ref[...], 0.0)      # ReLU(fc1)
    logits = jnp.dot(h.astype(w2_ref.dtype), w2_ref[...],
                     preferred_element_type=jnp.float32)
    out_ref[...] = (logits + b2_ref[...]).astype(out_ref.dtype)


def prepare_params(w1, b1, w2, b2, weight_dtype=jnp.bfloat16):
    """One-time (outside the hot path) weight prep: cast big weights, pad the
    tiny output dim to 128 lanes.  w1: (9216, 200), w2: (200, 74)."""
    w1p = w1.astype(weight_dtype)                                        # (9216, 200)
    b1p = b1.reshape(1, HIDDEN).astype(jnp.float32)                      # (1, 200)
    w2p = jnp.pad(w2, ((0, 0), (0, OUT_PAD - OUT))).astype(weight_dtype) # (200, 128)
    b2p = jnp.pad(b2, (0, OUT_PAD - OUT)).reshape(1, OUT_PAD).astype(jnp.float32)
    return w1p, b1p, w2p, b2p


@functools.partial(jax.jit, static_argnames=("tb_max",))
def ann_classifier_forward(x, w1p, b1p, w2p, b2p, *, tb_max=256):
    """x: (B, 256, 6, 6) or (B, 9216) float32; params from prepare_params().

    Returns (B, 74) float32 logits == fc2(relu(fc1(x))).
    """
    x2d = x.reshape(-1, IN_FEATURES)
    B = x2d.shape[0]

    tb = _choose_tb(B, tb_max)
    B_pad = _round_up(B, tb)
    n_b = B_pad // tb
    if B_pad != B:
        x2d = jnp.pad(x2d, ((0, B_pad - B), (0, 0)))

    out_padded = pl.pallas_call(
        mlp_kernel,
        out_shape=jax.ShapeDtypeStruct((B_pad, OUT_PAD), jnp.float32),
        grid_spec=pltpu.PrefetchScalarGridSpec(
            num_scalar_prefetch=0,
            grid=(n_b,),
            in_specs=[
                pl.BlockSpec((tb, IN_FEATURES), lambda bi: (bi, 0)),       # x tile
                pl.BlockSpec((IN_FEATURES, HIDDEN), lambda bi: (0, 0)),    # W1 (resident)
                pl.BlockSpec((1, HIDDEN), lambda bi: (0, 0)),              # b1
                pl.BlockSpec((HIDDEN, OUT_PAD), lambda bi: (0, 0)),        # W2
                pl.BlockSpec((1, OUT_PAD), lambda bi: (0, 0)),             # b2
            ],
            out_specs=pl.BlockSpec((tb, OUT_PAD), lambda bi: (bi, 0)),
        ),
        compiler_params=pltpu.CompilerParams(
            dimension_semantics=("parallel",),
            vmem_limit_bytes=48 * 1024 * 1024,
        ),
    )(x2d, w1p, b1p, w2p, b2p)

    return out_padded[:B, :OUT]


def init_params(key):
    """Deterministic init mirroring nn.Linear's U(-1/sqrt(fan_in), 1/sqrt(fan_in)).

    Weights are stored as (in_features, out_features) for the kernel.
    """
    k1, k2, k3, k4 = jax.random.split(key, 4)
    lim1 = 1.0 / jnp.sqrt(jnp.float32(IN_FEATURES))
    lim2 = 1.0 / jnp.sqrt(jnp.float32(HIDDEN))
    w1 = jax.random.uniform(k1, (IN_FEATURES, HIDDEN), jnp.float32, -lim1, lim1)
    b1 = jax.random.uniform(k2, (HIDDEN,), jnp.float32, -lim1, lim1)
    w2 = jax.random.uniform(k3, (HIDDEN, OUT), jnp.float32, -lim2, lim2)
    b2 = jax.random.uniform(k4, (OUT,), jnp.float32, -lim2, lim2)
    return w1, b1, w2, b2


if __name__ == "__main__":
    key = jax.random.PRNGKey(0)
    kx, kp = jax.random.split(key)

    # Small batch; feature dims are fixed by the module (256*6*6 input).
    x = jax.random.normal(kx, (2, 256, 6, 6), jnp.float32)
    w1, b1, w2, b2 = init_params(kp)

    params = prepare_params(w1, b1, w2, b2)          # one-time pad + bf16 cast
    out = ann_classifier_forward(x, *params)
    out = jax.block_until_ready(out)

    # Pure-JAX reference with the same bf16 rounding of x / weights / hidden
    # activations (f32 accumulation), so the comparison isolates kernel bugs.
    hp = jax.lax.Precision.HIGHEST
    x2d = x.reshape(-1, IN_FEATURES)
    x_bf = x2d.astype(jnp.bfloat16).astype(jnp.float32)
    w1_bf = w1.astype(jnp.bfloat16).astype(jnp.float32)
    w2_bf = w2.astype(jnp.bfloat16).astype(jnp.float32)
    h = jnp.maximum(jnp.dot(x_bf, w1_bf, precision=hp) + b1, 0.0)
    h_bf = h.astype(jnp.bfloat16).astype(jnp.float32)
    ref = jnp.dot(h_bf, w2_bf, precision=hp) + b2

    assert out.shape == (2, OUT)
    assert jnp.allclose(out, ref, atol=5e-3, rtol=5e-3)

    print("KERNEL_OK")
</pallas_src>

<mosaic_0001>
module attributes {stable_mosaic.version = 11 : i64} {
  func.func @mlp_kernel(%arg0: i32, %arg1: memref<8x9216xf32, #tpu.memory_space<vmem>>, %arg2: memref<9216x200xbf16, #tpu.memory_space<vmem>>, %arg3: memref<1x200xf32, #tpu.memory_space<vmem>>, %arg4: memref<200x128xbf16, #tpu.memory_space<vmem>>, %arg5: memref<1x128xf32, #tpu.memory_space<vmem>>, %arg6: memref<8x128xf32, #tpu.memory_space<vmem>>) attributes {dimension_semantics = [#tpu.dimension_semantics<parallel>], iteration_bounds = array<i64: 1>, scalar_prefetch = 0 : i64, scratch_operands = 0 : i64, tpu.core_type = #tpu.core_type<tc>, window_params = [{transform_indices = @transform_0, window_bounds = array<i64: 8, 9216>}, {pipeline_mode = #tpu.pipeline_mode<synchronous>, transform_indices = @transform_1, window_bounds = array<i64: 9216, 200>}, {pipeline_mode = #tpu.pipeline_mode<synchronous>, transform_indices = @transform_2, window_bounds = array<i64: 1, 200>}, {pipeline_mode = #tpu.pipeline_mode<synchronous>, transform_indices = @transform_3, window_bounds = array<i64: 200, 128>}, {pipeline_mode = #tpu.pipeline_mode<synchronous>, transform_indices = @transform_4, window_bounds = array<i64: 1, 128>}, {transform_indices = @transform_5, window_bounds = array<i64: 8, 128>}]} {
    %c0 = arith.constant 0 : index
    %c0_0 = arith.constant 0 : index
    %0 = vector.load %arg1[%c0, %c0_0] : memref<8x9216xf32, #tpu.memory_space<vmem>>, vector<8x9216xf32>
    %1 = arith.truncf %0 : vector<8x9216xf32> to vector<8x9216xbf16>
    %c0_1 = arith.constant 0 : index
    %c0_2 = arith.constant 0 : index
    %2 = vector.load %arg2[%c0_1, %c0_2] : memref<9216x200xbf16, #tpu.memory_space<vmem>>, vector<9216x200xbf16>
    %cst = arith.constant dense<0.000000e+00> : vector<8x200xf32>
    %3 = tpu.matmul %1, %2, %cst {dimension_numbers = #tpu.dot_dimension_numbers<[1], [0], [0], [1], [0, 0, 1, 1], [], []>} : vector<8x9216xbf16>, vector<9216x200xbf16>, vector<8x200xf32> -> vector<8x200xf32>
    %c0_3 = arith.constant 0 : index
    %c0_4 = arith.constant 0 : index
    %4 = vector.load %arg3[%c0_3, %c0_4] : memref<1x200xf32, #tpu.memory_space<vmem>>, vector<1x200xf32>
    %5 = vector.broadcast %4 : vector<1x200xf32> to vector<8x200xf32>
    %6 = arith.addf %3, %5 : vector<8x200xf32>
    %cst_5 = arith.constant 0.000000e+00 : f32
    %7 = vector.broadcast %cst_5 : f32 to vector<8x200xf32>
    %8 = arith.maximumf %6, %7 : vector<8x200xf32>
    %9 = arith.truncf %8 : vector<8x200xf32> to vector<8x200xbf16>
    %c0_6 = arith.constant 0 : index
    %c0_7 = arith.constant 0 : index
    %10 = vector.load %arg4[%c0_6, %c0_7] : memref<200x128xbf16, #tpu.memory_space<vmem>>, vector<200x128xbf16>
    %cst_8 = arith.constant dense<0.000000e+00> : vector<8x128xf32>
    %11 = tpu.matmul %9, %10, %cst_8 {dimension_numbers = #tpu.dot_dimension_numbers<[1], [0], [0], [1], [0, 0, 1, 1], [], []>} : vector<8x200xbf16>, vector<200x128xbf16>, vector<8x128xf32> -> vector<8x128xf32>
    %c0_9 = arith.constant 0 : index
    %c0_10 = arith.constant 0 : index
    %12 = vector.load %arg5[%c0_9, %c0_10] : memref<1x128xf32, #tpu.memory_space<vmem>>, vector<1x128xf32>
    %13 = vector.broadcast %12 : vector<1x128xf32> to vector<8x128xf32>
    %14 = arith.addf %11, %13 : vector<8x128xf32>
    %c0_11 = arith.constant 0 : index
    %c0_12 = arith.constant 0 : index
    %15 = vector.load %arg6[%c0_11, %c0_12] : memref<8x128xf32, #tpu.memory_space<vmem>>, vector<8x128xf32>
    tpu.vector_store %arg6[%c0_11, %c0_12], %14 {strides = array<i32>} : memref<8x128xf32, #tpu.memory_space<vmem>>, vector<8x128xf32>,
    return
  }
  func.func @transform_0(%arg0: i32) -> (i32, i32) {
    %c0_i32 = arith.constant 0 : i32
    %c0_i32_0 = arith.constant 0 : i32
    return %arg0, %c0_i32 : i32, i32
  }
  func.func @transform_1(%arg0: i32) -> (i32, i32) {
    %c0_i32 = arith.constant 0 : i32
    %c0_i32_0 = arith.constant 0 : i32
    %c0_i32_1 = arith.constant 0 : i32
    return %c0_i32, %c0_i32_0 : i32, i32
  }
  func.func @transform_2(%arg0: i32) -> (i32, i32) {
    %c0_i32 = arith.constant 0 : i32
    %c0_i32_0 = arith.constant 0 : i32
    %c0_i32_1 = arith.constant 0 : i32
    return %c0_i32, %c0_i32_0 : i32, i32
  }
  func.func @transform_3(%arg0: i32) -> (i32, i32) {
    %c0_i32 = arith.constant 0 : i32
    %c0_i32_0 = arith.constant 0 : i32
    %c0_i32_1 = arith.constant 0 : i32
    return %c0_i32, %c0_i32_0 : i32, i32
  }
  func.func @transform_4(%arg0: i32) -> (i32, i32) {
    %c0_i32 = arith.constant 0 : i32
    %c0_i32_0 = arith.constant 0 : i32
    %c0_i32_1 = arith.constant 0 : i32
    return %c0_i32, %c0_i32_0 : i32, i32
  }
  func.func @transform_5(%arg0: i32) -> (i32, i32) {
    %c0_i32 = arith.constant 0 : i32
    %c0_i32_0 = arith.constant 0 : i32
    return %arg0, %c0_i32 : i32, i32
  }
}

</mosaic_0001>

<bundles_post_ra>
// kernel: ann_classifier_forward.1
= control target key start
LH: loop header
LB: loop body
LE: loop exit
PB: predicated region body
PF: predicated region fallthrough
CT: control target
= control target key end

     0   :  { %vm8680_vm0 = vcmask 1043456   ;;  %vm8676_vm1 = vcmask 588800   ;;  %s15529_s1 = inlined_call_operand.vmem [shape: bf16[9216,200], index: 1, kind: input, shape index: {}]   ;;  %s15530_s0 = inlined_call_operand.vmem [shape: f32[8,9216], index: 0, kind: input, shape index: {}]   ;;  %s15531_s3 = inlined_call_operand.vmem [shape: bf16[200,128], index: 3, kind: input, shape index: {}]   ;;  %s15532_s2 = inlined_call_operand.vmem [shape: f32[1,200], index: 2, kind: input, shape index: {}]   ;;  %s15533_s4 = inlined_call_operand.vmem [shape: f32[1,128], index: 4, kind: input, shape index: {}]   ;;  %s15534_s5 = inlined_call_operand.vmem [shape: f32[8,128], index: 5, kind: output, shape index: {}]  }
   0x1   :  { %v10037_v0 = vld [vmem:[%s15529_s1 + $0x4] ss:$8 sps:$4 sm:$0xff]   ;;  %v10041_v2 = vld [vmem:[%s15529_s1] ss:$8 sps:$4 sm:$0xff]   ;;  %v10043_v4 = vld [vmem:[%s15529_s1 + $0x14] ss:$8 sps:$4 sm:$0xff]  }
   0x2   :  { %v10039_v1 = vld [vmem:[%s15529_s1 + $0x1204] ss:$8 sps:$4 sm:$0xff]   ;;  %7089 = vmatprep.subr.bf16.mxu1 %v10037_v0  ;;  %v10042_v3 = vld [vmem:[%s15529_s1 + $0x1200] ss:$8 sps:$4 sm:$0xff]   ;;  %v10045_v5 = vld [vmem:[%s15529_s1 + $0x1214] ss:$8 sps:$4 sm:$0xff]  }
   0x3   :  { %7827 = vmatprep.subr.bf16.mxu0 %v10039_v1  ;;  %7090 = vmatpush1.bf16.msra.mxu1 %v10041_v2  ;;  %v10047_v6 = vld [vmem:[%s15529_s1 + $0x10] ss:$8 sps:$4 sm:$0xff]   ;;  %v10049_v8 = vld [vmem:[%s15529_s1 + $0x24] ss:$8 sps:$4 sm:$0xff]   ;;  %v10053_v10 = vld [vmem:[%s15529_s1 + $0x20] ss:$8 sps:$4 sm:$0xff]  }
   0x4   :  { %7828 = vmatpush1.bf16.msra.mxu0 %v10042_v3  ;;  %7091 = vmatprep.subr.bf16.mxu1 %v10043_v4  ;;  %v10048_v7 = vld [vmem:[%s15529_s1 + $0x1210] ss:$8 sps:$4 sm:$0xff]   ;;  %v10051_v9 = vld [vmem:[%s15529_s1 + $0x1224] ss:$8 sps:$4 sm:$0xff]   ;;  %v10054_v11 = vld [vmem:[%s15529_s1 + $0x1220] ss:$8 sps:$4 sm:$0xff]  }
   0x5   :  { %7829 = vmatprep.subr.bf16.mxu0 %v10045_v5  ;;  %v10055_v12 = vld [vmem:[%s15529_s1 + $0x34] ss:$8 sps:$4 sm:$0xff]   ;;  %v10059_v14 = vld [vmem:[%s15529_s1 + $0x30] ss:$8 sps:$4 sm:$0xff]   ;;  %v10061_v16 = vld [vmem:[%s15529_s1 + $0x44] ss:$8 sps:$4 sm:$0xff]  }
   0x6   :  { %v10057_v13 = vld [vmem:[%s15529_s1 + $0x1234] ss:$8 sps:$4 sm:$0xff]   ;;  %v10060_v15 = vld [vmem:[%s15529_s1 + $0x1230] ss:$8 sps:$4 sm:$0xff]   ;;  %v10063_v17 = vld [vmem:[%s15529_s1 + $0x1244] ss:$8 sps:$4 sm:$0xff]  }
   0x7   :  { %7092 = vmatpush1.bf16.msra.mxu1 %v10047_v6  ;;  %v10065_v18 = vld [vmem:[%s15529_s1 + $0x40] ss:$8 sps:$4 sm:$0xff]   ;;  %v10067_v20 = vld [vmem:[%s15529_s1 + $0x54] ss:$8 sps:$4 sm:$0xff]   ;;  %v10071_v22 = vld [vmem:[%s15529_s1 + $0x50] ss:$8 sps:$4 sm:$0xff]  }
   0x8   :  { %7830 = vmatpush1.bf16.msra.mxu0 %v10048_v7  ;;  %7093 = vmatprep.subr.bf16.mxu1 %v10049_v8  ;;  %v10066_v19 = vld [vmem:[%s15529_s1 + $0x1240] ss:$8 sps:$4 sm:$0xff]   ;;  %v10069_v21 = vld [vmem:[%s15529_s1 + $0x1254] ss:$8 sps:$4 sm:$0xff]   ;;  %v10072_v23 = vld [vmem:[%s15529_s1 + $0x1250] ss:$8 sps:$4 sm:$0xff]  }
   0x9   :  { %7831 = vmatprep.subr.bf16.mxu0 %v10051_v9  ;;  %v10073_v24 = vld [vmem:[%s15529_s1 + $0x64] ss:$8 sps:$4 sm:$0xff]   ;;  %v10077_v26 = vld [vmem:[%s15529_s1 + $0x60] ss:$8 sps:$4 sm:$0xff]   ;;  %v10079_v28 = vld [vmem:[%s15529_s1 + $0x74] ss:$8 sps:$4 sm:$0xff]  }
   0xa   :  { %v10075_v25 = vld [vmem:[%s15529_s1 + $0x1264] ss:$8 sps:$4 sm:$0xff]   ;;  %v10078_v27 = vld [vmem:[%s15529_s1 + $0x1260] ss:$8 sps:$4 sm:$0xff]   ;;  %v10081_v29 = vld [vmem:[%s15529_s1 + $0x1274] ss:$8 sps:$4 sm:$0xff]  }
   0xb   :  { %7094 = vmatpush1.bf16.msra.mxu1 %v10053_v10  ;;  %v10083_v30 = vld [vmem:[%s15529_s1 + $0x70] ss:$8 sps:$4 sm:$0xff]   ;;  %v10085_v32 = vld [vmem:[%s15529_s1 + $0x84] ss:$8 sps:$4 sm:$0xff]   ;;  %v10089_v34 = vld [vmem:[%s15529_s1 + $0x80] ss:$8 sps:$4 sm:$0xff]  }
   0xc   :  { %7832 = vmatpush1.bf16.msra.mxu0 %v10054_v11  ;;  %7095 = vmatprep.subr.bf16.mxu1 %v10055_v12  ;;  %v10084_v31 = vld [vmem:[%s15529_s1 + $0x1270] ss:$8 sps:$4 sm:$0xff]   ;;  %v10087_v33 = vld [vmem:[%s15529_s1 + $0x1284] ss:$8 sps:$4 sm:$0xff]   ;;  %v10090_v35 = vld [vmem:[%s15529_s1 + $0x1280] ss:$8 sps:$4 sm:$0xff]  }
   0xd   :  { %7833 = vmatprep.subr.bf16.mxu0 %v10057_v13  ;;  %v10091_v36 = vld [vmem:[%s15529_s1 + $0x94] ss:$8 sps:$4 sm:$0xff]   ;;  %v10095_v38 = vld [vmem:[%s15529_s1 + $0x90] ss:$8 sps:$4 sm:$0xff]   ;;  %v10097_v40 = vld [vmem:[%s15529_s1 + $0xa4] ss:$8 sps:$4 sm:$0xff]  }
   0xe   :  { %v10093_v37 = vld [vmem:[%s15529_s1 + $0x1294] ss:$8 sps:$4 sm:$0xff]   ;;  %v10096_v39 = vld [vmem:[%s15529_s1 + $0x1290] ss:$8 sps:$4 sm:$0xff]   ;;  %v10099_v41 = vld [vmem:[%s15529_s1 + $0x12a4] ss:$8 sps:$4 sm:$0xff]  }
   0xf   :  { %7096 = vmatpush1.bf16.msra.mxu1 %v10059_v14  ;;  %v10101_v42 = vld [vmem:[%s15529_s1 + $0xa0] ss:$8 sps:$4 sm:$0xff]   ;;  %v10103_v44 = vld [vmem:[%s15529_s1 + $0xb4] ss:$8 sps:$4 sm:$0xff]   ;;  %v10107_v47 = vld [vmem:[%s15529_s1 + $0xb0] ss:$8 sps:$4 sm:$0xff]  }
  0x10   :  { %7834 = vmatpush1.bf16.msra.mxu0 %v10060_v15  ;;  %7097 = vmatprep.subr.bf16.mxu1 %v10061_v16  ;;  %v10102_v43 = vld [vmem:[%s15529_s1 + $0x12a0] ss:$8 sps:$4 sm:$0xff]   ;;  %v10105_v45 = vld [vmem:[%s15529_s1 + $0x12b4] ss:$8 sps:$4 sm:$0xff]   ;;  %v10108_v49 = vld [vmem:[%s15529_s1 + $0x12b0] ss:$8 sps:$4 sm:$0xff]  }
  0x11   :  { %7835 = vmatprep.subr.bf16.mxu0 %v10063_v17  ;;  %v22_v46 = vld [vmem:[%s15530_s0 + $0x8] sm:$0xff]  ;;  %v10115_v56 = vld [vmem:[%s15529_s1 + $0xd4] ss:$8 sps:$4 sm:$0xff]   ;;  %v10119_v58 = vld [vmem:[%s15529_s1 + $0xd0] ss:$8 sps:$4 sm:$0xff]  }
  0x12   :  { %v94_v48 = vpack.c.bf16 %v22_v46, %v22_v46  ;;  %v58_v50 = vld [vmem:[%s15530_s0 + $0x128] sm:$0xff]  ;;  %v10117_v57 = vld [vmem:[%s15529_s1 + $0x12d4] ss:$8 sps:$4 sm:$0xff]   ;;  %v10120_v59 = vld [vmem:[%s15529_s1 + $0x12d0] ss:$8 sps:$4 sm:$0xff]  }
  0x13   :  { %7098 = vmatpush1.bf16.msra.mxu1 %v10065_v18  ;;  %v10109_v51 = vld [vmem:[%s15529_s1 + $0xc4] ss:$8 sps:$4 sm:$0xff]   ;;  %v130_v53 = vpack.c.bf16 %v58_v50, %v58_v50  ;;  %v10113_v54 = vld [vmem:[%s15529_s1 + $0xc0] ss:$8 sps:$4 sm:$0xff]   ;;  %v10127_v0 = vld [vmem:[%s15529_s1 + $0xf4] ss:$8 sps:$4 sm:$0xff]  }
  0x14   :  { %7836 = vmatpush1.bf16.msra.mxu0 %v10066_v19  ;;  %7099 = vmatprep.subr.bf16.mxu1 %v10067_v20  ;;  %v10111_v52 = vld [vmem:[%s15529_s1 + $0x12c4] ss:$8 sps:$4 sm:$0xff]   ;;  %v10114_v55 = vld [vmem:[%s15529_s1 + $0x12c0] ss:$8 sps:$4 sm:$0xff]   ;;  %v10129_v1 = vld [vmem:[%s15529_s1 + $0x12f4] ss:$8 sps:$4 sm:$0xff]  }
  0x15   :  { %7837 = vmatprep.subr.bf16.mxu0 %v10069_v21  ;;  %7121 = vmatprep.mubr.bf16.mxu1 %v94_v48  ;;  %v10121_v60 = vld [vmem:[%s15529_s1 + $0xe4] ss:$8 sps:$4 sm:$0xff]   ;;  %v10125_v62 = vld [vmem:[%s15529_s1 + $0xe0] ss:$8 sps:$4 sm:$0xff]   ;;  %v10131_v2 = vld [vmem:[%s15529_s1 + $0xf0] ss:$8 sps:$4 sm:$0xff]  }
  0x16   :  { %7859 = vmatprep.mubr.bf16.mxu0 %v130_v53  ;;  %v10123_v61 = vld [vmem:[%s15529_s1 + $0x12e4] ss:$8 sps:$4 sm:$0xff]   ;;  %v10126_v63 = vld [vmem:[%s15529_s1 + $0x12e0] ss:$8 sps:$4 sm:$0xff]   ;;  %v10132_v3 = vld [vmem:[%s15529_s1 + $0x12f0] ss:$8 sps:$4 sm:$0xff]  }
  0x17   :  { %7100 = vmatpush1.bf16.msra.mxu1 %v10071_v22  ;;  %v10135_v4 = vld [vmem:[%s15529_s1 + $0x104] ss:$8 sps:$4 sm:$0xff]   ;;  %v10133_v8 = vld [vmem:[%s15529_s1 + $0x100] ss:$8 sps:$4 sm:$0xff]   ;;  %v10141_v12 = vld [vmem:[%s15529_s1 + $0x114] ss:$8 sps:$4 sm:$0xff]  }
  0x18   :  { %7838 = vmatpush1.bf16.msra.mxu0 %v10072_v23  ;;  %7101 = vmatprep.subr.bf16.mxu1 %v10073_v24  ;;  %v21_v5 = vld [vmem:[%s15530_s0] sm:$0xff]  ;;  %v10144_v13 = vld [vmem:[%s15529_s1 + $0x1314] ss:$8 sps:$4 sm:$0xff]   ;;  %v10139_v14 = vld [vmem:[%s15529_s1 + $0x110] ss:$8 sps:$4 sm:$0xff]  }
  0x19   :  { %7839 = vmatprep.subr.bf16.mxu0 %v10075_v25  ;;  %v57_v6 = vld [vmem:[%s15530_s0 + $0x120] sm:$0xff]  ;;  %v93_v10 = vpack.c.bf16 %v21_v5, %v21_v5  ;;  %v10142_v15 = vld [vmem:[%s15529_s1 + $0x1310] ss:$8 sps:$4 sm:$0xff]   ;;  %v10153_v20 = vld [vmem:[%s15529_s1 + $0x134] ss:$8 sps:$4 sm:$0xff]  }
  0x1a   :  { %v10138_v7 = vld [vmem:[%s15529_s1 + $0x1304] ss:$8 sps:$4 sm:$0xff]   ;;  %v10136_v9 = vld [vmem:[%s15529_s1 + $0x1300] ss:$8 sps:$4 sm:$0xff]   ;;  %v129_v11 = vpack.c.bf16 %v57_v6, %v57_v6  ;;  %v10156_v21 = vld [vmem:[%s15529_s1 + $0x1334] ss:$8 sps:$4 sm:$0xff]  }
  0x1b   :  { %7102 = vmatpush1.bf16.msra.mxu1 %v10077_v26  ;;  %v10147_v16 = vld [vmem:[%s15529_s1 + $0x124] ss:$8 sps:$4 sm:$0xff]   ;;  %v10145_v18 = vld [vmem:[%s15529_s1 + $0x120] ss:$8 sps:$4 sm:$0xff]   ;;  %v10151_v22 = vld [vmem:[%s15529_s1 + $0x130] ss:$8 sps:$4 sm:$0xff]  }
  0x1c   :  { %7840 = vmatpush1.bf16.msra.mxu0 %v10078_v27  ;;  %7103 = vmatprep.subr.bf16.mxu1 %v10079_v28  ;;  %v10150_v17 = vld [vmem:[%s15529_s1 + $0x1324] ss:$8 sps:$4 sm:$0xff]   ;;  %v10148_v19 = vld [vmem:[%s15529_s1 + $0x1320] ss:$8 sps:$4 sm:$0xff]   ;;  %v10154_v23 = vld [vmem:[%s15529_s1 + $0x1330] ss:$8 sps:$4 sm:$0xff]  }
  0x1d   :  { %7841 = vmatprep.subr.bf16.mxu0 %v10081_v29  ;;  %v10159_v24 = vld [vmem:[%s15529_s1 + $0x144] ss:$8 sps:$4 sm:$0xff]   ;;  %v10157_v26 = vld [vmem:[%s15529_s1 + $0x140] ss:$8 sps:$4 sm:$0xff]   ;;  %v10165_v28 = vld [vmem:[%s15529_s1 + $0x154] ss:$8 sps:$4 sm:$0xff]  }
  0x1e   :  { %v10162_v25 = vld [vmem:[%s15529_s1 + $0x1344] ss:$8 sps:$4 sm:$0xff]   ;;  %v10160_v27 = vld [vmem:[%s15529_s1 + $0x1340] ss:$8 sps:$4 sm:$0xff]   ;;  %v10168_v29 = vld [vmem:[%s15529_s1 + $0x1354] ss:$8 sps:$4 sm:$0xff]  }
  0x1f   :  { %7104 = vmatpush1.bf16.msra.mxu1 %v10083_v30  ;;  %v10163_v30 = vld [vmem:[%s15529_s1 + $0x150] ss:$8 sps:$4 sm:$0xff]   ;;  %v10181_v46 = vld [vmem:[%s15529_s1 + $0x180] ss:$8 sps:$4 sm:$0xff]   ;;  %v10189_v48 = vld [vmem:[%s15529_s1 + $0x194] ss:$8 sps:$4 sm:$0xff]  }
  0x20   :  { %7842 = vmatpush1.bf16.msra.mxu0 %v10084_v31  ;;  %7105 = vmatprep.subr.bf16.mxu1 %v10085_v32  ;;  %v10166_v31 = vld [vmem:[%s15529_s1 + $0x1350] ss:$8 sps:$4 sm:$0xff]   ;;  %v10171_v32 = vld [vmem:[%s15529_s1 + $0x164] ss:$8 sps:$4 sm:$0xff]   ;;  %v10217_v6 = vld [vmem:[%s15529_s1 + $0x1e0] ss:$8 sps:$4 sm:$0xff]  }
  0x21   :  { %7843 = vmatprep.subr.bf16.mxu0 %v10087_v33  ;;  %v10174_v33 = vld [vmem:[%s15529_s1 + $0x1364] ss:$8 sps:$4 sm:$0xff]   ;;  %v10187_v50 = vld [vmem:[%s15529_s1 + $0x190] ss:$8 sps:$4 sm:$0xff]  }
  0x22   :  { %v10198_v53 = vld [vmem:[%s15529_s1 + $0x13a4] ss:$8 sps:$4 sm:$0xff]  }
  0x23   :  { %7106 = vmatpush1.bf16.msra.mxu1 %v10089_v34  ;;  %v24_v34 = vld [vmem:[%s15530_s0 + $0x18] sm:$0xff]  ;;  %v10222_v5 = vld [vmem:[%s15529_s1 + $0x13e4] ss:$8 sps:$4 sm:$0xff]  }
  0x24   :  { %7844 = vmatpush1.bf16.msra.mxu0 %v10090_v35  ;;  %7107 = vmatprep.subr.bf16.mxu1 %v10091_v36  ;;  %v10169_v35 = vld [vmem:[%s15529_s1 + $0x160] ss:$8 sps:$4 sm:$0xff]   ;;  %v96_v36 = vpack.c.bf16 %v24_v34, %v24_v34  ;;  %v10247_v34 = vld [vmem:[%s15529_s1 + $0x230] ss:$8 sps:$4 sm:$0xff]  }
  0x25   :  { %7845 = vmatprep.subr.bf16.mxu0 %v10093_v37  ;;  %v10172_v37 = vld [vmem:[%s15529_s1 + $0x1360] ss:$8 sps:$4 sm:$0xff]  }
  0x27   :  { %7108 = vmatpush1.bf16.msra.mxu1 %v10095_v38  ;;  %v60_v38 = vld [vmem:[%s15530_s0 + $0x138] sm:$0xff] }
  0x28   :  { %7846 = vmatpush1.bf16.msra.mxu0 %v10096_v39  ;;  %7109 = vmatprep.subr.bf16.mxu1 %v10097_v40  ;;  %v10177_v39 = vld [vmem:[%s15529_s1 + $0x174] ss:$8 sps:$4 sm:$0xff]  }
  0x29   :  { %7847 = vmatprep.subr.bf16.mxu0 %v10099_v41  ;;  %v10180_v40 = vld [vmem:[%s15529_s1 + $0x1374] ss:$8 sps:$4 sm:$0xff]   ;;  %v132_v41 = vpack.c.bf16 %v60_v38, %v60_v38  ;;  %v10253_v38 = vld [vmem:[%s15529_s1 + $0x240] ss:$8 sps:$4 sm:$0xff]  }
  0x2b   :  { %7110 = vmatpush1.bf16.msra.mxu1 %v10101_v42  ;;  %v10175_v42 = vld [vmem:[%s15529_s1 + $0x170] ss:$8 sps:$4 sm:$0xff]  }
  0x2c   :  { %7848 = vmatpush1.bf16.msra.mxu0 %v10102_v43  ;;  %7111 = vmatprep.subr.bf16.mxu1 %v10103_v44  ;;  %v10178_v43 = vld [vmem:[%s15529_s1 + $0x1370] ss:$8 sps:$4 sm:$0xff]   ;;  %v10183_v44 = vld [vmem:[%s15529_s1 + $0x184] ss:$8 sps:$4 sm:$0xff]  }
  0x2d   :  { %7849 = vmatprep.subr.bf16.mxu0 %v10105_v45  ;;  %v10186_v45 = vld [vmem:[%s15529_s1 + $0x1384] ss:$8 sps:$4 sm:$0xff]  }
  0x2f   :  { %7112 = vmatpush1.bf16.msra.mxu1 %v10107_v47  ;;  %v10184_v47 = vld [vmem:[%s15529_s1 + $0x1380] ss:$8 sps:$4 sm:$0xff]  }
  0x30   :  { %7850 = vmatpush1.bf16.msra.mxu0 %v10108_v49  ;;  %7113 = vmatprep.subr.bf16.mxu1 %v10109_v51  ;;  %v10192_v49 = vld [vmem:[%s15529_s1 + $0x1394] ss:$8 sps:$4 sm:$0xff]   ;;  %v10190_v51 = vld [vmem:[%s15529_s1 + $0x1390] ss:$8 sps:$4 sm:$0xff]  }
  0x31   :  { %7851 = vmatprep.subr.bf16.mxu0 %v10111_v52  ;;  %v10195_v52 = vld [vmem:[%s15529_s1 + $0x1a4] ss:$8 sps:$4 sm:$0xff]  }
  0x33   :  { %7114 = vmatpush1.bf16.msra.mxu1 %v10113_v54  ;;  %v10193_v54 = vld [vmem:[%s15529_s1 + $0x1a0] ss:$8 sps:$4 sm:$0xff]  }
  0x34   :  { %7852 = vmatpush1.bf16.msra.mxu0 %v10114_v55  ;;  %7115 = vmatprep.subr.bf16.mxu1 %v10115_v56  ;;  %v10196_v55 = vld [vmem:[%s15529_s1 + $0x13a0] ss:$8 sps:$4 sm:$0xff]   ;;  %v10201_v56 = vld [vmem:[%s15529_s1 + $0x1b4] ss:$8 sps:$4 sm:$0xff]  }
  0x35   :  { %7853 = vmatprep.subr.bf16.mxu0 %v10117_v57  ;;  %v10204_v57 = vld [vmem:[%s15529_s1 + $0x13b4] ss:$8 sps:$4 sm:$0xff]  }
  0x37   :  { %7116 = vmatpush1.bf16.msra.mxu1 %v10119_v58  ;;  %v10199_v58 = vld [vmem:[%s15529_s1 + $0x1b0] ss:$8 sps:$4 sm:$0xff]  }
  0x38   :  { %7854 = vmatpush1.bf16.msra.mxu0 %v10120_v59  ;;  %7117 = vmatprep.subr.bf16.mxu1 %v10121_v60  ;;  %v10202_v59 = vld [vmem:[%s15529_s1 + $0x13b0] ss:$8 sps:$4 sm:$0xff]   ;;  %v10207_v60 = vld [vmem:[%s15529_s1 + $0x1c4] ss:$8 sps:$4 sm:$0xff]  }
  0x39   :  { %7855 = vmatprep.subr.bf16.mxu0 %v10123_v61  ;;  %v10210_v61 = vld [vmem:[%s15529_s1 + $0x13c4] ss:$8 sps:$4 sm:$0xff]  }
  0x3b   :  { %7118 = vmatpush1.bf16.msra.mxu1 %v10125_v62  ;;  %v10205_v62 = vld [vmem:[%s15529_s1 + $0x1c0] ss:$8 sps:$4 sm:$0xff]  }
  0x3c   :  { %7856 = vmatpush1.bf16.msra.mxu0 %v10126_v63  ;;  %7119 = vmatprep.subr.bf16.mxu1 %v10127_v0  ;;  %v10208_v63 = vld [vmem:[%s15529_s1 + $0x13c0] ss:$8 sps:$4 sm:$0xff]   ;;  %v10213_v0 = vld [vmem:[%s15529_s1 + $0x1d4] ss:$8 sps:$4 sm:$0xff]  }
  0x3d   :  { %7857 = vmatprep.subr.bf16.mxu0 %v10129_v1  ;;  %v10216_v1 = vld [vmem:[%s15529_s1 + $0x13d4] ss:$8 sps:$4 sm:$0xff]  }
  0x3f   :  { %7120 = vmatpush1.bf16.msra.mxu1 %v10131_v2  ;;  %v10211_v2 = vld [vmem:[%s15529_s1 + $0x1d0] ss:$8 sps:$4 sm:$0xff]  }
  0x40   :  { %7858 = vmatpush1.bf16.msra.mxu0 %v10132_v3  ;;  %7130 = vmatprep.subr.bf16.mxu1 %v10135_v4  ;;  %v10214_v3 = vld [vmem:[%s15529_s1 + $0x13d0] ss:$8 sps:$4 sm:$0xff]   ;;  %v10219_v4 = vld [vmem:[%s15529_s1 + $0x1e4] ss:$8 sps:$4 sm:$0xff]  }
  0x41   :  { %7868 = vmatprep.subr.bf16.mxu0 %v10138_v7  ;;  %v10220_v7 = vld [vmem:[%s15529_s1 + $0x13e0] ss:$8 sps:$4 sm:$0xff]  }
  0x42   :  { %7122 = vmatmul.mubr.bf16.vlgmr.msra.gmra.mrb[0].mxu1 %v93_v10  ;;  %v10223_v10 = vld [vmem:[%s15529_s1 + $0x1f0] ss:$8 sps:$4 sm:$0xff]  }
  0x43   :  { %7860 = vmatmul.mubr.bf16.vlgmr.msra.gmra.mrb[0].mxu0 %v129_v11  ;;  %7131 = vmatpush1.bf16.msra.mxu1 %v10133_v8  ;;  %v10225_v8 = vld [vmem:[%s15529_s1 + $0x1f4] ss:$8 sps:$4 sm:$0xff]   ;;  %v10226_v11 = vld [vmem:[%s15529_s1 + $0x13f0] ss:$8 sps:$4 sm:$0xff]  }
  0x44   :  { %7869 = vmatpush1.bf16.msra.mxu0 %v10136_v9  ;;  %7132 = vmatprep.subr.bf16.mxu1 %v10141_v12  ;;  %v10228_v9 = vld [vmem:[%s15529_s1 + $0x13f4] ss:$8 sps:$4 sm:$0xff]   ;;  %v10231_v12 = vld [vmem:[%s15529_s1 + $0x204] ss:$8 sps:$4 sm:$0xff]  }
  0x45   :  { %7870 = vmatprep.subr.bf16.mxu0 %v10144_v13  ;;  %7162 = vmatprep.mubr.bf16.mxu1 %v96_v36  ;;  %v23_v13 = vld [vmem:[%s15530_s0 + $0x10] sm:$0xff]  ;;  %v10255_v36 = vld [vmem:[%s15529_s1 + $0x244] ss:$8 sps:$4 sm:$0xff]  }
  0x46   :  { %7900 = vmatprep.mubr.bf16.mxu0 %v132_v41  ;;  %v10264_v41 = vld [vmem:[%s15529_s1 + $0x1454] ss:$8 sps:$4 sm:$0xff]  }
  0x47   :  { %7133 = vmatpush1.bf16.msra.mxu1 %v10139_v14  ;;  %v59_v14 = vld [vmem:[%s15530_s0 + $0x130] sm:$0xff] }
  0x48   :  { %7871 = vmatpush1.bf16.msra.mxu0 %v10142_v15  ;;  %7134 = vmatprep.subr.bf16.mxu1 %v10147_v16  ;;  %v10234_v15 = vld [vmem:[%s15529_s1 + $0x1404] ss:$8 sps:$4 sm:$0xff]   ;;  %v10229_v16 = vld [vmem:[%s15529_s1 + $0x200] ss:$8 sps:$4 sm:$0xff]  }
  0x49   :  { %7872 = vmatprep.subr.bf16.mxu0 %v10150_v17  ;;  %v10232_v17 = vld [vmem:[%s15529_s1 + $0x1400] ss:$8 sps:$4 sm:$0xff]  }
  0x4b   :  { %7135 = vmatpush1.bf16.msra.mxu1 %v10145_v18  ;;  %v95_v18 = vpack.c.bf16 %v23_v13, %v23_v13  ;;  %v10318_v13 = vld [vmem:[%s15529_s1 + $0x14e4] ss:$8 sps:$4 sm:$0xff]  }
  0x4c   :  { %7873 = vmatpush1.bf16.msra.mxu0 %v10148_v19  ;;  %7136 = vmatprep.subr.bf16.mxu1 %v10153_v20  ;;  %v131_v19 = vpack.c.bf16 %v59_v14, %v59_v14  ;;  %v10237_v20 = vld [vmem:[%s15529_s1 + $0x214] ss:$8 sps:$4 sm:$0xff]   ;;  %v10313_v14 = vld [vmem:[%s15529_s1 + $0x2e0] ss:$8 sps:$4 sm:$0xff]  }
  0x4d   :  { %7874 = vmatprep.subr.bf16.mxu0 %v10156_v21  ;;  %v10240_v21 = vld [vmem:[%s15529_s1 + $0x1414] ss:$8 sps:$4 sm:$0xff]  }
  0x4f   :  { %7137 = vmatpush1.bf16.msra.mxu1 %v10151_v22  ;;  %v26_v22 = vld [vmem:[%s15530_s0 + $0x28] sm:$0xff] }
  0x50   :  { %7875 = vmatpush1.bf16.msra.mxu0 %v10154_v23  ;;  %7138 = vmatprep.subr.bf16.mxu1 %v10159_v24  ;;  %v10235_v23 = vld [vmem:[%s15529_s1 + $0x210] ss:$8 sps:$4 sm:$0xff]   ;;  %v98_v24 = vpack.c.bf16 %v26_v22, %v26_v22  ;;  %v61_v22 = vld [vmem:[%s15530_s0 + $0x140] sm:$0xff] }
  0x51   :  { %7876 = vmatprep.subr.bf16.mxu0 %v10162_v25  ;;  %v10238_v25 = vld [vmem:[%s15529_s1 + $0x1410] ss:$8 sps:$4 sm:$0xff]  }
  0x53   :  { %7139 = vmatpush1.bf16.msra.mxu1 %v10157_v26  ;;  %v62_v26 = vld [vmem:[%s15530_s0 + $0x148] sm:$0xff] }
  0x54   :  { %7877 = vmatpush1.bf16.msra.mxu0 %v10160_v27  ;;  %7140 = vmatprep.subr.bf16.mxu1 %v10165_v28  ;;  %v10243_v27 = vld [vmem:[%s15529_s1 + $0x224] ss:$8 sps:$4 sm:$0xff]  }
  0x55   :  { %7878 = vmatprep.subr.bf16.mxu0 %v10168_v29  ;;  %v10246_v28 = vld [vmem:[%s15529_s1 + $0x1424] ss:$8 sps:$4 sm:$0xff]   ;;  %v134_v29 = vpack.c.bf16 %v62_v26, %v62_v26 }
  0x57   :  { %7141 = vmatpush1.bf16.msra.mxu1 %v10163_v30  ;;  %v10241_v30 = vld [vmem:[%s15529_s1 + $0x220] ss:$8 sps:$4 sm:$0xff]  }
  0x58   :  { %7879 = vmatpush1.bf16.msra.mxu0 %v10166_v31  ;;  %7142 = vmatprep.subr.bf16.mxu1 %v10171_v32  ;;  %v10244_v31 = vld [vmem:[%s15529_s1 + $0x1420] ss:$8 sps:$4 sm:$0xff]   ;;  %v10249_v32 = vld [vmem:[%s15529_s1 + $0x234] ss:$8 sps:$4 sm:$0xff]  }
  0x59   :  { %7880 = vmatprep.subr.bf16.mxu0 %v10174_v33  ;;  %v10252_v33 = vld [vmem:[%s15529_s1 + $0x1434] ss:$8 sps:$4 sm:$0xff]  }
  0x5b   :  { %7143 = vmatpush1.bf16.msra.mxu1 %v10169_v35  ;;  %v10250_v35 = vld [vmem:[%s15529_s1 + $0x1430] ss:$8 sps:$4 sm:$0xff]  }
  0x5c   :  { %7881 = vmatpush1.bf16.msra.mxu0 %v10172_v37  ;;  %7144 = vmatprep.subr.bf16.mxu1 %v10177_v39  ;;  %v10258_v37 = vld [vmem:[%s15529_s1 + $0x1444] ss:$8 sps:$4 sm:$0xff]   ;;  %v10256_v39 = vld [vmem:[%s15529_s1 + $0x1440] ss:$8 sps:$4 sm:$0xff]  }
  0x5d   :  { %7882 = vmatprep.subr.bf16.mxu0 %v10180_v40  ;;  %v10261_v40 = vld [vmem:[%s15529_s1 + $0x254] ss:$8 sps:$4 sm:$0xff]  }
  0x5f   :  { %7145 = vmatpush1.bf16.msra.mxu1 %v10175_v42  ;;  %v10259_v42 = vld [vmem:[%s15529_s1 + $0x250] ss:$8 sps:$4 sm:$0xff]  }
  0x60   :  { %7883 = vmatpush1.bf16.msra.mxu0 %v10178_v43  ;;  %7146 = vmatprep.subr.bf16.mxu1 %v10183_v44  ;;  %v10262_v43 = vld [vmem:[%s15529_s1 + $0x1450] ss:$8 sps:$4 sm:$0xff]   ;;  %v10267_v44 = vld [vmem:[%s15529_s1 + $0x264] ss:$8 sps:$4 sm:$0xff]  }
  0x61   :  { %7884 = vmatprep.subr.bf16.mxu0 %v10186_v45  ;;  %v10270_v45 = vld [vmem:[%s15529_s1 + $0x1464] ss:$8 sps:$4 sm:$0xff]  }
  0x63   :  { %7147 = vmatpush1.bf16.msra.mxu1 %v10181_v46  ;;  %v10265_v46 = vld [vmem:[%s15529_s1 + $0x260] ss:$8 sps:$4 sm:$0xff]  }
  0x64   :  { %7885 = vmatpush1.bf16.msra.mxu0 %v10184_v47  ;;  %7148 = vmatprep.subr.bf16.mxu1 %v10189_v48  ;;  %v10268_v47 = vld [vmem:[%s15529_s1 + $0x1460] ss:$8 sps:$4 sm:$0xff]   ;;  %v10273_v48 = vld [vmem:[%s15529_s1 + $0x274] ss:$8 sps:$4 sm:$0xff]  }
  0x65   :  { %7886 = vmatprep.subr.bf16.mxu0 %v10192_v49  ;;  %v10276_v49 = vld [vmem:[%s15529_s1 + $0x1474] ss:$8 sps:$4 sm:$0xff]  }
  0x67   :  { %7149 = vmatpush1.bf16.msra.mxu1 %v10187_v50  ;;  %v10271_v50 = vld [vmem:[%s15529_s1 + $0x270] ss:$8 sps:$4 sm:$0xff]  }
  0x68   :  { %7887 = vmatpush1.bf16.msra.mxu0 %v10190_v51  ;;  %7150 = vmatprep.subr.bf16.mxu1 %v10195_v52  ;;  %v10274_v51 = vld [vmem:[%s15529_s1 + $0x1470] ss:$8 sps:$4 sm:$0xff]   ;;  %v10279_v52 = vld [vmem:[%s15529_s1 + $0x284] ss:$8 sps:$4 sm:$0xff]  }
  0x69   :  { %7888 = vmatprep.subr.bf16.mxu0 %v10198_v53  ;;  %v10282_v53 = vld [vmem:[%s15529_s1 + $0x1484] ss:$8 sps:$4 sm:$0xff]  }
  0x6b   :  { %7151 = vmatpush1.bf16.msra.mxu1 %v10193_v54  ;;  %v10277_v54 = vld [vmem:[%s15529_s1 + $0x280] ss:$8 sps:$4 sm:$0xff]  }
  0x6c   :  { %7889 = vmatpush1.bf16.msra.mxu0 %v10196_v55  ;;  %7152 = vmatprep.subr.bf16.mxu1 %v10201_v56  ;;  %v10280_v55 = vld [vmem:[%s15529_s1 + $0x1480] ss:$8 sps:$4 sm:$0xff]   ;;  %v10285_v56 = vld [vmem:[%s15529_s1 + $0x294] ss:$8 sps:$4 sm:$0xff]  }
  0x6d   :  { %7890 = vmatprep.subr.bf16.mxu0 %v10204_v57  ;;  %v10288_v57 = vld [vmem:[%s15529_s1 + $0x1494] ss:$8 sps:$4 sm:$0xff]  }
  0x6f   :  { %7153 = vmatpush1.bf16.msra.mxu1 %v10199_v58  ;;  %v10283_v58 = vld [vmem:[%s15529_s1 + $0x290] ss:$8 sps:$4 sm:$0xff]  }
  0x70   :  { %7891 = vmatpush1.bf16.msra.mxu0 %v10202_v59  ;;  %7154 = vmatprep.subr.bf16.mxu1 %v10207_v60  ;;  %v10286_v59 = vld [vmem:[%s15529_s1 + $0x1490] ss:$8 sps:$4 sm:$0xff]   ;;  %v10291_v60 = vld [vmem:[%s15529_s1 + $0x2a4] ss:$8 sps:$4 sm:$0xff]  }
  0x71   :  { %7892 = vmatprep.subr.bf16.mxu0 %v10210_v61  ;;  %v10294_v61 = vld [vmem:[%s15529_s1 + $0x14a4] ss:$8 sps:$4 sm:$0xff]  }
  0x73   :  { %7155 = vmatpush1.bf16.msra.mxu1 %v10205_v62  ;;  %v10289_v62 = vld [vmem:[%s15529_s1 + $0x2a0] ss:$8 sps:$4 sm:$0xff]  }
  0x74   :  { %7893 = vmatpush1.bf16.msra.mxu0 %v10208_v63  ;;  %7156 = vmatprep.subr.bf16.mxu1 %v10213_v0  ;;  %v10292_v63 = vld [vmem:[%s15529_s1 + $0x14a0] ss:$8 sps:$4 sm:$0xff]   ;;  %v10297_v0 = vld [vmem:[%s15529_s1 + $0x2b4] ss:$8 sps:$4 sm:$0xff]  }
  0x75   :  { %7894 = vmatprep.subr.bf16.mxu0 %v10216_v1  ;;  %v10300_v1 = vld [vmem:[%s15529_s1 + $0x14b4] ss:$8 sps:$4 sm:$0xff]  }
  0x77   :  { %7157 = vmatpush1.bf16.msra.mxu1 %v10211_v2  ;;  %v10295_v2 = vld [vmem:[%s15529_s1 + $0x2b0] ss:$8 sps:$4 sm:$0xff]  }
  0x78   :  { %7895 = vmatpush1.bf16.msra.mxu0 %v10214_v3  ;;  %7158 = vmatprep.subr.bf16.mxu1 %v10219_v4  ;;  %v10298_v3 = vld [vmem:[%s15529_s1 + $0x14b0] ss:$8 sps:$4 sm:$0xff]   ;;  %v10303_v4 = vld [vmem:[%s15529_s1 + $0x2c4] ss:$8 sps:$4 sm:$0xff]  }
  0x79   :  { %7896 = vmatprep.subr.bf16.mxu0 %v10222_v5  ;;  %v10306_v5 = vld [vmem:[%s15529_s1 + $0x14c4] ss:$8 sps:$4 sm:$0xff]  }
  0x7b   :  { %7159 = vmatpush1.bf16.msra.mxu1 %v10217_v6  ;;  %v10301_v6 = vld [vmem:[%s15529_s1 + $0x2c0] ss:$8 sps:$4 sm:$0xff]  }
  0x7c   :  { %7897 = vmatpush1.bf16.msra.mxu0 %v10220_v7  ;;  %7160 = vmatprep.subr.bf16.mxu1 %v10225_v8  ;;  %v10304_v7 = vld [vmem:[%s15529_s1 + $0x14c0] ss:$8 sps:$4 sm:$0xff]   ;;  %v10309_v8 = vld [vmem:[%s15529_s1 + $0x2d4] ss:$8 sps:$4 sm:$0xff]  }
  0x7d   :  { %7898 = vmatprep.subr.bf16.mxu0 %v10228_v9  ;;  %v10312_v9 = vld [vmem:[%s15529_s1 + $0x14d4] ss:$8 sps:$4 sm:$0xff]  }
  0x7f   :  { %7161 = vmatpush1.bf16.msra.mxu1 %v10223_v10  ;;  %v10307_v10 = vld [vmem:[%s15529_s1 + $0x2d0] ss:$8 sps:$4 sm:$0xff]  }
  0x80   :  { %7899 = vmatpush1.bf16.msra.mxu0 %v10226_v11  ;;  %7171 = vmatprep.subr.bf16.mxu1 %v10231_v12  ;;  %v10310_v11 = vld [vmem:[%s15529_s1 + $0x14d0] ss:$8 sps:$4 sm:$0xff]   ;;  %v10315_v12 = vld [vmem:[%s15529_s1 + $0x2e4] ss:$8 sps:$4 sm:$0xff]  }
  0x81   :  { %7909 = vmatprep.subr.bf16.mxu0 %v10234_v15  ;;  %v10316_v15 = vld [vmem:[%s15529_s1 + $0x14e0] ss:$8 sps:$4 sm:$0xff]  }
  0x82   :  { %7163 = vmatmul.mubr.bf16.vlgmr.msra.gmra.mrb[0].mxu1 %v95_v18  ;;  %v10319_v18 = vld [vmem:[%s15529_s1 + $0x2f0] ss:$8 sps:$4 sm:$0xff]  }
  0x83   :  { %7901 = vmatmul.mubr.bf16.vlgmr.msra.gmra.mrb[0].mxu0 %v131_v19  ;;  %7172 = vmatpush1.bf16.msra.mxu1 %v10229_v16  ;;  %v10321_v16 = vld [vmem:[%s15529_s1 + $0x2f4] ss:$8 sps:$4 sm:$0xff]   ;;  %v10322_v19 = vld [vmem:[%s15529_s1 + $0x14f0] ss:$8 sps:$4 sm:$0xff]  }
  0x84   :  { %7910 = vmatpush1.bf16.msra.mxu0 %v10232_v17  ;;  %7173 = vmatprep.subr.bf16.mxu1 %v10237_v20  ;;  %v10324_v17 = vld [vmem:[%s15529_s1 + $0x14f4] ss:$8 sps:$4 sm:$0xff]   ;;  %v10327_v20 = vld [vmem:[%s15529_s1 + $0x304] ss:$8 sps:$4 sm:$0xff]  }
  0x85   :  { %7911 = vmatprep.subr.bf16.mxu0 %v10240_v21  ;;  %7203 = vmatprep.mubr.bf16.mxu1 %v98_v24  ;;  %v25_v21 = vld [vmem:[%s15530_s0 + $0x20] sm:$0xff] }
  0x86   :  { %7941 = vmatprep.mubr.bf16.mxu0 %v134_v29  ;;  %v10325_v24 = vld [vmem:[%s15529_s1 + $0x300] ss:$8 sps:$4 sm:$0xff]   ;;  %v97_v26 = vpack.c.bf16 %v25_v21, %v25_v21  ;;  %v64_v29 = vld [vmem:[%s15530_s0 + $0x158] sm:$0xff]  ;;  %v10414_v21 = vld [vmem:[%s15529_s1 + $0x15e4] ss:$8 sps:$4 sm:$0xff]  }
  0x87   :  { %7174 = vmatpush1.bf16.msra.mxu1 %v10235_v23  ;;  %v10330_v23 = vld [vmem:[%s15529_s1 + $0x1504] ss:$8 sps:$4 sm:$0xff]  }
  0x88   :  { %7912 = vmatpush1.bf16.msra.mxu0 %v10238_v25  ;;  %7175 = vmatprep.subr.bf16.mxu1 %v10243_v27  ;;  %v10328_v25 = vld [vmem:[%s15529_s1 + $0x1500] ss:$8 sps:$4 sm:$0xff]   ;;  %v133_v27 = vpack.c.bf16 %v61_v22, %v61_v22 }
  0x89   :  { %7913 = vmatprep.subr.bf16.mxu0 %v10246_v28  ;;  %v28_v28 = vld [vmem:[%s15530_s0 + $0x38] sm:$0xff]  ;;  %v10409_v22 = vld [vmem:[%s15529_s1 + $0x3e0] ss:$8 sps:$4 sm:$0xff]  }
  0x8b   :  { %7176 = vmatpush1.bf16.msra.mxu1 %v10241_v30  ;;  %v10333_v30 = vld [vmem:[%s15529_s1 + $0x314] ss:$8 sps:$4 sm:$0xff]  }
  0x8c   :  { %7914 = vmatpush1.bf16.msra.mxu0 %v10244_v31  ;;  %7177 = vmatprep.subr.bf16.mxu1 %v10249_v32  ;;  %v10336_v31 = vld [vmem:[%s15529_s1 + $0x1514] ss:$8 sps:$4 sm:$0xff]   ;;  %v100_v32 = vpack.c.bf16 %v28_v28, %v28_v28  ;;  %v10423_v28 = vld [vmem:[%s15529_s1 + $0x404] ss:$8 sps:$4 sm:$0xff]  }
  0x8d   :  { %7915 = vmatprep.subr.bf16.mxu0 %v10252_v33  ;;  %v136_v33 = vpack.c.bf16 %v64_v29, %v64_v29  ;;  %v27_v29 = vld [vmem:[%s15530_s0 + $0x30] sm:$0xff] }
  0x8f   :  { %7178 = vmatpush1.bf16.msra.mxu1 %v10247_v34  ;;  %v10331_v34 = vld [vmem:[%s15529_s1 + $0x310] ss:$8 sps:$4 sm:$0xff]  }
  0x90   :  { %7916 = vmatpush1.bf16.msra.mxu0 %v10250_v35  ;;  %7179 = vmatprep.subr.bf16.mxu1 %v10255_v36  ;;  %v10334_v35 = vld [vmem:[%s15529_s1 + $0x1510] ss:$8 sps:$4 sm:$0xff]   ;;  %v10339_v36 = vld [vmem:[%s15529_s1 + $0x324] ss:$8 sps:$4 sm:$0xff]  }
  0x91   :  { %7917 = vmatprep.subr.bf16.mxu0 %v10258_v37  ;;  %v10342_v37 = vld [vmem:[%s15529_s1 + $0x1524] ss:$8 sps:$4 sm:$0xff]  }
  0x93   :  { %7180 = vmatpush1.bf16.msra.mxu1 %v10253_v38  ;;  %v10337_v38 = vld [vmem:[%s15529_s1 + $0x320] ss:$8 sps:$4 sm:$0xff]  }
  0x94   :  { %7918 = vmatpush1.bf16.msra.mxu0 %v10256_v39  ;;  %7181 = vmatprep.subr.bf16.mxu1 %v10261_v40  ;;  %v10340_v39 = vld [vmem:[%s15529_s1 + $0x1520] ss:$8 sps:$4 sm:$0xff]   ;;  %v10345_v40 = vld [vmem:[%s15529_s1 + $0x334] ss:$8 sps:$4 sm:$0xff]  }
  0x95   :  { %7919 = vmatprep.subr.bf16.mxu0 %v10264_v41  ;;  %v10348_v41 = vld [vmem:[%s15529_s1 + $0x1534] ss:$8 sps:$4 sm:$0xff]  }
  0x97   :  { %7182 = vmatpush1.bf16.msra.mxu1 %v10259_v42  ;;  %v10343_v42 = vld [vmem:[%s15529_s1 + $0x330] ss:$8 sps:$4 sm:$0xff]  }
  0x98   :  { %7920 = vmatpush1.bf16.msra.mxu0 %v10262_v43  ;;  %7183 = vmatprep.subr.bf16.mxu1 %v10267_v44  ;;  %v10346_v43 = vld [vmem:[%s15529_s1 + $0x1530] ss:$8 sps:$4 sm:$0xff]   ;;  %v10351_v44 = vld [vmem:[%s15529_s1 + $0x344] ss:$8 sps:$4 sm:$0xff]  }
  0x99   :  { %7921 = vmatprep.subr.bf16.mxu0 %v10270_v45  ;;  %v10354_v45 = vld [vmem:[%s15529_s1 + $0x1544] ss:$8 sps:$4 sm:$0xff]  }
  0x9b   :  { %7184 = vmatpush1.bf16.msra.mxu1 %v10265_v46  ;;  %v10349_v46 = vld [vmem:[%s15529_s1 + $0x340] ss:$8 sps:$4 sm:$0xff]  }
  0x9c   :  { %7922 = vmatpush1.bf16.msra.mxu0 %v10268_v47  ;;  %7185 = vmatprep.subr.bf16.mxu1 %v10273_v48  ;;  %v10352_v47 = vld [vmem:[%s15529_s1 + $0x1540] ss:$8 sps:$4 sm:$0xff]   ;;  %v10357_v48 = vld [vmem:[%s15529_s1 + $0x354] ss:$8 sps:$4 sm:$0xff]  }
  0x9d   :  { %7923 = vmatprep.subr.bf16.mxu0 %v10276_v49  ;;  %v10360_v49 = vld [vmem:[%s15529_s1 + $0x1554] ss:$8 sps:$4 sm:$0xff]  }
  0x9f   :  { %7186 = vmatpush1.bf16.msra.mxu1 %v10271_v50  ;;  %v10355_v50 = vld [vmem:[%s15529_s1 + $0x350] ss:$8 sps:$4 sm:$0xff]  }
  0xa0   :  { %7924 = vmatpush1.bf16.msra.mxu0 %v10274_v51  ;;  %7187 = vmatprep.subr.bf16.mxu1 %v10279_v52  ;;  %v10358_v51 = vld [vmem:[%s15529_s1 + $0x1550] ss:$8 sps:$4 sm:$0xff]   ;;  %v10363_v52 = vld [vmem:[%s15529_s1 + $0x364] ss:$8 sps:$4 sm:$0xff]  }
  0xa1   :  { %7925 = vmatprep.subr.bf16.mxu0 %v10282_v53  ;;  %v10366_v53 = vld [vmem:[%s15529_s1 + $0x1564] ss:$8 sps:$4 sm:$0xff]  }
  0xa3   :  { %7188 = vmatpush1.bf16.msra.mxu1 %v10277_v54  ;;  %v10361_v54 = vld [vmem:[%s15529_s1 + $0x360] ss:$8 sps:$4 sm:$0xff]  }
  0xa4   :  { %7926 = vmatpush1.bf16.msra.mxu0 %v10280_v55  ;;  %7189 = vmatprep.subr.bf16.mxu1 %v10285_v56  ;;  %v10364_v55 = vld [vmem:[%s15529_s1 + $0x1560] ss:$8 sps:$4 sm:$0xff]   ;;  %v10369_v56 = vld [vmem:[%s15529_s1 + $0x374] ss:$8 sps:$4 sm:$0xff]  }
  0xa5   :  { %7927 = vmatprep.subr.bf16.mxu0 %v10288_v57  ;;  %v10372_v57 = vld [vmem:[%s15529_s1 + $0x1574] ss:$8 sps:$4 sm:$0xff]  }
  0xa7   :  { %7190 = vmatpush1.bf16.msra.mxu1 %v10283_v58  ;;  %v10367_v58 = vld [vmem:[%s15529_s1 + $0x370] ss:$8 sps:$4 sm:$0xff]  }
  0xa8   :  { %7928 = vmatpush1.bf16.msra.mxu0 %v10286_v59  ;;  %7191 = vmatprep.subr.bf16.mxu1 %v10291_v60  ;;  %v10370_v59 = vld [vmem:[%s15529_s1 + $0x1570] ss:$8 sps:$4 sm:$0xff]   ;;  %v10375_v60 = vld [vmem:[%s15529_s1 + $0x384] ss:$8 sps:$4 sm:$0xff]  }
  0xa9   :  { %7929 = vmatprep.subr.bf16.mxu0 %v10294_v61  ;;  %v10378_v61 = vld [vmem:[%s15529_s1 + $0x1584] ss:$8 sps:$4 sm:$0xff]  }
  0xab   :  { %7192 = vmatpush1.bf16.msra.mxu1 %v10289_v62  ;;  %v10373_v62 = vld [vmem:[%s15529_s1 + $0x380] ss:$8 sps:$4 sm:$0xff]  }
  0xac   :  { %7930 = vmatpush1.bf16.msra.mxu0 %v10292_v63  ;;  %7193 = vmatprep.subr.bf16.mxu1 %v10297_v0  ;;  %v10376_v63 = vld [vmem:[%s15529_s1 + $0x1580] ss:$8 sps:$4 sm:$0xff]   ;;  %v10381_v0 = vld [vmem:[%s15529_s1 + $0x394] ss:$8 sps:$4 sm:$0xff]  }
  0xad   :  { %7931 = vmatprep.subr.bf16.mxu0 %v10300_v1  ;;  %v10384_v1 = vld [vmem:[%s15529_s1 + $0x1594] ss:$8 sps:$4 sm:$0xff]  }
  0xaf   :  { %7194 = vmatpush1.bf16.msra.mxu1 %v10295_v2  ;;  %v10379_v2 = vld [vmem:[%s15529_s1 + $0x390] ss:$8 sps:$4 sm:$0xff]  }
  0xb0   :  { %7932 = vmatpush1.bf16.msra.mxu0 %v10298_v3  ;;  %7195 = vmatprep.subr.bf16.mxu1 %v10303_v4  ;;  %v10382_v3 = vld [vmem:[%s15529_s1 + $0x1590] ss:$8 sps:$4 sm:$0xff]   ;;  %v10387_v4 = vld [vmem:[%s15529_s1 + $0x3a4] ss:$8 sps:$4 sm:$0xff]  }
  0xb1   :  { %7933 = vmatprep.subr.bf16.mxu0 %v10306_v5  ;;  %v10390_v5 = vld [vmem:[%s15529_s1 + $0x15a4] ss:$8 sps:$4 sm:$0xff]  }
  0xb3   :  { %7196 = vmatpush1.bf16.msra.mxu1 %v10301_v6  ;;  %v10385_v6 = vld [vmem:[%s15529_s1 + $0x3a0] ss:$8 sps:$4 sm:$0xff]  }
  0xb4   :  { %7934 = vmatpush1.bf16.msra.mxu0 %v10304_v7  ;;  %7197 = vmatprep.subr.bf16.mxu1 %v10309_v8  ;;  %v10388_v7 = vld [vmem:[%s15529_s1 + $0x15a0] ss:$8 sps:$4 sm:$0xff]   ;;  %v10393_v8 = vld [vmem:[%s15529_s1 + $0x3b4] ss:$8 sps:$4 sm:$0xff]  }
  0xb5   :  { %7935 = vmatprep.subr.bf16.mxu0 %v10312_v9  ;;  %v10396_v9 = vld [vmem:[%s15529_s1 + $0x15b4] ss:$8 sps:$4 sm:$0xff]  }
  0xb7   :  { %7198 = vmatpush1.bf16.msra.mxu1 %v10307_v10  ;;  %v10391_v10 = vld [vmem:[%s15529_s1 + $0x3b0] ss:$8 sps:$4 sm:$0xff]  }
  0xb8   :  { %7936 = vmatpush1.bf16.msra.mxu0 %v10310_v11  ;;  %7199 = vmatprep.subr.bf16.mxu1 %v10315_v12  ;;  %v10394_v11 = vld [vmem:[%s15529_s1 + $0x15b0] ss:$8 sps:$4 sm:$0xff]   ;;  %v10399_v12 = vld [vmem:[%s15529_s1 + $0x3c4] ss:$8 sps:$4 sm:$0xff]  }
  0xb9   :  { %7937 = vmatprep.subr.bf16.mxu0 %v10318_v13  ;;  %v10402_v13 = vld [vmem:[%s15529_s1 + $0x15c4] ss:$8 sps:$4 sm:$0xff]  }
  0xbb   :  { %7200 = vmatpush1.bf16.msra.mxu1 %v10313_v14  ;;  %v10397_v14 = vld [vmem:[%s15529_s1 + $0x3c0] ss:$8 sps:$4 sm:$0xff]  }
  0xbc   :  { %7938 = vmatpush1.bf16.msra.mxu0 %v10316_v15  ;;  %7201 = vmatprep.subr.bf16.mxu1 %v10321_v16  ;;  %v10400_v15 = vld [vmem:[%s15529_s1 + $0x15c0] ss:$8 sps:$4 sm:$0xff]   ;;  %v10405_v16 = vld [vmem:[%s15529_s1 + $0x3d4] ss:$8 sps:$4 sm:$0xff]  }
  0xbd   :  { %7939 = vmatprep.subr.bf16.mxu0 %v10324_v17  ;;  %v10408_v17 = vld [vmem:[%s15529_s1 + $0x15d4] ss:$8 sps:$4 sm:$0xff]  }
  0xbf   :  { %7202 = vmatpush1.bf16.msra.mxu1 %v10319_v18  ;;  %v10403_v18 = vld [vmem:[%s15529_s1 + $0x3d0] ss:$8 sps:$4 sm:$0xff]  }
  0xc0   :  { %7940 = vmatpush1.bf16.msra.mxu0 %v10322_v19  ;;  %7212 = vmatprep.subr.bf16.mxu1 %v10327_v20  ;;  %v10406_v19 = vld [vmem:[%s15529_s1 + $0x15d0] ss:$8 sps:$4 sm:$0xff]   ;;  %v10411_v20 = vld [vmem:[%s15529_s1 + $0x3e4] ss:$8 sps:$4 sm:$0xff]  }
  0xc1   :  { %7950 = vmatprep.subr.bf16.mxu0 %v10330_v23  ;;  %v10412_v23 = vld [vmem:[%s15529_s1 + $0x15e0] ss:$8 sps:$4 sm:$0xff]  }
  0xc2   :  { %7204 = vmatmul.mubr.bf16.vlgmr.msra.gmra.mrb[0].mxu1 %v97_v26  ;;  %v10415_v26 = vld [vmem:[%s15529_s1 + $0x3f0] ss:$8 sps:$4 sm:$0xff]  }
  0xc3   :  { %7942 = vmatmul.mubr.bf16.vlgmr.msra.gmra.mrb[0].mxu0 %v133_v27  ;;  %7213 = vmatpush1.bf16.msra.mxu1 %v10325_v24  ;;  %v10417_v24 = vld [vmem:[%s15529_s1 + $0x3f4] ss:$8 sps:$4 sm:$0xff]   ;;  %v10418_v27 = vld [vmem:[%s15529_s1 + $0x15f0] ss:$8 sps:$4 sm:$0xff]  }
  0xc4   :  { %7951 = vmatpush1.bf16.msra.mxu0 %v10328_v25  ;;  %7214 = vmatprep.subr.bf16.mxu1 %v10333_v30  ;;  %v10420_v25 = vld [vmem:[%s15529_s1 + $0x15f4] ss:$8 sps:$4 sm:$0xff]  }
  0xc5   :  { %7952 = vmatprep.subr.bf16.mxu0 %v10336_v31  ;;  %7244 = vmatprep.mubr.bf16.mxu1 %v100_v32  ;;  %v63_v30 = vld [vmem:[%s15530_s0 + $0x150] sm:$0xff]  ;;  %v10426_v31 = vld [vmem:[%s15529_s1 + $0x1604] ss:$8 sps:$4 sm:$0xff]   ;;  %v10421_v32 = vld [vmem:[%s15529_s1 + $0x400] ss:$8 sps:$4 sm:$0xff]  }
  0xc6   :  { %7982 = vmatprep.mubr.bf16.mxu0 %v136_v33  ;;  %v10424_v33 = vld [vmem:[%s15529_s1 + $0x1600] ss:$8 sps:$4 sm:$0xff]  }
  0xc7   :  { %7215 = vmatpush1.bf16.msra.mxu1 %v10331_v34  ;;  %v99_v34 = vpack.c.bf16 %v27_v29, %v27_v29  ;;  %v10510_v29 = vld [vmem:[%s15529_s1 + $0x16e4] ss:$8 sps:$4 sm:$0xff]  }
  0xc8   :  { %7953 = vmatpush1.bf16.msra.mxu0 %v10334_v35  ;;  %7216 = vmatprep.subr.bf16.mxu1 %v10339_v36  ;;  %v135_v35 = vpack.c.bf16 %v63_v30, %v63_v30  ;;  %v30_v36 = vld [vmem:[%s15530_s0 + $0x48] sm:$0xff] }
  0xc9   :  { %7954 = vmatprep.subr.bf16.mxu0 %v10342_v37  ;;  %v66_v37 = vld [vmem:[%s15530_s0 + $0x168] sm:$0xff] }
  0xca   :  { %v10505_v30 = vld [vmem:[%s15529_s1 + $0x4e0] ss:$8 sps:$4 sm:$0xff]  }
  0xcb   :  { %7217 = vmatpush1.bf16.msra.mxu1 %v10337_v38  ;;  %v10429_v38 = vld [vmem:[%s15529_s1 + $0x414] ss:$8 sps:$4 sm:$0xff]  }
  0xcc   :  { %7955 = vmatpush1.bf16.msra.mxu0 %v10340_v39  ;;  %7218 = vmatprep.subr.bf16.mxu1 %v10345_v40  ;;  %v10432_v39 = vld [vmem:[%s15529_s1 + $0x1614] ss:$8 sps:$4 sm:$0xff]   ;;  %v102_v40 = vpack.c.bf16 %v30_v36, %v30_v36  ;;  %v10519_v36 = vld [vmem:[%s15529_s1 + $0x504] ss:$8 sps:$4 sm:$0xff]  }
  0xcd   :  { %7956 = vmatprep.subr.bf16.mxu0 %v10348_v41  ;;  %v138_v41 = vpack.c.bf16 %v66_v37, %v66_v37  ;;  %v10522_v37 = vld [vmem:[%s15529_s1 + $0x1704] ss:$8 sps:$4 sm:$0xff]  }
  0xcf   :  { %7219 = vmatpush1.bf16.msra.mxu1 %v10343_v42  ;;  %v10427_v42 = vld [vmem:[%s15529_s1 + $0x410] ss:$8 sps:$4 sm:$0xff]  }
  0xd0   :  { %7957 = vmatpush1.bf16.msra.mxu0 %v10346_v43  ;;  %7220 = vmatprep.subr.bf16.mxu1 %v10351_v44  ;;  %v10430_v43 = vld [vmem:[%s15529_s1 + $0x1610] ss:$8 sps:$4 sm:$0xff]   ;;  %v10435_v44 = vld [vmem:[%s15529_s1 + $0x424] ss:$8 sps:$4 sm:$0xff]  }
  0xd1   :  { %7958 = vmatprep.subr.bf16.mxu0 %v10354_v45  ;;  %v10438_v45 = vld [vmem:[%s15529_s1 + $0x1624] ss:$8 sps:$4 sm:$0xff]  }
  0xd3   :  { %7221 = vmatpush1.bf16.msra.mxu1 %v10349_v46  ;;  %v10433_v46 = vld [vmem:[%s15529_s1 + $0x420] ss:$8 sps:$4 sm:$0xff]  }
  0xd4   :  { %7959 = vmatpush1.bf16.msra.mxu0 %v10352_v47  ;;  %7222 = vmatprep.subr.bf16.mxu1 %v10357_v48  ;;  %v10436_v47 = vld [vmem:[%s15529_s1 + $0x1620] ss:$8 sps:$4 sm:$0xff]   ;;  %v10441_v48 = vld [vmem:[%s15529_s1 + $0x434] ss:$8 sps:$4 sm:$0xff]  }
  0xd5   :  { %7960 = vmatprep.subr.bf16.mxu0 %v10360_v49  ;;  %v10444_v49 = vld [vmem:[%s15529_s1 + $0x1634] ss:$8 sps:$4 sm:$0xff]  }
  0xd7   :  { %7223 = vmatpush1.bf16.msra.mxu1 %v10355_v50  ;;  %v10439_v50 = vld [vmem:[%s15529_s1 + $0x430] ss:$8 sps:$4 sm:$0xff]  }
  0xd8   :  { %7961 = vmatpush1.bf16.msra.mxu0 %v10358_v51  ;;  %7224 = vmatprep.subr.bf16.mxu1 %v10363_v52  ;;  %v10442_v51 = vld [vmem:[%s15529_s1 + $0x1630] ss:$8 sps:$4 sm:$0xff]   ;;  %v10447_v52 = vld [vmem:[%s15529_s1 + $0x444] ss:$8 sps:$4 sm:$0xff]  }
  0xd9   :  { %7962 = vmatprep.subr.bf16.mxu0 %v10366_v53  ;;  %v10450_v53 = vld [vmem:[%s15529_s1 + $0x1644] ss:$8 sps:$4 sm:$0xff]  }
  0xdb   :  { %7225 = vmatpush1.bf16.msra.mxu1 %v10361_v54  ;;  %v10445_v54 = vld [vmem:[%s15529_s1 + $0x440] ss:$8 sps:$4 sm:$0xff]  }
  0xdc   :  { %7963 = vmatpush1.bf16.msra.mxu0 %v10364_v55  ;;  %7226 = vmatprep.subr.bf16.mxu1 %v10369_v56  ;;  %v10448_v55 = vld [vmem:[%s15529_s1 + $0x1640] ss:$8 sps:$4 sm:$0xff]   ;;  %v10453_v56 = vld [vmem:[%s15529_s1 + $0x454] ss:$8 sps:$4 sm:$0xff]  }
  0xdd   :  { %7964 = vmatprep.subr.bf16.mxu0 %v10372_v57  ;;  %v10456_v57 = vld [vmem:[%s15529_s1 + $0x1654] ss:$8 sps:$4 sm:$0xff]  }
  0xdf   :  { %7227 = vmatpush1.bf16.msra.mxu1 %v10367_v58  ;;  %v10451_v58 = vld [vmem:[%s15529_s1 + $0x450] ss:$8 sps:$4 sm:$0xff]  }
  0xe0   :  { %7965 = vmatpush1.bf16.msra.mxu0 %v10370_v59  ;;  %7228 = vmatprep.subr.bf16.mxu1 %v10375_v60  ;;  %v10454_v59 = vld [vmem:[%s15529_s1 + $0x1650] ss:$8 sps:$4 sm:$0xff]   ;;  %v10459_v60 = vld [vmem:[%s15529_s1 + $0x464] ss:$8 sps:$4 sm:$0xff]  }
  0xe1   :  { %7966 = vmatprep.subr.bf16.mxu0 %v10378_v61  ;;  %v10462_v61 = vld [vmem:[%s15529_s1 + $0x1664] ss:$8 sps:$4 sm:$0xff]  }
  0xe3   :  { %7229 = vmatpush1.bf16.msra.mxu1 %v10373_v62  ;;  %v10457_v62 = vld [vmem:[%s15529_s1 + $0x460] ss:$8 sps:$4 sm:$0xff]  }
  0xe4   :  { %7967 = vmatpush1.bf16.msra.mxu0 %v10376_v63  ;;  %7230 = vmatprep.subr.bf16.mxu1 %v10381_v0  ;;  %v10460_v63 = vld [vmem:[%s15529_s1 + $0x1660] ss:$8 sps:$4 sm:$0xff]   ;;  %v10465_v0 = vld [vmem:[%s15529_s1 + $0x474] ss:$8 sps:$4 sm:$0xff]  }
  0xe5   :  { %7968 = vmatprep.subr.bf16.mxu0 %v10384_v1  ;;  %v10468_v1 = vld [vmem:[%s15529_s1 + $0x1674] ss:$8 sps:$4 sm:$0xff]  }
  0xe7   :  { %7231 = vmatpush1.bf16.msra.mxu1 %v10379_v2  ;;  %v10463_v2 = vld [vmem:[%s15529_s1 + $0x470] ss:$8 sps:$4 sm:$0xff]  }
  0xe8   :  { %7969 = vmatpush1.bf16.msra.mxu0 %v10382_v3  ;;  %7232 = vmatprep.subr.bf16.mxu1 %v10387_v4  ;;  %v10466_v3 = vld [vmem:[%s15529_s1 + $0x1670] ss:$8 sps:$4 sm:$0xff]   ;;  %v10471_v4 = vld [vmem:[%s15529_s1 + $0x484] ss:$8 sps:$4 sm:$0xff]  }
  0xe9   :  { %7970 = vmatprep.subr.bf16.mxu0 %v10390_v5  ;;  %v10474_v5 = vld [vmem:[%s15529_s1 + $0x1684] ss:$8 sps:$4 sm:$0xff]  }
  0xeb   :  { %7233 = vmatpush1.bf16.msra.mxu1 %v10385_v6  ;;  %v10469_v6 = vld [vmem:[%s15529_s1 + $0x480] ss:$8 sps:$4 sm:$0xff]  }
  0xec   :  { %7971 = vmatpush1.bf16.msra.mxu0 %v10388_v7  ;;  %7234 = vmatprep.subr.bf16.mxu1 %v10393_v8  ;;  %v10472_v7 = vld [vmem:[%s15529_s1 + $0x1680] ss:$8 sps:$4 sm:$0xff]   ;;  %v10477_v8 = vld [vmem:[%s15529_s1 + $0x494] ss:$8 sps:$4 sm:$0xff]  }
  0xed   :  { %7972 = vmatprep.subr.bf16.mxu0 %v10396_v9  ;;  %v10480_v9 = vld [vmem:[%s15529_s1 + $0x1694] ss:$8 sps:$4 sm:$0xff]  }
  0xef   :  { %7235 = vmatpush1.bf16.msra.mxu1 %v10391_v10  ;;  %v10475_v10 = vld [vmem:[%s15529_s1 + $0x490] ss:$8 sps:$4 sm:$0xff]  }
  0xf0   :  { %7973 = vmatpush1.bf16.msra.mxu0 %v10394_v11  ;;  %7236 = vmatprep.subr.bf16.mxu1 %v10399_v12  ;;  %v10478_v11 = vld [vmem:[%s15529_s1 + $0x1690] ss:$8 sps:$4 sm:$0xff]   ;;  %v10483_v12 = vld [vmem:[%s15529_s1 + $0x4a4] ss:$8 sps:$4 sm:$0xff]  }
  0xf1   :  { %7974 = vmatprep.subr.bf16.mxu0 %v10402_v13  ;;  %v10486_v13 = vld [vmem:[%s15529_s1 + $0x16a4] ss:$8 sps:$4 sm:$0xff]  }
  0xf3   :  { %7237 = vmatpush1.bf16.msra.mxu1 %v10397_v14  ;;  %v10481_v14 = vld [vmem:[%s15529_s1 + $0x4a0] ss:$8 sps:$4 sm:$0xff]  }
  0xf4   :  { %7975 = vmatpush1.bf16.msra.mxu0 %v10400_v15  ;;  %7238 = vmatprep.subr.bf16.mxu1 %v10405_v16  ;;  %v10484_v15 = vld [vmem:[%s15529_s1 + $0x16a0] ss:$8 sps:$4 sm:$0xff]   ;;  %v10489_v16 = vld [vmem:[%s15529_s1 + $0x4b4] ss:$8 sps:$4 sm:$0xff]  }
  0xf5   :  { %7976 = vmatprep.subr.bf16.mxu0 %v10408_v17  ;;  %v10492_v17 = vld [vmem:[%s15529_s1 + $0x16b4] ss:$8 sps:$4 sm:$0xff]  }
  0xf7   :  { %7239 = vmatpush1.bf16.msra.mxu1 %v10403_v18  ;;  %v10487_v18 = vld [vmem:[%s15529_s1 + $0x4b0] ss:$8 sps:$4 sm:$0xff]  }
  0xf8   :  { %7977 = vmatpush1.bf16.msra.mxu0 %v10406_v19  ;;  %7240 = vmatprep.subr.bf16.mxu1 %v10411_v20  ;;  %v10490_v19 = vld [vmem:[%s15529_s1 + $0x16b0] ss:$8 sps:$4 sm:$0xff]   ;;  %v10495_v20 = vld [vmem:[%s15529_s1 + $0x4c4] ss:$8 sps:$4 sm:$0xff]  }
  0xf9   :  { %7978 = vmatprep.subr.bf16.mxu0 %v10414_v21  ;;  %v10498_v21 = vld [vmem:[%s15529_s1 + $0x16c4] ss:$8 sps:$4 sm:$0xff]  }
  0xfb   :  { %7241 = vmatpush1.bf16.msra.mxu1 %v10409_v22  ;;  %v10493_v22 = vld [vmem:[%s15529_s1 + $0x4c0] ss:$8 sps:$4 sm:$0xff]  }
  0xfc   :  { %7979 = vmatpush1.bf16.msra.mxu0 %v10412_v23  ;;  %7242 = vmatprep.subr.bf16.mxu1 %v10417_v24  ;;  %v10496_v23 = vld [vmem:[%s15529_s1 + $0x16c0] ss:$8 sps:$4 sm:$0xff]   ;;  %v10501_v24 = vld [vmem:[%s15529_s1 + $0x4d4] ss:$8 sps:$4 sm:$0xff]  }
  0xfd   :  { %7980 = vmatprep.subr.bf16.mxu0 %v10420_v25  ;;  %v10504_v25 = vld [vmem:[%s15529_s1 + $0x16d4] ss:$8 sps:$4 sm:$0xff]  }
  0xff   :  { %7243 = vmatpush1.bf16.msra.mxu1 %v10415_v26  ;;  %v10499_v26 = vld [vmem:[%s15529_s1 + $0x4d0] ss:$8 sps:$4 sm:$0xff]  }
 0x100   :  { %7981 = vmatpush1.bf16.msra.mxu0 %v10418_v27  ;;  %7253 = vmatprep.subr.bf16.mxu1 %v10423_v28  ;;  %v10502_v27 = vld [vmem:[%s15529_s1 + $0x16d0] ss:$8 sps:$4 sm:$0xff]   ;;  %v10507_v28 = vld [vmem:[%s15529_s1 + $0x4e4] ss:$8 sps:$4 sm:$0xff]  }
 0x101   :  { %7991 = vmatprep.subr.bf16.mxu0 %v10426_v31  ;;  %v10508_v31 = vld [vmem:[%s15529_s1 + $0x16e0] ss:$8 sps:$4 sm:$0xff]  }
 0x102   :  { %7245 = vmatmul.mubr.bf16.vlgmr.msra.gmra.mrb[0].mxu1 %v99_v34  ;;  %v10511_v34 = vld [vmem:[%s15529_s1 + $0x4f0] ss:$8 sps:$4 sm:$0xff]  }
 0x103   :  { %7983 = vmatmul.mubr.bf16.vlgmr.msra.gmra.mrb[0].mxu0 %v135_v35  ;;  %7254 = vmatpush1.bf16.msra.mxu1 %v10421_v32  ;;  %v10513_v32 = vld [vmem:[%s15529_s1 + $0x4f4] ss:$8 sps:$4 sm:$0xff]   ;;  %v10514_v35 = vld [vmem:[%s15529_s1 + $0x16f0] ss:$8 sps:$4 sm:$0xff]  }
 0x104   :  { %7992 = vmatpush1.bf16.msra.mxu0 %v10424_v33  ;;  %7255 = vmatprep.subr.bf16.mxu1 %v10429_v38  ;;  %v10516_v33 = vld [vmem:[%s15529_s1 + $0x16f4] ss:$8 sps:$4 sm:$0xff]   ;;  %v29_v38 = vld [vmem:[%s15530_s0 + $0x40] sm:$0xff] }
 0x105   :  { %7993 = vmatprep.subr.bf16.mxu0 %v10432_v39  ;;  %7285 = vmatprep.mubr.bf16.mxu1 %v102_v40  ;;  %v65_v39 = vld [vmem:[%s15530_s0 + $0x160] sm:$0xff]  ;;  %v32_v40 = vld [vmem:[%s15530_s0 + $0x58] sm:$0xff] }
 0x106   :  { %8023 = vmatprep.mubr.bf16.mxu0 %v138_v41  ;;  %v68_v41 = vld [vmem:[%s15530_s0 + $0x178] sm:$0xff] }
 0x107   :  { %7256 = vmatpush1.bf16.msra.mxu1 %v10427_v42  ;;  %v101_v42 = vpack.c.bf16 %v29_v38, %v29_v38  ;;  %v10601_v38 = vld [vmem:[%s15529_s1 + $0x5e0] ss:$8 sps:$4 sm:$0xff]  }
 0x108   :  { %7994 = vmatpush1.bf16.msra.mxu0 %v10430_v43  ;;  %7257 = vmatprep.subr.bf16.mxu1 %v10435_v44  ;;  %v137_v43 = vpack.c.bf16 %v65_v39, %v65_v39  ;;  %v10517_v44 = vld [vmem:[%s15529_s1 + $0x500] ss:$8 sps:$4 sm:$0xff]  }
 0x109   :  { %7995 = vmatprep.subr.bf16.mxu0 %v10438_v45  ;;  %v10520_v45 = vld [vmem:[%s15529_s1 + $0x1700] ss:$8 sps:$4 sm:$0xff]  }
 0x10a   :  { %v10604_v39 = vld [vmem:[%s15529_s1 + $0x17e0] ss:$8 sps:$4 sm:$0xff]  }
 0x10b   :  { %7258 = vmatpush1.bf16.msra.mxu1 %v10433_v46  ;;  %v10525_v46 = vld [vmem:[%s15529_s1 + $0x514] ss:$8 sps:$4 sm:$0xff]  }
 0x10c   :  { %7996 = vmatpush1.bf16.msra.mxu0 %v10436_v47  ;;  %7259 = vmatprep.subr.bf16.mxu1 %v10441_v48  ;;  %v10528_v47 = vld [vmem:[%s15529_s1 + $0x1714] ss:$8 sps:$4 sm:$0xff]   ;;  %v104_v48 = vpack.c.bf16 %v32_v40, %v32_v40 }
 0x10d   :  { %7997 = vmatprep.subr.bf16.mxu0 %v10444_v49  ;;  %v140_v49 = vpack.c.bf16 %v68_v41, %v68_v41  ;;  %v10609_v40 = vld [vmem:[%s15529_s1 + $0x5f4] ss:$8 sps:$4 sm:$0xff]  }
 0x10e   :  { %v10612_v41 = vld [vmem:[%s15529_s1 + $0x17f4] ss:$8 sps:$4 sm:$0xff]  }
 0x10f   :  { %7260 = vmatpush1.bf16.msra.mxu1 %v10439_v50  ;;  %v10523_v50 = vld [vmem:[%s15529_s1 + $0x510] ss:$8 sps:$4 sm:$0xff]  }
 0x110   :  { %7998 = vmatpush1.bf16.msra.mxu0 %v10442_v51  ;;  %7261 = vmatprep.subr.bf16.mxu1 %v10447_v52  ;;  %v10526_v51 = vld [vmem:[%s15529_s1 + $0x1710] ss:$8 sps:$4 sm:$0xff]   ;;  %v10531_v52 = vld [vmem:[%s15529_s1 + $0x524] ss:$8 sps:$4 sm:$0xff]  }
 0x111   :  { %7999 = vmatprep.subr.bf16.mxu0 %v10450_v53  ;;  %v10534_v53 = vld [vmem:[%s15529_s1 + $0x1724] ss:$8 sps:$4 sm:$0xff]  }
 0x113   :  { %7262 = vmatpush1.bf16.msra.mxu1 %v10445_v54  ;;  %v10529_v54 = vld [vmem:[%s15529_s1 + $0x520] ss:$8 sps:$4 sm:$0xff]  }
 0x114   :  { %8000 = vmatpush1.bf16.msra.mxu0 %v10448_v55  ;;  %7263 = vmatprep.subr.bf16.mxu1 %v10453_v56  ;;  %v10532_v55 = vld [vmem:[%s15529_s1 + $0x1720] ss:$8 sps:$4 sm:$0xff]   ;;  %v10537_v56 = vld [vmem:[%s15529_s1 + $0x534] ss:$8 sps:$4 sm:$0xff]  }
 0x115   :  { %8001 = vmatprep.subr.bf16.mxu0 %v10456_v57  ;;  %v10540_v57 = vld [vmem:[%s15529_s1 + $0x1734] ss:$8 sps:$4 sm:$0xff]  }
 0x117   :  { %7264 = vmatpush1.bf16.msra.mxu1 %v10451_v58  ;;  %v10535_v58 = vld [vmem:[%s15529_s1 + $0x530] ss:$8 sps:$4 sm:$0xff]  }
 0x118   :  { %8002 = vmatpush1.bf16.msra.mxu0 %v10454_v59  ;;  %7265 = vmatprep.subr.bf16.mxu1 %v10459_v60  ;;  %v10538_v59 = vld [vmem:[%s15529_s1 + $0x1730] ss:$8 sps:$4 sm:$0xff]   ;;  %v10543_v60 = vld [vmem:[%s15529_s1 + $0x544] ss:$8 sps:$4 sm:$0xff]  }
 0x119   :  { %8003 = vmatprep.subr.bf16.mxu0 %v10462_v61  ;;  %v10546_v61 = vld [vmem:[%s15529_s1 + $0x1744] ss:$8 sps:$4 sm:$0xff]  }
 0x11b   :  { %7266 = vmatpush1.bf16.msra.mxu1 %v10457_v62  ;;  %v10541_v62 = vld [vmem:[%s15529_s1 + $0x540] ss:$8 sps:$4 sm:$0xff]  }
 0x11c   :  { %8004 = vmatpush1.bf16.msra.mxu0 %v10460_v63  ;;  %7267 = vmatprep.subr.bf16.mxu1 %v10465_v0  ;;  %v10544_v63 = vld [vmem:[%s15529_s1 + $0x1740] ss:$8 sps:$4 sm:$0xff]   ;;  %v10549_v0 = vld [vmem:[%s15529_s1 + $0x554] ss:$8 sps:$4 sm:$0xff]  }
 0x11d   :  { %8005 = vmatprep.subr.bf16.mxu0 %v10468_v1  ;;  %v10552_v1 = vld [vmem:[%s15529_s1 + $0x1754] ss:$8 sps:$4 sm:$0xff]  }
 0x11f   :  { %7268 = vmatpush1.bf16.msra.mxu1 %v10463_v2  ;;  %v10547_v2 = vld [vmem:[%s15529_s1 + $0x550] ss:$8 sps:$4 sm:$0xff]  }
 0x120   :  { %8006 = vmatpush1.bf16.msra.mxu0 %v10466_v3  ;;  %7269 = vmatprep.subr.bf16.mxu1 %v10471_v4  ;;  %v10550_v3 = vld [vmem:[%s15529_s1 + $0x1750] ss:$8 sps:$4 sm:$0xff]   ;;  %v10555_v4 = vld [vmem:[%s15529_s1 + $0x564] ss:$8 sps:$4 sm:$0xff]  }
 0x121   :  { %8007 = vmatprep.subr.bf16.mxu0 %v10474_v5  ;;  %v10558_v5 = vld [vmem:[%s15529_s1 + $0x1764] ss:$8 sps:$4 sm:$0xff]  }
 0x123   :  { %7270 = vmatpush1.bf16.msra.mxu1 %v10469_v6  ;;  %v10553_v6 = vld [vmem:[%s15529_s1 + $0x560] ss:$8 sps:$4 sm:$0xff]  }
 0x124   :  { %8008 = vmatpush1.bf16.msra.mxu0 %v10472_v7  ;;  %7271 = vmatprep.subr.bf16.mxu1 %v10477_v8  ;;  %v10556_v7 = vld [vmem:[%s15529_s1 + $0x1760] ss:$8 sps:$4 sm:$0xff]   ;;  %v10561_v8 = vld [vmem:[%s15529_s1 + $0x574] ss:$8 sps:$4 sm:$0xff]  }
 0x125   :  { %8009 = vmatprep.subr.bf16.mxu0 %v10480_v9  ;;  %v10564_v9 = vld [vmem:[%s15529_s1 + $0x1774] ss:$8 sps:$4 sm:$0xff]  }
 0x127   :  { %7272 = vmatpush1.bf16.msra.mxu1 %v10475_v10  ;;  %v10559_v10 = vld [vmem:[%s15529_s1 + $0x570] ss:$8 sps:$4 sm:$0xff]  }
 0x128   :  { %8010 = vmatpush1.bf16.msra.mxu0 %v10478_v11  ;;  %7273 = vmatprep.subr.bf16.mxu1 %v10483_v12  ;;  %v10562_v11 = vld [vmem:[%s15529_s1 + $0x1770] ss:$8 sps:$4 sm:$0xff]   ;;  %v10567_v12 = vld [vmem:[%s15529_s1 + $0x584] ss:$8 sps:$4 sm:$0xff]  }
 0x129   :  { %8011 = vmatprep.subr.bf16.mxu0 %v10486_v13  ;;  %v10570_v13 = vld [vmem:[%s15529_s1 + $0x1784] ss:$8 sps:$4 sm:$0xff]  }
 0x12b   :  { %7274 = vmatpush1.bf16.msra.mxu1 %v10481_v14  ;;  %v10565_v14 = vld [vmem:[%s15529_s1 + $0x580] ss:$8 sps:$4 sm:$0xff]  }
 0x12c   :  { %8012 = vmatpush1.bf16.msra.mxu0 %v10484_v15  ;;  %7275 = vmatprep.subr.bf16.mxu1 %v10489_v16  ;;  %v10568_v15 = vld [vmem:[%s15529_s1 + $0x1780] ss:$8 sps:$4 sm:$0xff]   ;;  %v10573_v16 = vld [vmem:[%s15529_s1 + $0x594] ss:$8 sps:$4 sm:$0xff]  }
 0x12d   :  { %8013 = vmatprep.subr.bf16.mxu0 %v10492_v17  ;;  %v10576_v17 = vld [vmem:[%s15529_s1 + $0x1794] ss:$8 sps:$4 sm:$0xff]  }
 0x12f   :  { %7276 = vmatpush1.bf16.msra.mxu1 %v10487_v18  ;;  %v10571_v18 = vld [vmem:[%s15529_s1 + $0x590] ss:$8 sps:$4 sm:$0xff]  }
 0x130   :  { %8014 = vmatpush1.bf16.msra.mxu0 %v10490_v19  ;;  %7277 = vmatprep.subr.bf16.mxu1 %v10495_v20  ;;  %v10574_v19 = vld [vmem:[%s15529_s1 + $0x1790] ss:$8 sps:$4 sm:$0xff]   ;;  %v10579_v20 = vld [vmem:[%s15529_s1 + $0x5a4] ss:$8 sps:$4 sm:$0xff]  }
 0x131   :  { %8015 = vmatprep.subr.bf16.mxu0 %v10498_v21  ;;  %v10582_v21 = vld [vmem:[%s15529_s1 + $0x17a4] ss:$8 sps:$4 sm:$0xff]  }
 0x133   :  { %7278 = vmatpush1.bf16.msra.mxu1 %v10493_v22  ;;  %v10577_v22 = vld [vmem:[%s15529_s1 + $0x5a0] ss:$8 sps:$4 sm:$0xff]  }
 0x134   :  { %8016 = vmatpush1.bf16.msra.mxu0 %v10496_v23  ;;  %7279 = vmatprep.subr.bf16.mxu1 %v10501_v24  ;;  %v10580_v23 = vld [vmem:[%s15529_s1 + $0x17a0] ss:$8 sps:$4 sm:$0xff]   ;;  %v10585_v24 = vld [vmem:[%s15529_s1 + $0x5b4] ss:$8 sps:$4 sm:$0xff]  }
 0x135   :  { %8017 = vmatprep.subr.bf16.mxu0 %v10504_v25  ;;  %v10588_v25 = vld [vmem:[%s15529_s1 + $0x17b4] ss:$8 sps:$4 sm:$0xff]  }
 0x137   :  { %7280 = vmatpush1.bf16.msra.mxu1 %v10499_v26  ;;  %v10583_v26 = vld [vmem:[%s15529_s1 + $0x5b0] ss:$8 sps:$4 sm:$0xff]  }
 0x138   :  { %8018 = vmatpush1.bf16.msra.mxu0 %v10502_v27  ;;  %7281 = vmatprep.subr.bf16.mxu1 %v10507_v28  ;;  %v10586_v27 = vld [vmem:[%s15529_s1 + $0x17b0] ss:$8 sps:$4 sm:$0xff]   ;;  %v10591_v28 = vld [vmem:[%s15529_s1 + $0x5c4] ss:$8 sps:$4 sm:$0xff]  }
 0x139   :  { %8019 = vmatprep.subr.bf16.mxu0 %v10510_v29  ;;  %v10594_v29 = vld [vmem:[%s15529_s1 + $0x17c4] ss:$8 sps:$4 sm:$0xff]  }
 0x13b   :  { %7282 = vmatpush1.bf16.msra.mxu1 %v10505_v30  ;;  %v10589_v30 = vld [vmem:[%s15529_s1 + $0x5c0] ss:$8 sps:$4 sm:$0xff]  }
 0x13c   :  { %8020 = vmatpush1.bf16.msra.mxu0 %v10508_v31  ;;  %7283 = vmatprep.subr.bf16.mxu1 %v10513_v32  ;;  %v10592_v31 = vld [vmem:[%s15529_s1 + $0x17c0] ss:$8 sps:$4 sm:$0xff]   ;;  %v10597_v32 = vld [vmem:[%s15529_s1 + $0x5d4] ss:$8 sps:$4 sm:$0xff]  }
 0x13d   :  { %8021 = vmatprep.subr.bf16.mxu0 %v10516_v33  ;;  %v10600_v33 = vld [vmem:[%s15529_s1 + $0x17d4] ss:$8 sps:$4 sm:$0xff]  }
 0x13f   :  { %7284 = vmatpush1.bf16.msra.mxu1 %v10511_v34  ;;  %v10595_v34 = vld [vmem:[%s15529_s1 + $0x5d0] ss:$8 sps:$4 sm:$0xff]  }
 0x140   :  { %8022 = vmatpush1.bf16.msra.mxu0 %v10514_v35  ;;  %7294 = vmatprep.subr.bf16.mxu1 %v10519_v36  ;;  %v10598_v35 = vld [vmem:[%s15529_s1 + $0x17d0] ss:$8 sps:$4 sm:$0xff]   ;;  %v10603_v36 = vld [vmem:[%s15529_s1 + $0x5e4] ss:$8 sps:$4 sm:$0xff]  }
 0x141   :  { %8032 = vmatprep.subr.bf16.mxu0 %v10522_v37  ;;  %v10606_v37 = vld [vmem:[%s15529_s1 + $0x17e4] ss:$8 sps:$4 sm:$0xff]  }
 0x142   :  { %7286 = vmatmul.mubr.bf16.vlgmr.msra.gmra.mrb[0].mxu1 %v101_v42  ;;  %v10607_v42 = vld [vmem:[%s15529_s1 + $0x5f0] ss:$8 sps:$4 sm:$0xff]  }
 0x143   :  { %8024 = vmatmul.mubr.bf16.vlgmr.msra.gmra.mrb[0].mxu0 %v137_v43  ;;  %7295 = vmatpush1.bf16.msra.mxu1 %v10517_v44  ;;  %v10610_v43 = vld [vmem:[%s15529_s1 + $0x17f0] ss:$8 sps:$4 sm:$0xff]   ;;  %v10615_v44 = vld [vmem:[%s15529_s1 + $0x604] ss:$8 sps:$4 sm:$0xff]  }
 0x144   :  { %8033 = vmatpush1.bf16.msra.mxu0 %v10520_v45  ;;  %7296 = vmatprep.subr.bf16.mxu1 %v10525_v46  ;;  %v10618_v45 = vld [vmem:[%s15529_s1 + $0x1804] ss:$8 sps:$4 sm:$0xff]   ;;  %v31_v46 = vld [vmem:[%s15530_s0 + $0x50] sm:$0xff] }
 0x145   :  { %8034 = vmatprep.subr.bf16.mxu0 %v10528_v47  ;;  %7326 = vmatprep.mubr.bf16.mxu1 %v104_v48  ;;  %v67_v47 = vld [vmem:[%s15530_s0 + $0x170] sm:$0xff]  ;;  %v34_v48 = vld [vmem:[%s15530_s0 + $0x68] sm:$0xff] }
 0x146   :  { %8064 = vmatprep.mubr.bf16.mxu0 %v140_v49  ;;  %v70_v49 = vld [vmem:[%s15530_s0 + $0x188] sm:$0xff] }
 0x147   :  { %7297 = vmatpush1.bf16.msra.mxu1 %v10523_v50  ;;  %v103_v50 = vpack.c.bf16 %v31_v46, %v31_v46  ;;  %v10697_v46 = vld [vmem:[%s15529_s1 + $0x6e0] ss:$8 sps:$4 sm:$0xff]  }
 0x148   :  { %8035 = vmatpush1.bf16.msra.mxu0 %v10526_v51  ;;  %7298 = vmatprep.subr.bf16.mxu1 %v10531_v52  ;;  %v139_v51 = vpack.c.bf16 %v67_v47, %v67_v47  ;;  %v10613_v52 = vld [vmem:[%s15529_s1 + $0x600] ss:$8 sps:$4 sm:$0xff]  }
 0x149   :  { %8036 = vmatprep.subr.bf16.mxu0 %v10534_v53  ;;  %v10616_v53 = vld [vmem:[%s15529_s1 + $0x1800] ss:$8 sps:$4 sm:$0xff]  }
 0x14a   :  { %v10700_v47 = vld [vmem:[%s15529_s1 + $0x18e0] ss:$8 sps:$4 sm:$0xff]  }
 0x14b   :  { %7299 = vmatpush1.bf16.msra.mxu1 %v10529_v54  ;;  %v10621_v54 = vld [vmem:[%s15529_s1 + $0x614] ss:$8 sps:$4 sm:$0xff]  }
 0x14c   :  { %8037 = vmatpush1.bf16.msra.mxu0 %v10532_v55  ;;  %7300 = vmatprep.subr.bf16.mxu1 %v10537_v56  ;;  %v10624_v55 = vld [vmem:[%s15529_s1 + $0x1814] ss:$8 sps:$4 sm:$0xff]   ;;  %v106_v56 = vpack.c.bf16 %v34_v48, %v34_v48 }
 0x14d   :  { %8038 = vmatprep.subr.bf16.mxu0 %v10540_v57  ;;  %v142_v57 = vpack.c.bf16 %v70_v49, %v70_v49  ;;  %v10705_v48 = vld [vmem:[%s15529_s1 + $0x6f4] ss:$8 sps:$4 sm:$0xff]  }
 0x14e   :  { %v10708_v49 = vld [vmem:[%s15529_s1 + $0x18f4] ss:$8 sps:$4 sm:$0xff]  }
 0x14f   :  { %7301 = vmatpush1.bf16.msra.mxu1 %v10535_v58  ;;  %v10619_v58 = vld [vmem:[%s15529_s1 + $0x610] ss:$8 sps:$4 sm:$0xff]  }
 0x150   :  { %8039 = vmatpush1.bf16.msra.mxu0 %v10538_v59  ;;  %7302 = vmatprep.subr.bf16.mxu1 %v10543_v60  ;;  %v10622_v59 = vld [vmem:[%s15529_s1 + $0x1810] ss:$8 sps:$4 sm:$0xff]   ;;  %v10627_v60 = vld [vmem:[%s15529_s1 + $0x624] ss:$8 sps:$4 sm:$0xff]  }
 0x151   :  { %8040 = vmatprep.subr.bf16.mxu0 %v10546_v61  ;;  %v10630_v61 = vld [vmem:[%s15529_s1 + $0x1824] ss:$8 sps:$4 sm:$0xff]  }
 0x153   :  { %7303 = vmatpush1.bf16.msra.mxu1 %v10541_v62  ;;  %v10625_v62 = vld [vmem:[%s15529_s1 + $0x620] ss:$8 sps:$4 sm:$0xff]  }
 0x154   :  { %8041 = vmatpush1.bf16.msra.mxu0 %v10544_v63  ;;  %7304 = vmatprep.subr.bf16.mxu1 %v10549_v0  ;;  %v10628_v63 = vld [vmem:[%s15529_s1 + $0x1820] ss:$8 sps:$4 sm:$0xff]   ;;  %v10633_v0 = vld [vmem:[%s15529_s1 + $0x634] ss:$8 sps:$4 sm:$0xff]  }
 0x155   :  { %8042 = vmatprep.subr.bf16.mxu0 %v10552_v1  ;;  %v10636_v1 = vld [vmem:[%s15529_s1 + $0x1834] ss:$8 sps:$4 sm:$0xff]  }
 0x157   :  { %7305 = vmatpush1.bf16.msra.mxu1 %v10547_v2  ;;  %v10631_v2 = vld [vmem:[%s15529_s1 + $0x630] ss:$8 sps:$4 sm:$0xff]  }
 0x158   :  { %8043 = vmatpush1.bf16.msra.mxu0 %v10550_v3  ;;  %7306 = vmatprep.subr.bf16.mxu1 %v10555_v4  ;;  %v10634_v3 = vld [vmem:[%s15529_s1 + $0x1830] ss:$8 sps:$4 sm:$0xff]   ;;  %v10639_v4 = vld [vmem:[%s15529_s1 + $0x644] ss:$8 sps:$4 sm:$0xff]  }
 0x159   :  { %8044 = vmatprep.subr.bf16.mxu0 %v10558_v5  ;;  %v10642_v5 = vld [vmem:[%s15529_s1 + $0x1844] ss:$8 sps:$4 sm:$0xff]  }
 0x15b   :  { %7307 = vmatpush1.bf16.msra.mxu1 %v10553_v6  ;;  %v10637_v6 = vld [vmem:[%s15529_s1 + $0x640] ss:$8 sps:$4 sm:$0xff]  }
 0x15c   :  { %8045 = vmatpush1.bf16.msra.mxu0 %v10556_v7  ;;  %7308 = vmatprep.subr.bf16.mxu1 %v10561_v8  ;;  %v10640_v7 = vld [vmem:[%s15529_s1 + $0x1840] ss:$8 sps:$4 sm:$0xff]   ;;  %v10645_v8 = vld [vmem:[%s15529_s1 + $0x654] ss:$8 sps:$4 sm:$0xff]  }
 0x15d   :  { %8046 = vmatprep.subr.bf16.mxu0 %v10564_v9  ;;  %v10648_v9 = vld [vmem:[%s15529_s1 + $0x1854] ss:$8 sps:$4 sm:$0xff]  }
 0x15f   :  { %7309 = vmatpush1.bf16.msra.mxu1 %v10559_v10  ;;  %v10643_v10 = vld [vmem:[%s15529_s1 + $0x650] ss:$8 sps:$4 sm:$0xff]  }
 0x160   :  { %8047 = vmatpush1.bf16.msra.mxu0 %v10562_v11  ;;  %7310 = vmatprep.subr.bf16.mxu1 %v10567_v12  ;;  %v10646_v11 = vld [vmem:[%s15529_s1 + $0x1850] ss:$8 sps:$4 sm:$0xff]   ;;  %v10651_v12 = vld [vmem:[%s15529_s1 + $0x664] ss:$8 sps:$4 sm:$0xff]  }
 0x161   :  { %8048 = vmatprep.subr.bf16.mxu0 %v10570_v13  ;;  %v10654_v13 = vld [vmem:[%s15529_s1 + $0x1864] ss:$8 sps:$4 sm:$0xff]  }
 0x163   :  { %7311 = vmatpush1.bf16.msra.mxu1 %v10565_v14  ;;  %v10649_v14 = vld [vmem:[%s15529_s1 + $0x660] ss:$8 sps:$4 sm:$0xff]  }
 0x164   :  { %8049 = vmatpush1.bf16.msra.mxu0 %v10568_v15  ;;  %7312 = vmatprep.subr.bf16.mxu1 %v10573_v16  ;;  %v10652_v15 = vld [vmem:[%s15529_s1 + $0x1860] ss:$8 sps:$4 sm:$0xff]   ;;  %v10657_v16 = vld [vmem:[%s15529_s1 + $0x674] ss:$8 sps:$4 sm:$0xff]  }
 0x165   :  { %8050 = vmatprep.subr.bf16.mxu0 %v10576_v17  ;;  %v10660_v17 = vld [vmem:[%s15529_s1 + $0x1874] ss:$8 sps:$4 sm:$0xff]  }
 0x167   :  { %7313 = vmatpush1.bf16.msra.mxu1 %v10571_v18  ;;  %v10655_v18 = vld [vmem:[%s15529_s1 + $0x670] ss:$8 sps:$4 sm:$0xff]  }
 0x168   :  { %8051 = vmatpush1.bf16.msra.mxu0 %v10574_v19  ;;  %7314 = vmatprep.subr.bf16.mxu1 %v10579_v20  ;;  %v10658_v19 = vld [vmem:[%s15529_s1 + $0x1870] ss:$8 sps:$4 sm:$0xff]   ;;  %v10663_v20 = vld [vmem:[%s15529_s1 + $0x684] ss:$8 sps:$4 sm:$0xff]  }
 0x169   :  { %8052 = vmatprep.subr.bf16.mxu0 %v10582_v21  ;;  %v10666_v21 = vld [vmem:[%s15529_s1 + $0x1884] ss:$8 sps:$4 sm:$0xff]  }
 0x16b   :  { %7315 = vmatpush1.bf16.msra.mxu1 %v10577_v22  ;;  %v10661_v22 = vld [vmem:[%s15529_s1 + $0x680] ss:$8 sps:$4 sm:$0xff]  }
 0x16c   :  { %8053 = vmatpush1.bf16.msra.mxu0 %v10580_v23  ;;  %7316 = vmatprep.subr.bf16.mxu1 %v10585_v24  ;;  %v10664_v23 = vld [vmem:[%s15529_s1 + $0x1880] ss:$8 sps:$4 sm:$0xff]   ;;  %v10669_v24 = vld [vmem:[%s15529_s1 + $0x694] ss:$8 sps:$4 sm:$0xff]  }
 0x16d   :  { %8054 = vmatprep.subr.bf16.mxu0 %v10588_v25  ;;  %v10672_v25 = vld [vmem:[%s15529_s1 + $0x1894] ss:$8 sps:$4 sm:$0xff]  }
 0x16f   :  { %7317 = vmatpush1.bf16.msra.mxu1 %v10583_v26  ;;  %v10667_v26 = vld [vmem:[%s15529_s1 + $0x690] ss:$8 sps:$4 sm:$0xff]  }
 0x170   :  { %8055 = vmatpush1.bf16.msra.mxu0 %v10586_v27  ;;  %7318 = vmatprep.subr.bf16.mxu1 %v10591_v28  ;;  %v10670_v27 = vld [vmem:[%s15529_s1 + $0x1890] ss:$8 sps:$4 sm:$0xff]   ;;  %v10675_v28 = vld [vmem:[%s15529_s1 + $0x6a4] ss:$8 sps:$4 sm:$0xff]  }
 0x171   :  { %8056 = vmatprep.subr.bf16.mxu0 %v10594_v29  ;;  %v10678_v29 = vld [vmem:[%s15529_s1 + $0x18a4] ss:$8 sps:$4 sm:$0xff]  }
 0x173   :  { %7319 = vmatpush1.bf16.msra.mxu1 %v10589_v30  ;;  %v10673_v30 = vld [vmem:[%s15529_s1 + $0x6a0] ss:$8 sps:$4 sm:$0xff]  }
 0x174   :  { %8057 = vmatpush1.bf16.msra.mxu0 %v10592_v31  ;;  %7320 = vmatprep.subr.bf16.mxu1 %v10597_v32  ;;  %v10676_v31 = vld [vmem:[%s15529_s1 + $0x18a0] ss:$8 sps:$4 sm:$0xff]   ;;  %v10681_v32 = vld [vmem:[%s15529_s1 + $0x6b4] ss:$8 sps:$4 sm:$0xff]  }
 0x175   :  { %8058 = vmatprep.subr.bf16.mxu0 %v10600_v33  ;;  %v10684_v33 = vld [vmem:[%s15529_s1 + $0x18b4] ss:$8 sps:$4 sm:$0xff]  }
 0x177   :  { %7321 = vmatpush1.bf16.msra.mxu1 %v10595_v34  ;;  %v10679_v34 = vld [vmem:[%s15529_s1 + $0x6b0] ss:$8 sps:$4 sm:$0xff]  }
 0x178   :  { %8059 = vmatpush1.bf16.msra.mxu0 %v10598_v35  ;;  %7322 = vmatprep.subr.bf16.mxu1 %v10603_v36  ;;  %v10682_v35 = vld [vmem:[%s15529_s1 + $0x18b0] ss:$8 sps:$4 sm:$0xff]   ;;  %v10687_v36 = vld [vmem:[%s15529_s1 + $0x6c4] ss:$8 sps:$4 sm:$0xff]  }
 0x179   :  { %8060 = vmatprep.subr.bf16.mxu0 %v10606_v37  ;;  %v10690_v37 = vld [vmem:[%s15529_s1 + $0x18c4] ss:$8 sps:$4 sm:$0xff]  }
 0x17b   :  { %7323 = vmatpush1.bf16.msra.mxu1 %v10601_v38  ;;  %v10685_v38 = vld [vmem:[%s15529_s1 + $0x6c0] ss:$8 sps:$4 sm:$0xff]  }
 0x17c   :  { %8061 = vmatpush1.bf16.msra.mxu0 %v10604_v39  ;;  %7324 = vmatprep.subr.bf16.mxu1 %v10609_v40  ;;  %v10688_v39 = vld [vmem:[%s15529_s1 + $0x18c0] ss:$8 sps:$4 sm:$0xff]   ;;  %v10693_v40 = vld [vmem:[%s15529_s1 + $0x6d4] ss:$8 sps:$4 sm:$0xff]  }
 0x17d   :  { %8062 = vmatprep.subr.bf16.mxu0 %v10612_v41  ;;  %v10696_v41 = vld [vmem:[%s15529_s1 + $0x18d4] ss:$8 sps:$4 sm:$0xff]  }
 0x17f   :  { %7325 = vmatpush1.bf16.msra.mxu1 %v10607_v42  ;;  %v10691_v42 = vld [vmem:[%s15529_s1 + $0x6d0] ss:$8 sps:$4 sm:$0xff]  }
 0x180   :  { %8063 = vmatpush1.bf16.msra.mxu0 %v10610_v43  ;;  %7335 = vmatprep.subr.bf16.mxu1 %v10615_v44  ;;  %v10694_v43 = vld [vmem:[%s15529_s1 + $0x18d0] ss:$8 sps:$4 sm:$0xff]   ;;  %v10699_v44 = vld [vmem:[%s15529_s1 + $0x6e4] ss:$8 sps:$4 sm:$0xff]  }
 0x181   :  { %8073 = vmatprep.subr.bf16.mxu0 %v10618_v45  ;;  %v10702_v45 = vld [vmem:[%s15529_s1 + $0x18e4] ss:$8 sps:$4 sm:$0xff]  }
 0x182   :  { %7327 = vmatmul.mubr.bf16.vlgmr.msra.gmra.mrb[0].mxu1 %v103_v50  ;;  %v10703_v50 = vld [vmem:[%s15529_s1 + $0x6f0] ss:$8 sps:$4 sm:$0xff]  }
 0x183   :  { %8065 = vmatmul.mubr.bf16.vlgmr.msra.gmra.mrb[0].mxu0 %v139_v51  ;;  %7336 = vmatpush1.bf16.msra.mxu1 %v10613_v52  ;;  %v10706_v51 = vld [vmem:[%s15529_s1 + $0x18f0] ss:$8 sps:$4 sm:$0xff]   ;;  %v10711_v52 = vld [vmem:[%s15529_s1 + $0x704] ss:$8 sps:$4 sm:$0xff]  }
 0x184   :  { %8074 = vmatpush1.bf16.msra.mxu0 %v10616_v53  ;;  %7337 = vmatprep.subr.bf16.mxu1 %v10621_v54  ;;  %v10714_v53 = vld [vmem:[%s15529_s1 + $0x1904] ss:$8 sps:$4 sm:$0xff]  }
 0x185   :  { %8075 = vmatprep.subr.bf16.mxu0 %v10624_v55  ;;  %7367 = vmatprep.mubr.bf16.mxu1 %v106_v56  ;;  %v33_v54 = vld [vmem:[%s15530_s0 + $0x60] sm:$0xff]  ;;  %v36_v56 = vld [vmem:[%s15530_s0 + $0x78] sm:$0xff] }
 0x186   :  { %8105 = vmatprep.mubr.bf16.mxu0 %v142_v57  ;;  %v69_v55 = vld [vmem:[%s15530_s0 + $0x180] sm:$0xff]  ;;  %v72_v57 = vld [vmem:[%s15530_s0 + $0x198] sm:$0xff] }
 0x187   :  { %7338 = vmatpush1.bf16.msra.mxu1 %v10619_v58  ;;  %v105_v58 = vpack.c.bf16 %v33_v54, %v33_v54  ;;  %v10793_v54 = vld [vmem:[%s15529_s1 + $0x7e0] ss:$8 sps:$4 sm:$0xff]  }
 0x188   :  { %8076 = vmatpush1.bf16.msra.mxu0 %v10622_v59  ;;  %7339 = vmatprep.subr.bf16.mxu1 %v10627_v60  ;;  %v141_v59 = vpack.c.bf16 %v69_v55, %v69_v55  ;;  %v10709_v60 = vld [vmem:[%s15529_s1 + $0x700] ss:$8 sps:$4 sm:$0xff]  }
 0x189   :  { %8077 = vmatprep.subr.bf16.mxu0 %v10630_v61  ;;  %v10712_v61 = vld [vmem:[%s15529_s1 + $0x1900] ss:$8 sps:$4 sm:$0xff]  }
 0x18a   :  { %v10796_v55 = vld [vmem:[%s15529_s1 + $0x19e0] ss:$8 sps:$4 sm:$0xff]  }
 0x18b   :  { %7340 = vmatpush1.bf16.msra.mxu1 %v10625_v62  ;;  %v10717_v62 = vld [vmem:[%s15529_s1 + $0x714] ss:$8 sps:$4 sm:$0xff]  }
 0x18c   :  { %8078 = vmatpush1.bf16.msra.mxu0 %v10628_v63  ;;  %7341 = vmatprep.subr.bf16.mxu1 %v10633_v0  ;;  %v10720_v63 = vld [vmem:[%s15529_s1 + $0x1914] ss:$8 sps:$4 sm:$0xff]   ;;  %v108_v0 = vpack.c.bf16 %v36_v56, %v36_v56 }
 0x18d   :  { %8079 = vmatprep.subr.bf16.mxu0 %v10636_v1  ;;  %v144_v1 = vpack.c.bf16 %v72_v57, %v72_v57  ;;  %v10801_v56 = vld [vmem:[%s15529_s1 + $0x7f4] ss:$8 sps:$4 sm:$0xff]  }
 0x18e   :  { %v10804_v57 = vld [vmem:[%s15529_s1 + $0x19f4] ss:$8 sps:$4 sm:$0xff]  }
 0x18f   :  { %7342 = vmatpush1.bf16.msra.mxu1 %v10631_v2  ;;  %v10715_v2 = vld [vmem:[%s15529_s1 + $0x710] ss:$8 sps:$4 sm:$0xff]  }
 0x190   :  { %8080 = vmatpush1.bf16.msra.mxu0 %v10634_v3  ;;  %7343 = vmatprep.subr.bf16.mxu1 %v10639_v4  ;;  %v10718_v3 = vld [vmem:[%s15529_s1 + $0x1910] ss:$8 sps:$4 sm:$0xff]   ;;  %v10723_v4 = vld [vmem:[%s15529_s1 + $0x724] ss:$8 sps:$4 sm:$0xff]  }
 0x191   :  { %8081 = vmatprep.subr.bf16.mxu0 %v10642_v5  ;;  %v10726_v5 = vld [vmem:[%s15529_s1 + $0x1924] ss:$8 sps:$4 sm:$0xff]  }
 0x193   :  { %7344 = vmatpush1.bf16.msra.mxu1 %v10637_v6  ;;  %v10721_v6 = vld [vmem:[%s15529_s1 + $0x720] ss:$8 sps:$4 sm:$0xff]  }
 0x194   :  { %8082 = vmatpush1.bf16.msra.mxu0 %v10640_v7  ;;  %7345 = vmatprep.subr.bf16.mxu1 %v10645_v8  ;;  %v10724_v7 = vld [vmem:[%s15529_s1 + $0x1920] ss:$8 sps:$4 sm:$0xff]   ;;  %v10729_v8 = vld [vmem:[%s15529_s1 + $0x734] ss:$8 sps:$4 sm:$0xff]  }
 0x195   :  { %8083 = vmatprep.subr.bf16.mxu0 %v10648_v9  ;;  %v10732_v9 = vld [vmem:[%s15529_s1 + $0x1934] ss:$8 sps:$4 sm:$0xff]  }
 0x197   :  { %7346 = vmatpush1.bf16.msra.mxu1 %v10643_v10  ;;  %v10727_v10 = vld [vmem:[%s15529_s1 + $0x730] ss:$8 sps:$4 sm:$0xff]  }
 0x198   :  { %8084 = vmatpush1.bf16.msra.mxu0 %v10646_v11  ;;  %7347 = vmatprep.subr.bf16.mxu1 %v10651_v12  ;;  %v10730_v11 = vld [vmem:[%s15529_s1 + $0x1930] ss:$8 sps:$4 sm:$0xff]   ;;  %v10735_v12 = vld [vmem:[%s15529_s1 + $0x744] ss:$8 sps:$4 sm:$0xff]  }
 0x199   :  { %8085 = vmatprep.subr.bf16.mxu0 %v10654_v13  ;;  %v10738_v13 = vld [vmem:[%s15529_s1 + $0x1944] ss:$8 sps:$4 sm:$0xff]  }
 0x19b   :  { %7348 = vmatpush1.bf16.msra.mxu1 %v10649_v14  ;;  %v10733_v14 = vld [vmem:[%s15529_s1 + $0x740] ss:$8 sps:$4 sm:$0xff]  }
 0x19c   :  { %8086 = vmatpush1.bf16.msra.mxu0 %v10652_v15  ;;  %7349 = vmatprep.subr.bf16.mxu1 %v10657_v16  ;;  %v10736_v15 = vld [vmem:[%s15529_s1 + $0x1940] ss:$8 sps:$4 sm:$0xff]   ;;  %v10741_v16 = vld [vmem:[%s15529_s1 + $0x754] ss:$8 sps:$4 sm:$0xff]  }
 0x19d   :  { %8087 = vmatprep.subr.bf16.mxu0 %v10660_v17  ;;  %v10744_v17 = vld [vmem:[%s15529_s1 + $0x1954] ss:$8 sps:$4 sm:$0xff]  }
 0x19f   :  { %7350 = vmatpush1.bf16.msra.mxu1 %v10655_v18  ;;  %v10739_v18 = vld [vmem:[%s15529_s1 + $0x750] ss:$8 sps:$4 sm:$0xff]  }
 0x1a0   :  { %8088 = vmatpush1.bf16.msra.mxu0 %v10658_v19  ;;  %7351 = vmatprep.subr.bf16.mxu1 %v10663_v20  ;;  %v10742_v19 = vld [vmem:[%s15529_s1 + $0x1950] ss:$8 sps:$4 sm:$0xff]   ;;  %v10747_v20 = vld [vmem:[%s15529_s1 + $0x764] ss:$8 sps:$4 sm:$0xff]  }
 0x1a1   :  { %8089 = vmatprep.subr.bf16.mxu0 %v10666_v21  ;;  %v10750_v21 = vld [vmem:[%s15529_s1 + $0x1964] ss:$8 sps:$4 sm:$0xff]  }
 0x1a3   :  { %7352 = vmatpush1.bf16.msra.mxu1 %v10661_v22  ;;  %v10745_v22 = vld [vmem:[%s15529_s1 + $0x760] ss:$8 sps:$4 sm:$0xff]  }
 0x1a4   :  { %8090 = vmatpush1.bf16.msra.mxu0 %v10664_v23  ;;  %7353 = vmatprep.subr.bf16.mxu1 %v10669_v24  ;;  %v10748_v23 = vld [vmem:[%s15529_s1 + $0x1960] ss:$8 sps:$4 sm:$0xff]   ;;  %v10753_v24 = vld [vmem:[%s15529_s1 + $0x774] ss:$8 sps:$4 sm:$0xff]  }
 0x1a5   :  { %8091 = vmatprep.subr.bf16.mxu0 %v10672_v25  ;;  %v10756_v25 = vld [vmem:[%s15529_s1 + $0x1974] ss:$8 sps:$4 sm:$0xff]  }
 0x1a7   :  { %7354 = vmatpush1.bf16.msra.mxu1 %v10667_v26  ;;  %v10751_v26 = vld [vmem:[%s15529_s1 + $0x770] ss:$8 sps:$4 sm:$0xff]  }
 0x1a8   :  { %8092 = vmatpush1.bf16.msra.mxu0 %v10670_v27  ;;  %7355 = vmatprep.subr.bf16.mxu1 %v10675_v28  ;;  %v10754_v27 = vld [vmem:[%s15529_s1 + $0x1970] ss:$8 sps:$4 sm:$0xff]   ;;  %v10759_v28 = vld [vmem:[%s15529_s1 + $0x784] ss:$8 sps:$4 sm:$0xff]  }
 0x1a9   :  { %8093 = vmatprep.subr.bf16.mxu0 %v10678_v29  ;;  %v10762_v29 = vld [vmem:[%s15529_s1 + $0x1984] ss:$8 sps:$4 sm:$0xff]  }
 0x1ab   :  { %7356 = vmatpush1.bf16.msra.mxu1 %v10673_v30  ;;  %v10757_v30 = vld [vmem:[%s15529_s1 + $0x780] ss:$8 sps:$4 sm:$0xff]  }
 0x1ac   :  { %8094 = vmatpush1.bf16.msra.mxu0 %v10676_v31  ;;  %7357 = vmatprep.subr.bf16.mxu1 %v10681_v32  ;;  %v10760_v31 = vld [vmem:[%s15529_s1 + $0x1980] ss:$8 sps:$4 sm:$0xff]   ;;  %v10765_v32 = vld [vmem:[%s15529_s1 + $0x794] ss:$8 sps:$4 sm:$0xff]  }
 0x1ad   :  { %8095 = vmatprep.subr.bf16.mxu0 %v10684_v33  ;;  %v10768_v33 = vld [vmem:[%s15529_s1 + $0x1994] ss:$8 sps:$4 sm:$0xff]  }
 0x1af   :  { %7358 = vmatpush1.bf16.msra.mxu1 %v10679_v34  ;;  %v10763_v34 = vld [vmem:[%s15529_s1 + $0x790] ss:$8 sps:$4 sm:$0xff]  }
 0x1b0   :  { %8096 = vmatpush1.bf16.msra.mxu0 %v10682_v35  ;;  %7359 = vmatprep.subr.bf16.mxu1 %v10687_v36  ;;  %v10766_v35 = vld [vmem:[%s15529_s1 + $0x1990] ss:$8 sps:$4 sm:$0xff]   ;;  %v10771_v36 = vld [vmem:[%s15529_s1 + $0x7a4] ss:$8 sps:$4 sm:$0xff]  }
 0x1b1   :  { %8097 = vmatprep.subr.bf16.mxu0 %v10690_v37  ;;  %v10774_v37 = vld [vmem:[%s15529_s1 + $0x19a4] ss:$8 sps:$4 sm:$0xff]  }
 0x1b3   :  { %7360 = vmatpush1.bf16.msra.mxu1 %v10685_v38  ;;  %v10769_v38 = vld [vmem:[%s15529_s1 + $0x7a0] ss:$8 sps:$4 sm:$0xff]  }
 0x1b4   :  { %8098 = vmatpush1.bf16.msra.mxu0 %v10688_v39  ;;  %7361 = vmatprep.subr.bf16.mxu1 %v10693_v40  ;;  %v10772_v39 = vld [vmem:[%s15529_s1 + $0x19a0] ss:$8 sps:$4 sm:$0xff]   ;;  %v10777_v40 = vld [vmem:[%s15529_s1 + $0x7b4] ss:$8 sps:$4 sm:$0xff]  }
 0x1b5   :  { %8099 = vmatprep.subr.bf16.mxu0 %v10696_v41  ;;  %v10780_v41 = vld [vmem:[%s15529_s1 + $0x19b4] ss:$8 sps:$4 sm:$0xff]  }
 0x1b7   :  { %7362 = vmatpush1.bf16.msra.mxu1 %v10691_v42  ;;  %v10775_v42 = vld [vmem:[%s15529_s1 + $0x7b0] ss:$8 sps:$4 sm:$0xff]  }
 0x1b8   :  { %8100 = vmatpush1.bf16.msra.mxu0 %v10694_v43  ;;  %7363 = vmatprep.subr.bf16.mxu1 %v10699_v44  ;;  %v10778_v43 = vld [vmem:[%s15529_s1 + $0x19b0] ss:$8 sps:$4 sm:$0xff]   ;;  %v10783_v44 = vld [vmem:[%s15529_s1 + $0x7c4] ss:$8 sps:$4 sm:$0xff]  }
 0x1b9   :  { %8101 = vmatprep.subr.bf16.mxu0 %v10702_v45  ;;  %v10786_v45 = vld [vmem:[%s15529_s1 + $0x19c4] ss:$8 sps:$4 sm:$0xff]  }
 0x1bb   :  { %7364 = vmatpush1.bf16.msra.mxu1 %v10697_v46  ;;  %v10781_v46 = vld [vmem:[%s15529_s1 + $0x7c0] ss:$8 sps:$4 sm:$0xff]  }
 0x1bc   :  { %8102 = vmatpush1.bf16.msra.mxu0 %v10700_v47  ;;  %7365 = vmatprep.subr.bf16.mxu1 %v10705_v48  ;;  %v10784_v47 = vld [vmem:[%s15529_s1 + $0x19c0] ss:$8 sps:$4 sm:$0xff]   ;;  %v10789_v48 = vld [vmem:[%s15529_s1 + $0x7d4] ss:$8 sps:$4 sm:$0xff]  }
 0x1bd   :  { %8103 = vmatprep.subr.bf16.mxu0 %v10708_v49  ;;  %v10792_v49 = vld [vmem:[%s15529_s1 + $0x19d4] ss:$8 sps:$4 sm:$0xff]  }
 0x1bf   :  { %7366 = vmatpush1.bf16.msra.mxu1 %v10703_v50  ;;  %v10787_v50 = vld [vmem:[%s15529_s1 + $0x7d0] ss:$8 sps:$4 sm:$0xff]  }
 0x1c0   :  { %8104 = vmatpush1.bf16.msra.mxu0 %v10706_v51  ;;  %7376 = vmatprep.subr.bf16.mxu1 %v10711_v52  ;;  %v10790_v51 = vld [vmem:[%s15529_s1 + $0x19d0] ss:$8 sps:$4 sm:$0xff]   ;;  %v10795_v52 = vld [vmem:[%s15529_s1 + $0x7e4] ss:$8 sps:$4 sm:$0xff]  }
 0x1c1   :  { %8114 = vmatprep.subr.bf16.mxu0 %v10714_v53  ;;  %v10798_v53 = vld [vmem:[%s15529_s1 + $0x19e4] ss:$8 sps:$4 sm:$0xff]  }
 0x1c2   :  { %7368 = vmatmul.mubr.bf16.vlgmr.msra.gmra.mrb[0].mxu1 %v105_v58  ;;  %v10799_v58 = vld [vmem:[%s15529_s1 + $0x7f0] ss:$8 sps:$4 sm:$0xff]  }
 0x1c3   :  { %8106 = vmatmul.mubr.bf16.vlgmr.msra.gmra.mrb[0].mxu0 %v141_v59  ;;  %7377 = vmatpush1.bf16.msra.mxu1 %v10709_v60  ;;  %v10802_v59 = vld [vmem:[%s15529_s1 + $0x19f0] ss:$8 sps:$4 sm:$0xff]   ;;  %v10807_v60 = vld [vmem:[%s15529_s1 + $0x804] ss:$8 sps:$4 sm:$0xff]  }
 0x1c4   :  { %8115 = vmatpush1.bf16.msra.mxu0 %v10712_v61  ;;  %7378 = vmatprep.subr.bf16.mxu1 %v10717_v62  ;;  %v10810_v61 = vld [vmem:[%s15529_s1 + $0x1a04] ss:$8 sps:$4 sm:$0xff]   ;;  %v35_v62 = vld [vmem:[%s15530_s0 + $0x70] sm:$0xff] }
 0x1c5   :  { %8116 = vmatprep.subr.bf16.mxu0 %v10720_v63  ;;  %7408 = vmatprep.mubr.bf16.mxu1 %v108_v0  ;;  %v71_v63 = vld [vmem:[%s15530_s0 + $0x190] sm:$0xff]  ;;  %v38_v0 = vld [vmem:[%s15530_s0 + $0x88] sm:$0xff] }
 0x1c6   :  { %8146 = vmatprep.mubr.bf16.mxu0 %v144_v1  ;;  %v74_v1 = vld [vmem:[%s15530_s0 + $0x1a8] sm:$0xff] }
 0x1c7   :  { %7379 = vmatpush1.bf16.msra.mxu1 %v10715_v2  ;;  %v107_v2 = vpack.c.bf16 %v35_v62, %v35_v62  ;;  %v10889_v62 = vld [vmem:[%s15529_s1 + $0x8e0] ss:$8 sps:$4 sm:$0xff]  }
 0x1c8   :  { %8117 = vmatpush1.bf16.msra.mxu0 %v10718_v3  ;;  %7380 = vmatprep.subr.bf16.mxu1 %v10723_v4  ;;  %v143_v3 = vpack.c.bf16 %v71_v63, %v71_v63  ;;  %v10805_v4 = vld [vmem:[%s15529_s1 + $0x800] ss:$8 sps:$4 sm:$0xff]  }
 0x1c9   :  { %8118 = vmatprep.subr.bf16.mxu0 %v10726_v5  ;;  %v10808_v5 = vld [vmem:[%s15529_s1 + $0x1a00] ss:$8 sps:$4 sm:$0xff]  }
 0x1ca   :  { %v10892_v63 = vld [vmem:[%s15529_s1 + $0x1ae0] ss:$8 sps:$4 sm:$0xff]  }
 0x1cb   :  { %7381 = vmatpush1.bf16.msra.mxu1 %v10721_v6  ;;  %v10813_v6 = vld [vmem:[%s15529_s1 + $0x814] ss:$8 sps:$4 sm:$0xff]  }
 0x1cc   :  { %8119 = vmatpush1.bf16.msra.mxu0 %v10724_v7  ;;  %7382 = vmatprep.subr.bf16.mxu1 %v10729_v8  ;;  %v10816_v7 = vld [vmem:[%s15529_s1 + $0x1a14] ss:$8 sps:$4 sm:$0xff]   ;;  %v110_v8 = vpack.c.bf16 %v38_v0, %v38_v0 }
 0x1cd   :  { %8120 = vmatprep.subr.bf16.mxu0 %v10732_v9  ;;  %v146_v9 = vpack.c.bf16 %v74_v1, %v74_v1  ;;  %v10897_v0 = vld [vmem:[%s15529_s1 + $0x8f4] ss:$8 sps:$4 sm:$0xff]  }
 0x1ce   :  { %v10900_v1 = vld [vmem:[%s15529_s1 + $0x1af4] ss:$8 sps:$4 sm:$0xff]  }
 0x1cf   :  { %7383 = vmatpush1.bf16.msra.mxu1 %v10727_v10  ;;  %v10811_v10 = vld [vmem:[%s15529_s1 + $0x810] ss:$8 sps:$4 sm:$0xff]  }
 0x1d0   :  { %8121 = vmatpush1.bf16.msra.mxu0 %v10730_v11  ;;  %7384 = vmatprep.subr.bf16.mxu1 %v10735_v12  ;;  %v10814_v11 = vld [vmem:[%s15529_s1 + $0x1a10] ss:$8 sps:$4 sm:$0xff]   ;;  %v10819_v12 = vld [vmem:[%s15529_s1 + $0x824] ss:$8 sps:$4 sm:$0xff]  }
 0x1d1   :  { %8122 = vmatprep.subr.bf16.mxu0 %v10738_v13  ;;  %v10822_v13 = vld [vmem:[%s15529_s1 + $0x1a24] ss:$8 sps:$4 sm:$0xff]  }
 0x1d3   :  { %7385 = vmatpush1.bf16.msra.mxu1 %v10733_v14  ;;  %v10817_v14 = vld [vmem:[%s15529_s1 + $0x820] ss:$8 sps:$4 sm:$0xff]  }
 0x1d4   :  { %8123 = vmatpush1.bf16.msra.mxu0 %v10736_v15  ;;  %7386 = vmatprep.subr.bf16.mxu1 %v10741_v16  ;;  %v10820_v15 = vld [vmem:[%s15529_s1 + $0x1a20] ss:$8 sps:$4 sm:$0xff]   ;;  %v10825_v16 = vld [vmem:[%s15529_s1 + $0x834] ss:$8 sps:$4 sm:$0xff]  }
 0x1d5   :  { %8124 = vmatprep.subr.bf16.mxu0 %v10744_v17  ;;  %v10828_v17 = vld [vmem:[%s15529_s1 + $0x1a34] ss:$8 sps:$4 sm:$0xff]  }
 0x1d7   :  { %7387 = vmatpush1.bf16.msra.mxu1 %v10739_v18  ;;  %v10823_v18 = vld [vmem:[%s15529_s1 + $0x830] ss:$8 sps:$4 sm:$0xff]  }
 0x1d8   :  { %8125 = vmatpush1.bf16.msra.mxu0 %v10742_v19  ;;  %7388 = vmatprep.subr.bf16.mxu1 %v10747_v20  ;;  %v10826_v19 = vld [vmem:[%s15529_s1 + $0x1a30] ss:$8 sps:$4 sm:$0xff]   ;;  %v10831_v20 = vld [vmem:[%s15529_s1 + $0x844] ss:$8 sps:$4 sm:$0xff]  }
 0x1d9   :  { %8126 = vmatprep.subr.bf16.mxu0 %v10750_v21  ;;  %v10834_v21 = vld [vmem:[%s15529_s1 + $0x1a44] ss:$8 sps:$4 sm:$0xff]  }
 0x1db   :  { %7389 = vmatpush1.bf16.msra.mxu1 %v10745_v22  ;;  %v10829_v22 = vld [vmem:[%s15529_s1 + $0x840] ss:$8 sps:$4 sm:$0xff]  }
 0x1dc   :  { %8127 = vmatpush1.bf16.msra.mxu0 %v10748_v23  ;;  %7390 = vmatprep.subr.bf16.mxu1 %v10753_v24  ;;  %v10832_v23 = vld [vmem:[%s15529_s1 + $0x1a40] ss:$8 sps:$4 sm:$0xff]   ;;  %v10837_v24 = vld [vmem:[%s15529_s1 + $0x854] ss:$8 sps:$4 sm:$0xff]  }
 0x1dd   :  { %8128 = vmatprep.subr.bf16.mxu0 %v10756_v25  ;;  %v10840_v25 = vld [vmem:[%s15529_s1 + $0x1a54] ss:$8 sps:$4 sm:$0xff]  }
 0x1df   :  { %7391 = vmatpush1.bf16.msra.mxu1 %v10751_v26  ;;  %v10835_v26 = vld [vmem:[%s15529_s1 + $0x850] ss:$8 sps:$4 sm:$0xff]  }
 0x1e0   :  { %8129 = vmatpush1.bf16.msra.mxu0 %v10754_v27  ;;  %7392 = vmatprep.subr.bf16.mxu1 %v10759_v28  ;;  %v10838_v27 = vld [vmem:[%s15529_s1 + $0x1a50] ss:$8 sps:$4 sm:$0xff]   ;;  %v10843_v28 = vld [vmem:[%s15529_s1 + $0x864] ss:$8 sps:$4 sm:$0xff]  }
 0x1e1   :  { %8130 = vmatprep.subr.bf16.mxu0 %v10762_v29  ;;  %v10846_v29 = vld [vmem:[%s15529_s1 + $0x1a64] ss:$8 sps:$4 sm:$0xff]  }
 0x1e3   :  { %7393 = vmatpush1.bf16.msra.mxu1 %v10757_v30  ;;  %v10841_v30 = vld [vmem:[%s15529_s1 + $0x860] ss:$8 sps:$4 sm:$0xff]  }
 0x1e4   :  { %8131 = vmatpush1.bf16.msra.mxu0 %v10760_v31  ;;  %7394 = vmatprep.subr.bf16.mxu1 %v10765_v32  ;;  %v10844_v31 = vld [vmem:[%s15529_s1 + $0x1a60] ss:$8 sps:$4 sm:$0xff]   ;;  %v10849_v32 = vld [vmem:[%s15529_s1 + $0x874] ss:$8 sps:$4 sm:$0xff]  }
 0x1e5   :  { %8132 = vmatprep.subr.bf16.mxu0 %v10768_v33  ;;  %v10852_v33 = vld [vmem:[%s15529_s1 + $0x1a74] ss:$8 sps:$4 sm:$0xff]  }
 0x1e7   :  { %7395 = vmatpush1.bf16.msra.mxu1 %v10763_v34  ;;  %v10847_v34 = vld [vmem:[%s15529_s1 + $0x870] ss:$8 sps:$4 sm:$0xff]  }
 0x1e8   :  { %8133 = vmatpush1.bf16.msra.mxu0 %v10766_v35  ;;  %7396 = vmatprep.subr.bf16.mxu1 %v10771_v36  ;;  %v10850_v35 = vld [vmem:[%s15529_s1 + $0x1a70] ss:$8 sps:$4 sm:$0xff]   ;;  %v10855_v36 = vld [vmem:[%s15529_s1 + $0x884] ss:$8 sps:$4 sm:$0xff]  }
 0x1e9   :  { %8134 = vmatprep.subr.bf16.mxu0 %v10774_v37  ;;  %v10858_v37 = vld [vmem:[%s15529_s1 + $0x1a84] ss:$8 sps:$4 sm:$0xff]  }
 0x1eb   :  { %7397 = vmatpush1.bf16.msra.mxu1 %v10769_v38  ;;  %v10853_v38 = vld [vmem:[%s15529_s1 + $0x880] ss:$8 sps:$4 sm:$0xff]  }
 0x1ec   :  { %8135 = vmatpush1.bf16.msra.mxu0 %v10772_v39  ;;  %7398 = vmatprep.subr.bf16.mxu1 %v10777_v40  ;;  %v10856_v39 = vld [vmem:[%s15529_s1 + $0x1a80] ss:$8 sps:$4 sm:$0xff]   ;;  %v10861_v40 = vld [vmem:[%s15529_s1 + $0x894] ss:$8 sps:$4 sm:$0xff]  }
 0x1ed   :  { %8136 = vmatprep.subr.bf16.mxu0 %v10780_v41  ;;  %v10864_v41 = vld [vmem:[%s15529_s1 + $0x1a94] ss:$8 sps:$4 sm:$0xff]  }
 0x1ef   :  { %7399 = vmatpush1.bf16.msra.mxu1 %v10775_v42  ;;  %v10859_v42 = vld [vmem:[%s15529_s1 + $0x890] ss:$8 sps:$4 sm:$0xff]  }
 0x1f0   :  { %8137 = vmatpush1.bf16.msra.mxu0 %v10778_v43  ;;  %7400 = vmatprep.subr.bf16.mxu1 %v10783_v44  ;;  %v10862_v43 = vld [vmem:[%s15529_s1 + $0x1a90] ss:$8 sps:$4 sm:$0xff]   ;;  %v10867_v44 = vld [vmem:[%s15529_s1 + $0x8a4] ss:$8 sps:$4 sm:$0xff]  }
 0x1f1   :  { %8138 = vmatprep.subr.bf16.mxu0 %v10786_v45  ;;  %v10870_v45 = vld [vmem:[%s15529_s1 + $0x1aa4] ss:$8 sps:$4 sm:$0xff]  }
 0x1f3   :  { %7401 = vmatpush1.bf16.msra.mxu1 %v10781_v46  ;;  %v10865_v46 = vld [vmem:[%s15529_s1 + $0x8a0] ss:$8 sps:$4 sm:$0xff]  }
 0x1f4   :  { %8139 = vmatpush1.bf16.msra.mxu0 %v10784_v47  ;;  %7402 = vmatprep.subr.bf16.mxu1 %v10789_v48  ;;  %v10868_v47 = vld [vmem:[%s15529_s1 + $0x1aa0] ss:$8 sps:$4 sm:$0xff]   ;;  %v10873_v48 = vld [vmem:[%s15529_s1 + $0x8b4] ss:$8 sps:$4 sm:$0xff]  }
 0x1f5   :  { %8140 = vmatprep.subr.bf16.mxu0 %v10792_v49  ;;  %v10876_v49 = vld [vmem:[%s15529_s1 + $0x1ab4] ss:$8 sps:$4 sm:$0xff]  }
 0x1f7   :  { %7403 = vmatpush1.bf16.msra.mxu1 %v10787_v50  ;;  %v10871_v50 = vld [vmem:[%s15529_s1 + $0x8b0] ss:$8 sps:$4 sm:$0xff]  }
 0x1f8   :  { %8141 = vmatpush1.bf16.msra.mxu0 %v10790_v51  ;;  %7404 = vmatprep.subr.bf16.mxu1 %v10795_v52  ;;  %v10874_v51 = vld [vmem:[%s15529_s1 + $0x1ab0] ss:$8 sps:$4 sm:$0xff]   ;;  %v10879_v52 = vld [vmem:[%s15529_s1 + $0x8c4] ss:$8 sps:$4 sm:$0xff]  }
 0x1f9   :  { %8142 = vmatprep.subr.bf16.mxu0 %v10798_v53  ;;  %v10882_v53 = vld [vmem:[%s15529_s1 + $0x1ac4] ss:$8 sps:$4 sm:$0xff]  }
 0x1fb   :  { %7405 = vmatpush1.bf16.msra.mxu1 %v10793_v54  ;;  %v10877_v54 = vld [vmem:[%s15529_s1 + $0x8c0] ss:$8 sps:$4 sm:$0xff]  }
 0x1fc   :  { %8143 = vmatpush1.bf16.msra.mxu0 %v10796_v55  ;;  %7406 = vmatprep.subr.bf16.mxu1 %v10801_v56  ;;  %v10880_v55 = vld [vmem:[%s15529_s1 + $0x1ac0] ss:$8 sps:$4 sm:$0xff]   ;;  %v10885_v56 = vld [vmem:[%s15529_s1 + $0x8d4] ss:$8 sps:$4 sm:$0xff]  }
 0x1fd   :  { %8144 = vmatprep.subr.bf16.mxu0 %v10804_v57  ;;  %v10888_v57 = vld [vmem:[%s15529_s1 + $0x1ad4] ss:$8 sps:$4 sm:$0xff]  }
 0x1ff   :  { %7407 = vmatpush1.bf16.msra.mxu1 %v10799_v58  ;;  %v10883_v58 = vld [vmem:[%s15529_s1 + $0x8d0] ss:$8 sps:$4 sm:$0xff]  }
 0x200   :  { %8145 = vmatpush1.bf16.msra.mxu0 %v10802_v59  ;;  %7417 = vmatprep.subr.bf16.mxu1 %v10807_v60  ;;  %v10886_v59 = vld [vmem:[%s15529_s1 + $0x1ad0] ss:$8 sps:$4 sm:$0xff]   ;;  %v10891_v60 = vld [vmem:[%s15529_s1 + $0x8e4] ss:$8 sps:$4 sm:$0xff]  }
 0x201   :  { %8155 = vmatprep.subr.bf16.mxu0 %v10810_v61  ;;  %v10894_v61 = vld [vmem:[%s15529_s1 + $0x1ae4] ss:$8 sps:$4 sm:$0xff]  }
 0x202   :  { %7409 = vmatmul.mubr.bf16.vlgmr.msra.gmra.mrb[0].mxu1 %v107_v2  ;;  %v10895_v2 = vld [vmem:[%s15529_s1 + $0x8f0] ss:$8 sps:$4 sm:$0xff]  }
 0x203   :  { %8147 = vmatmul.mubr.bf16.vlgmr.msra.gmra.mrb[0].mxu0 %v143_v3  ;;  %7418 = vmatpush1.bf16.msra.mxu1 %v10805_v4  ;;  %v10898_v3 = vld [vmem:[%s15529_s1 + $0x1af0] ss:$8 sps:$4 sm:$0xff]   ;;  %v10903_v4 = vld [vmem:[%s15529_s1 + $0x904] ss:$8 sps:$4 sm:$0xff]  }
 0x204   :  { %8156 = vmatpush1.bf16.msra.mxu0 %v10808_v5  ;;  %7419 = vmatprep.subr.bf16.mxu1 %v10813_v6  ;;  %v10906_v5 = vld [vmem:[%s15529_s1 + $0x1b04] ss:$8 sps:$4 sm:$0xff]  }
 0x205   :  { %8157 = vmatprep.subr.bf16.mxu0 %v10816_v7  ;;  %7449 = vmatprep.mubr.bf16.mxu1 %v110_v8  ;;  %v37_v6 = vld [vmem:[%s15530_s0 + $0x80] sm:$0xff]  ;;  %v40_v8 = vld [vmem:[%s15530_s0 + $0x98] sm:$0xff] }
 0x206   :  { %8187 = vmatprep.mubr.bf16.mxu0 %v146_v9  ;;  %v73_v7 = vld [vmem:[%s15530_s0 + $0x1a0] sm:$0xff]  ;;  %v76_v9 = vld [vmem:[%s15530_s0 + $0x1b8] sm:$0xff] }
 0x207   :  { %7420 = vmatpush1.bf16.msra.mxu1 %v10811_v10  ;;  %v109_v10 = vpack.c.bf16 %v37_v6, %v37_v6  ;;  %v10985_v6 = vld [vmem:[%s15529_s1 + $0x9e0] ss:$8 sps:$4 sm:$0xff]  }
 0x208   :  { %8158 = vmatpush1.bf16.msra.mxu0 %v10814_v11  ;;  %7421 = vmatprep.subr.bf16.mxu1 %v10819_v12  ;;  %v145_v11 = vpack.c.bf16 %v73_v7, %v73_v7  ;;  %v10901_v12 = vld [vmem:[%s15529_s1 + $0x900] ss:$8 sps:$4 sm:$0xff]  }
 0x209   :  { %8159 = vmatprep.subr.bf16.mxu0 %v10822_v13  ;;  %v10904_v13 = vld [vmem:[%s15529_s1 + $0x1b00] ss:$8 sps:$4 sm:$0xff]  }
 0x20a   :  { %v10988_v7 = vld [vmem:[%s15529_s1 + $0x1be0] ss:$8 sps:$4 sm:$0xff]  }
 0x20b   :  { %7422 = vmatpush1.bf16.msra.mxu1 %v10817_v14  ;;  %v10909_v14 = vld [vmem:[%s15529_s1 + $0x914] ss:$8 sps:$4 sm:$0xff]  }
 0x20c   :  { %8160 = vmatpush1.bf16.msra.mxu0 %v10820_v15  ;;  %7423 = vmatprep.subr.bf16.mxu1 %v10825_v16  ;;  %v10912_v15 = vld [vmem:[%s15529_s1 + $0x1b14] ss:$8 sps:$4 sm:$0xff]   ;;  %v112_v16 = vpack.c.bf16 %v40_v8, %v40_v8 }
 0x20d   :  { %8161 = vmatprep.subr.bf16.mxu0 %v10828_v17  ;;  %v148_v17 = vpack.c.bf16 %v76_v9, %v76_v9  ;;  %v10993_v8 = vld [vmem:[%s15529_s1 + $0x9f4] ss:$8 sps:$4 sm:$0xff]  }
 0x20e   :  { %v10996_v9 = vld [vmem:[%s15529_s1 + $0x1bf4] ss:$8 sps:$4 sm:$0xff]  }
 0x20f   :  { %7424 = vmatpush1.bf16.msra.mxu1 %v10823_v18  ;;  %v10907_v18 = vld [vmem:[%s15529_s1 + $0x910] ss:$8 sps:$4 sm:$0xff]  }
 0x210   :  { %8162 = vmatpush1.bf16.msra.mxu0 %v10826_v19  ;;  %7425 = vmatprep.subr.bf16.mxu1 %v10831_v20  ;;  %v10910_v19 = vld [vmem:[%s15529_s1 + $0x1b10] ss:$8 sps:$4 sm:$0xff]   ;;  %v10915_v20 = vld [vmem:[%s15529_s1 + $0x924] ss:$8 sps:$4 sm:$0xff]  }
 0x211   :  { %8163 = vmatprep.subr.bf16.mxu0 %v10834_v21  ;;  %v10918_v21 = vld [vmem:[%s15529_s1 + $0x1b24] ss:$8 sps:$4 sm:$0xff]  }
 0x213   :  { %7426 = vmatpush1.bf16.msra.mxu1 %v10829_v22  ;;  %v10913_v22 = vld [vmem:[%s15529_s1 + $0x920] ss:$8 sps:$4 sm:$0xff]  }
 0x214   :  { %8164 = vmatpush1.bf16.msra.mxu0 %v10832_v23  ;;  %7427 = vmatprep.subr.bf16.mxu1 %v10837_v24  ;;  %v10916_v23 = vld [vmem:[%s15529_s1 + $0x1b20] ss:$8 sps:$4 sm:$0xff]   ;;  %v10921_v24 = vld [vmem:[%s15529_s1 + $0x934] ss:$8 sps:$4 sm:$0xff]  }
 0x215   :  { %8165 = vmatprep.subr.bf16.mxu0 %v10840_v25  ;;  %v10924_v25 = vld [vmem:[%s15529_s1 + $0x1b34] ss:$8 sps:$4 sm:$0xff]  }
 0x217   :  { %7428 = vmatpush1.bf16.msra.mxu1 %v10835_v26  ;;  %v10919_v26 = vld [vmem:[%s15529_s1 + $0x930] ss:$8 sps:$4 sm:$0xff]  }
 0x218   :  { %8166 = vmatpush1.bf16.msra.mxu0 %v10838_v27  ;;  %7429 = vmatprep.subr.bf16.mxu1 %v10843_v28  ;;  %v10922_v27 = vld [vmem:[%s15529_s1 + $0x1b30] ss:$8 sps:$4 sm:$0xff]   ;;  %v10927_v28 = vld [vmem:[%s15529_s1 + $0x944] ss:$8 sps:$4 sm:$0xff]  }
 0x219   :  { %8167 = vmatprep.subr.bf16.mxu0 %v10846_v29  ;;  %v10930_v29 = vld [vmem:[%s15529_s1 + $0x1b44] ss:$8 sps:$4 sm:$0xff]  }
 0x21b   :  { %7430 = vmatpush1.bf16.msra.mxu1 %v10841_v30  ;;  %v10925_v30 = vld [vmem:[%s15529_s1 + $0x940] ss:$8 sps:$4 sm:$0xff]  }
 0x21c   :  { %8168 = vmatpush1.bf16.msra.mxu0 %v10844_v31  ;;  %7431 = vmatprep.subr.bf16.mxu1 %v10849_v32  ;;  %v10928_v31 = vld [vmem:[%s15529_s1 + $0x1b40] ss:$8 sps:$4 sm:$0xff]   ;;  %v10933_v32 = vld [vmem:[%s15529_s1 + $0x954] ss:$8 sps:$4 sm:$0xff]  }
 0x21d   :  { %8169 = vmatprep.subr.bf16.mxu0 %v10852_v33  ;;  %v10936_v33 = vld [vmem:[%s15529_s1 + $0x1b54] ss:$8 sps:$4 sm:$0xff]  }
 0x21f   :  { %7432 = vmatpush1.bf16.msra.mxu1 %v10847_v34  ;;  %v10931_v34 = vld [vmem:[%s15529_s1 + $0x950] ss:$8 sps:$4 sm:$0xff]  }
 0x220   :  { %8170 = vmatpush1.bf16.msra.mxu0 %v10850_v35  ;;  %7433 = vmatprep.subr.bf16.mxu1 %v10855_v36  ;;  %v10934_v35 = vld [vmem:[%s15529_s1 + $0x1b50] ss:$8 sps:$4 sm:$0xff]   ;;  %v10939_v36 = vld [vmem:[%s15529_s1 + $0x964] ss:$8 sps:$4 sm:$0xff]  }
 0x221   :  { %8171 = vmatprep.subr.bf16.mxu0 %v10858_v37  ;;  %v10942_v37 = vld [vmem:[%s15529_s1 + $0x1b64] ss:$8 sps:$4 sm:$0xff]  }
 0x223   :  { %7434 = vmatpush1.bf16.msra.mxu1 %v10853_v38  ;;  %v10937_v38 = vld [vmem:[%s15529_s1 + $0x960] ss:$8 sps:$4 sm:$0xff]  }
 0x224   :  { %8172 = vmatpush1.bf16.msra.mxu0 %v10856_v39  ;;  %7435 = vmatprep.subr.bf16.mxu1 %v10861_v40  ;;  %v10940_v39 = vld [vmem:[%s15529_s1 + $0x1b60] ss:$8 sps:$4 sm:$0xff]   ;;  %v10945_v40 = vld [vmem:[%s15529_s1 + $0x974] ss:$8 sps:$4 sm:$0xff]  }
 0x225   :  { %8173 = vmatprep.subr.bf16.mxu0 %v10864_v41  ;;  %v10948_v41 = vld [vmem:[%s15529_s1 + $0x1b74] ss:$8 sps:$4 sm:$0xff]  }
 0x227   :  { %7436 = vmatpush1.bf16.msra.mxu1 %v10859_v42  ;;  %v10943_v42 = vld [vmem:[%s15529_s1 + $0x970] ss:$8 sps:$4 sm:$0xff]  }
 0x228   :  { %8174 = vmatpush1.bf16.msra.mxu0 %v10862_v43  ;;  %7437 = vmatprep.subr.bf16.mxu1 %v10867_v44  ;;  %v10946_v43 = vld [vmem:[%s15529_s1 + $0x1b70] ss:$8 sps:$4 sm:$0xff]   ;;  %v10951_v44 = vld [vmem:[%s15529_s1 + $0x984] ss:$8 sps:$4 sm:$0xff]  }
 0x229   :  { %8175 = vmatprep.subr.bf16.mxu0 %v10870_v45  ;;  %v10954_v45 = vld [vmem:[%s15529_s1 + $0x1b84] ss:$8 sps:$4 sm:$0xff]  }
 0x22b   :  { %7438 = vmatpush1.bf16.msra.mxu1 %v10865_v46  ;;  %v10949_v46 = vld [vmem:[%s15529_s1 + $0x980] ss:$8 sps:$4 sm:$0xff]  }
 0x22c   :  { %8176 = vmatpush1.bf16.msra.mxu0 %v10868_v47  ;;  %7439 = vmatprep.subr.bf16.mxu1 %v10873_v48  ;;  %v10952_v47 = vld [vmem:[%s15529_s1 + $0x1b80] ss:$8 sps:$4 sm:$0xff]   ;;  %v10957_v48 = vld [vmem:[%s15529_s1 + $0x994] ss:$8 sps:$4 sm:$0xff]  }
 0x22d   :  { %8177 = vmatprep.subr.bf16.mxu0 %v10876_v49  ;;  %v10960_v49 = vld [vmem:[%s15529_s1 + $0x1b94] ss:$8 sps:$4 sm:$0xff]  }
 0x22f   :  { %7440 = vmatpush1.bf16.msra.mxu1 %v10871_v50  ;;  %v10955_v50 = vld [vmem:[%s15529_s1 + $0x990] ss:$8 sps:$4 sm:$0xff]  }
 0x230   :  { %8178 = vmatpush1.bf16.msra.mxu0 %v10874_v51  ;;  %7441 = vmatprep.subr.bf16.mxu1 %v10879_v52  ;;  %v10958_v51 = vld [vmem:[%s15529_s1 + $0x1b90] ss:$8 sps:$4 sm:$0xff]   ;;  %v10963_v52 = vld [vmem:[%s15529_s1 + $0x9a4] ss:$8 sps:$4 sm:$0xff]  }
 0x231   :  { %8179 = vmatprep.subr.bf16.mxu0 %v10882_v53  ;;  %v10966_v53 = vld [vmem:[%s15529_s1 + $0x1ba4] ss:$8 sps:$4 sm:$0xff]  }
 0x233   :  { %7442 = vmatpush1.bf16.msra.mxu1 %v10877_v54  ;;  %v10961_v54 = vld [vmem:[%s15529_s1 + $0x9a0] ss:$8 sps:$4 sm:$0xff]  }
 0x234   :  { %8180 = vmatpush1.bf16.msra.mxu0 %v10880_v55  ;;  %7443 = vmatprep.subr.bf16.mxu1 %v10885_v56  ;;  %v10964_v55 = vld [vmem:[%s15529_s1 + $0x1ba0] ss:$8 sps:$4 sm:$0xff]   ;;  %v10969_v56 = vld [vmem:[%s15529_s1 + $0x9b4] ss:$8 sps:$4 sm:$0xff]  }
 0x235   :  { %8181 = vmatprep.subr.bf16.mxu0 %v10888_v57  ;;  %v10972_v57 = vld [vmem:[%s15529_s1 + $0x1bb4] ss:$8 sps:$4 sm:$0xff]  }
 0x237   :  { %7444 = vmatpush1.bf16.msra.mxu1 %v10883_v58  ;;  %v10967_v58 = vld [vmem:[%s15529_s1 + $0x9b0] ss:$8 sps:$4 sm:$0xff]  }
 0x238   :  { %8182 = vmatpush1.bf16.msra.mxu0 %v10886_v59  ;;  %7445 = vmatprep.subr.bf16.mxu1 %v10891_v60  ;;  %v10970_v59 = vld [vmem:[%s15529_s1 + $0x1bb0] ss:$8 sps:$4 sm:$0xff]   ;;  %v10975_v60 = vld [vmem:[%s15529_s1 + $0x9c4] ss:$8 sps:$4 sm:$0xff]  }
 0x239   :  { %8183 = vmatprep.subr.bf16.mxu0 %v10894_v61  ;;  %v10978_v61 = vld [vmem:[%s15529_s1 + $0x1bc4] ss:$8 sps:$4 sm:$0xff]  }
 0x23b   :  { %7446 = vmatpush1.bf16.msra.mxu1 %v10889_v62  ;;  %v10973_v62 = vld [vmem:[%s15529_s1 + $0x9c0] ss:$8 sps:$4 sm:$0xff]  }
 0x23c   :  { %8184 = vmatpush1.bf16.msra.mxu0 %v10892_v63  ;;  %7447 = vmatprep.subr.bf16.mxu1 %v10897_v0  ;;  %v10976_v63 = vld [vmem:[%s15529_s1 + $0x1bc0] ss:$8 sps:$4 sm:$0xff]   ;;  %v10981_v0 = vld [vmem:[%s15529_s1 + $0x9d4] ss:$8 sps:$4 sm:$0xff]  }
 0x23d   :  { %8185 = vmatprep.subr.bf16.mxu0 %v10900_v1  ;;  %v10984_v1 = vld [vmem:[%s15529_s1 + $0x1bd4] ss:$8 sps:$4 sm:$0xff]  }
 0x23f   :  { %7448 = vmatpush1.bf16.msra.mxu1 %v10895_v2  ;;  %v10979_v2 = vld [vmem:[%s15529_s1 + $0x9d0] ss:$8 sps:$4 sm:$0xff]  }
 0x240   :  { %8186 = vmatpush1.bf16.msra.mxu0 %v10898_v3  ;;  %7458 = vmatprep.subr.bf16.mxu1 %v10903_v4  ;;  %v10982_v3 = vld [vmem:[%s15529_s1 + $0x1bd0] ss:$8 sps:$4 sm:$0xff]   ;;  %v10987_v4 = vld [vmem:[%s15529_s1 + $0x9e4] ss:$8 sps:$4 sm:$0xff]  }
 0x241   :  { %8196 = vmatprep.subr.bf16.mxu0 %v10906_v5  ;;  %v10990_v5 = vld [vmem:[%s15529_s1 + $0x1be4] ss:$8 sps:$4 sm:$0xff]  }
 0x242   :  { %7450 = vmatmul.mubr.bf16.vlgmr.msra.gmra.mrb[0].mxu1 %v109_v10  ;;  %v10991_v10 = vld [vmem:[%s15529_s1 + $0x9f0] ss:$8 sps:$4 sm:$0xff]  }
 0x243   :  { %8188 = vmatmul.mubr.bf16.vlgmr.msra.gmra.mrb[0].mxu0 %v145_v11  ;;  %7459 = vmatpush1.bf16.msra.mxu1 %v10901_v12  ;;  %v10994_v11 = vld [vmem:[%s15529_s1 + $0x1bf0] ss:$8 sps:$4 sm:$0xff]   ;;  %v10999_v12 = vld [vmem:[%s15529_s1 + $0xa04] ss:$8 sps:$4 sm:$0xff]  }
 0x244   :  { %8197 = vmatpush1.bf16.msra.mxu0 %v10904_v13  ;;  %7460 = vmatprep.subr.bf16.mxu1 %v10909_v14  ;;  %v11002_v13 = vld [vmem:[%s15529_s1 + $0x1c04] ss:$8 sps:$4 sm:$0xff]   ;;  %v39_v14 = vld [vmem:[%s15530_s0 + $0x90] sm:$0xff] }
 0x245   :  { %8198 = vmatprep.subr.bf16.mxu0 %v10912_v15  ;;  %7490 = vmatprep.mubr.bf16.mxu1 %v112_v16  ;;  %v75_v15 = vld [vmem:[%s15530_s0 + $0x1b0] sm:$0xff]  ;;  %v42_v16 = vld [vmem:[%s15530_s0 + $0xa8] sm:$0xff] }
 0x246   :  { %8228 = vmatprep.mubr.bf16.mxu0 %v148_v17  ;;  %v78_v17 = vld [vmem:[%s15530_s0 + $0x1c8] sm:$0xff] }
 0x247   :  { %7461 = vmatpush1.bf16.msra.mxu1 %v10907_v18  ;;  %v111_v18 = vpack.c.bf16 %v39_v14, %v39_v14  ;;  %v11081_v14 = vld [vmem:[%s15529_s1 + $0xae0] ss:$8 sps:$4 sm:$0xff]  }
 0x248   :  { %8199 = vmatpush1.bf16.msra.mxu0 %v10910_v19  ;;  %7462 = vmatprep.subr.bf16.mxu1 %v10915_v20  ;;  %v147_v19 = vpack.c.bf16 %v75_v15, %v75_v15  ;;  %v10997_v20 = vld [vmem:[%s15529_s1 + $0xa00] ss:$8 sps:$4 sm:$0xff]  }
 0x249   :  { %8200 = vmatprep.subr.bf16.mxu0 %v10918_v21  ;;  %v11000_v21 = vld [vmem:[%s15529_s1 + $0x1c00] ss:$8 sps:$4 sm:$0xff]  }
 0x24a   :  { %v11084_v15 = vld [vmem:[%s15529_s1 + $0x1ce0] ss:$8 sps:$4 sm:$0xff]  }
 0x24b   :  { %7463 = vmatpush1.bf16.msra.mxu1 %v10913_v22  ;;  %v11005_v22 = vld [vmem:[%s15529_s1 + $0xa14] ss:$8 sps:$4 sm:$0xff]  }
 0x24c   :  { %8201 = vmatpush1.bf16.msra.mxu0 %v10916_v23  ;;  %7464 = vmatprep.subr.bf16.mxu1 %v10921_v24  ;;  %v11008_v23 = vld [vmem:[%s15529_s1 + $0x1c14] ss:$8 sps:$4 sm:$0xff]   ;;  %v114_v24 = vpack.c.bf16 %v42_v16, %v42_v16 }
 0x24d   :  { %8202 = vmatprep.subr.bf16.mxu0 %v10924_v25  ;;  %v150_v25 = vpack.c.bf16 %v78_v17, %v78_v17  ;;  %v11089_v16 = vld [vmem:[%s15529_s1 + $0xaf4] ss:$8 sps:$4 sm:$0xff]  }
 0x24e   :  { %v11092_v17 = vld [vmem:[%s15529_s1 + $0x1cf4] ss:$8 sps:$4 sm:$0xff]  }
 0x24f   :  { %7465 = vmatpush1.bf16.msra.mxu1 %v10919_v26  ;;  %v11003_v26 = vld [vmem:[%s15529_s1 + $0xa10] ss:$8 sps:$4 sm:$0xff]  }
 0x250   :  { %8203 = vmatpush1.bf16.msra.mxu0 %v10922_v27  ;;  %7466 = vmatprep.subr.bf16.mxu1 %v10927_v28  ;;  %v11006_v27 = vld [vmem:[%s15529_s1 + $0x1c10] ss:$8 sps:$4 sm:$0xff]   ;;  %v11011_v28 = vld [vmem:[%s15529_s1 + $0xa24] ss:$8 sps:$4 sm:$0xff]  }
 0x251   :  { %8204 = vmatprep.subr.bf16.mxu0 %v10930_v29  ;;  %v11014_v29 = vld [vmem:[%s15529_s1 + $0x1c24] ss:$8 sps:$4 sm:$0xff]  }
 0x253   :  { %7467 = vmatpush1.bf16.msra.mxu1 %v10925_v30  ;;  %v11009_v30 = vld [vmem:[%s15529_s1 + $0xa20] ss:$8 sps:$4 sm:$0xff]  }
 0x254   :  { %8205 = vmatpush1.bf16.msra.mxu0 %v10928_v31  ;;  %7468 = vmatprep.subr.bf16.mxu1 %v10933_v32  ;;  %v11012_v31 = vld [vmem:[%s15529_s1 + $0x1c20] ss:$8 sps:$4 sm:$0xff]   ;;  %v11017_v32 = vld [vmem:[%s15529_s1 + $0xa34] ss:$8 sps:$4 sm:$0xff]  }
 0x255   :  { %8206 = vmatprep.subr.bf16.mxu0 %v10936_v33  ;;  %v11020_v33 = vld [vmem:[%s15529_s1 + $0x1c34] ss:$8 sps:$4 sm:$0xff]  }
 0x257   :  { %7469 = vmatpush1.bf16.msra.mxu1 %v10931_v34  ;;  %v11015_v34 = vld [vmem:[%s15529_s1 + $0xa30] ss:$8 sps:$4 sm:$0xff]  }
 0x258   :  { %8207 = vmatpush1.bf16.msra.mxu0 %v10934_v35  ;;  %7470 = vmatprep.subr.bf16.mxu1 %v10939_v36  ;;  %v11018_v35 = vld [vmem:[%s15529_s1 + $0x1c30] ss:$8 sps:$4 sm:$0xff]   ;;  %v11023_v36 = vld [vmem:[%s15529_s1 + $0xa44] ss:$8 sps:$4 sm:$0xff]  }
 0x259   :  { %8208 = vmatprep.subr.bf16.mxu0 %v10942_v37  ;;  %v11026_v37 = vld [vmem:[%s15529_s1 + $0x1c44] ss:$8 sps:$4 sm:$0xff]  }
 0x25b   :  { %7471 = vmatpush1.bf16.msra.mxu1 %v10937_v38  ;;  %v11021_v38 = vld [vmem:[%s15529_s1 + $0xa40] ss:$8 sps:$4 sm:$0xff]  }
 0x25c   :  { %8209 = vmatpush1.bf16.msra.mxu0 %v10940_v39  ;;  %7472 = vmatprep.subr.bf16.mxu1 %v10945_v40  ;;  %v11024_v39 = vld [vmem:[%s15529_s1 + $0x1c40] ss:$8 sps:$4 sm:$0xff]   ;;  %v11029_v40 = vld [vmem:[%s15529_s1 + $0xa54] ss:$8 sps:$4 sm:$0xff]  }
 0x25d   :  { %8210 = vmatprep.subr.bf16.mxu0 %v10948_v41  ;;  %v11032_v41 = vld [vmem:[%s15529_s1 + $0x1c54] ss:$8 sps:$4 sm:$0xff]  }
 0x25f   :  { %7473 = vmatpush1.bf16.msra.mxu1 %v10943_v42  ;;  %v11027_v42 = vld [vmem:[%s15529_s1 + $0xa50] ss:$8 sps:$4 sm:$0xff]  }
 0x260   :  { %8211 = vmatpush1.bf16.msra.mxu0 %v10946_v43  ;;  %7474 = vmatprep.subr.bf16.mxu1 %v10951_v44  ;;  %v11030_v43 = vld [vmem:[%s15529_s1 + $0x1c50] ss:$8 sps:$4 sm:$0xff]   ;;  %v11035_v44 = vld [vmem:[%s15529_s1 + $0xa64] ss:$8 sps:$4 sm:$0xff]  }
 0x261   :  { %8212 = vmatprep.subr.bf16.mxu0 %v10954_v45  ;;  %v11038_v45 = vld [vmem:[%s15529_s1 + $0x1c64] ss:$8 sps:$4 sm:$0xff]  }
 0x263   :  { %7475 = vmatpush1.bf16.msra.mxu1 %v10949_v46  ;;  %v11033_v46 = vld [vmem:[%s15529_s1 + $0xa60] ss:$8 sps:$4 sm:$0xff]  }
 0x264   :  { %8213 = vmatpush1.bf16.msra.mxu0 %v10952_v47  ;;  %7476 = vmatprep.subr.bf16.mxu1 %v10957_v48  ;;  %v11036_v47 = vld [vmem:[%s15529_s1 + $0x1c60] ss:$8 sps:$4 sm:$0xff]   ;;  %v11041_v48 = vld [vmem:[%s15529_s1 + $0xa74] ss:$8 sps:$4 sm:$0xff]  }
 0x265   :  { %8214 = vmatprep.subr.bf16.mxu0 %v10960_v49  ;;  %v11044_v49 = vld [vmem:[%s15529_s1 + $0x1c74] ss:$8 sps:$4 sm:$0xff]  }
 0x267   :  { %7477 = vmatpush1.bf16.msra.mxu1 %v10955_v50  ;;  %v11039_v50 = vld [vmem:[%s15529_s1 + $0xa70] ss:$8 sps:$4 sm:$0xff]  }
 0x268   :  { %8215 = vmatpush1.bf16.msra.mxu0 %v10958_v51  ;;  %7478 = vmatprep.subr.bf16.mxu1 %v10963_v52  ;;  %v11042_v51 = vld [vmem:[%s15529_s1 + $0x1c70] ss:$8 sps:$4 sm:$0xff]   ;;  %v11047_v52 = vld [vmem:[%s15529_s1 + $0xa84] ss:$8 sps:$4 sm:$0xff]  }
 0x269   :  { %8216 = vmatprep.subr.bf16.mxu0 %v10966_v53  ;;  %v11050_v53 = vld [vmem:[%s15529_s1 + $0x1c84] ss:$8 sps:$4 sm:$0xff]  }
 0x26b   :  { %7479 = vmatpush1.bf16.msra.mxu1 %v10961_v54  ;;  %v11045_v54 = vld [vmem:[%s15529_s1 + $0xa80] ss:$8 sps:$4 sm:$0xff]  }
 0x26c   :  { %8217 = vmatpush1.bf16.msra.mxu0 %v10964_v55  ;;  %7480 = vmatprep.subr.bf16.mxu1 %v10969_v56  ;;  %v11048_v55 = vld [vmem:[%s15529_s1 + $0x1c80] ss:$8 sps:$4 sm:$0xff]   ;;  %v11053_v56 = vld [vmem:[%s15529_s1 + $0xa94] ss:$8 sps:$4 sm:$0xff]  }
 0x26d   :  { %8218 = vmatprep.subr.bf16.mxu0 %v10972_v57  ;;  %v11056_v57 = vld [vmem:[%s15529_s1 + $0x1c94] ss:$8 sps:$4 sm:$0xff]  }
 0x26f   :  { %7481 = vmatpush1.bf16.msra.mxu1 %v10967_v58  ;;  %v11051_v58 = vld [vmem:[%s15529_s1 + $0xa90] ss:$8 sps:$4 sm:$0xff]  }
 0x270   :  { %8219 = vmatpush1.bf16.msra.mxu0 %v10970_v59  ;;  %7482 = vmatprep.subr.bf16.mxu1 %v10975_v60  ;;  %v11054_v59 = vld [vmem:[%s15529_s1 + $0x1c90] ss:$8 sps:$4 sm:$0xff]   ;;  %v11059_v60 = vld [vmem:[%s15529_s1 + $0xaa4] ss:$8 sps:$4 sm:$0xff]  }
 0x271   :  { %8220 = vmatprep.subr.bf16.mxu0 %v10978_v61  ;;  %v11062_v61 = vld [vmem:[%s15529_s1 + $0x1ca4] ss:$8 sps:$4 sm:$0xff]  }
 0x273   :  { %7483 = vmatpush1.bf16.msra.mxu1 %v10973_v62  ;;  %v11057_v62 = vld [vmem:[%s15529_s1 + $0xaa0] ss:$8 sps:$4 sm:$0xff]  }
 0x274   :  { %8221 = vmatpush1.bf16.msra.mxu0 %v10976_v63  ;;  %7484 = vmatprep.subr.bf16.mxu1 %v10981_v0  ;;  %v11060_v63 = vld [vmem:[%s15529_s1 + $0x1ca0] ss:$8 sps:$4 sm:$0xff]   ;;  %v11065_v0 = vld [vmem:[%s15529_s1 + $0xab4] ss:$8 sps:$4 sm:$0xff]  }
 0x275   :  { %8222 = vmatprep.subr.bf16.mxu0 %v10984_v1  ;;  %v11068_v1 = vld [vmem:[%s15529_s1 + $0x1cb4] ss:$8 sps:$4 sm:$0xff]  }
 0x277   :  { %7485 = vmatpush1.bf16.msra.mxu1 %v10979_v2  ;;  %v11063_v2 = vld [vmem:[%s15529_s1 + $0xab0] ss:$8 sps:$4 sm:$0xff]  }
 0x278   :  { %8223 = vmatpush1.bf16.msra.mxu0 %v10982_v3  ;;  %7486 = vmatprep.subr.bf16.mxu1 %v10987_v4  ;;  %v11066_v3 = vld [vmem:[%s15529_s1 + $0x1cb0] ss:$8 sps:$4 sm:$0xff]   ;;  %v11071_v4 = vld [vmem:[%s15529_s1 + $0xac4] ss:$8 sps:$4 sm:$0xff]  }
 0x279   :  { %8224 = vmatprep.subr.bf16.mxu0 %v10990_v5  ;;  %v11074_v5 = vld [vmem:[%s15529_s1 + $0x1cc4] ss:$8 sps:$4 sm:$0xff]  }
 0x27b   :  { %7487 = vmatpush1.bf16.msra.mxu1 %v10985_v6  ;;  %v11069_v6 = vld [vmem:[%s15529_s1 + $0xac0] ss:$8 sps:$4 sm:$0xff]  }
 0x27c   :  { %8225 = vmatpush1.bf16.msra.mxu0 %v10988_v7  ;;  %7488 = vmatprep.subr.bf16.mxu1 %v10993_v8  ;;  %v11072_v7 = vld [vmem:[%s15529_s1 + $0x1cc0] ss:$8 sps:$4 sm:$0xff]   ;;  %v11077_v8 = vld [vmem:[%s15529_s1 + $0xad4] ss:$8 sps:$4 sm:$0xff]  }
 0x27d   :  { %8226 = vmatprep.subr.bf16.mxu0 %v10996_v9  ;;  %v11080_v9 = vld [vmem:[%s15529_s1 + $0x1cd4] ss:$8 sps:$4 sm:$0xff]  }
 0x27f   :  { %7489 = vmatpush1.bf16.msra.mxu1 %v10991_v10  ;;  %v11075_v10 = vld [vmem:[%s15529_s1 + $0xad0] ss:$8 sps:$4 sm:$0xff]  }
 0x280   :  { %8227 = vmatpush1.bf16.msra.mxu0 %v10994_v11  ;;  %7499 = vmatprep.subr.bf16.mxu1 %v10999_v12  ;;  %v11078_v11 = vld [vmem:[%s15529_s1 + $0x1cd0] ss:$8 sps:$4 sm:$0xff]   ;;  %v11083_v12 = vld [vmem:[%s15529_s1 + $0xae4] ss:$8 sps:$4 sm:$0xff]  }
 0x281   :  { %8237 = vmatprep.subr.bf16.mxu0 %v11002_v13  ;;  %v11086_v13 = vld [vmem:[%s15529_s1 + $0x1ce4] ss:$8 sps:$4 sm:$0xff]  }
 0x282   :  { %7491 = vmatmul.mubr.bf16.vlgmr.msra.gmra.mrb[0].mxu1 %v111_v18  ;;  %v11087_v18 = vld [vmem:[%s15529_s1 + $0xaf0] ss:$8 sps:$4 sm:$0xff]  }
 0x283   :  { %8229 = vmatmul.mubr.bf16.vlgmr.msra.gmra.mrb[0].mxu0 %v147_v19  ;;  %7500 = vmatpush1.bf16.msra.mxu1 %v10997_v20  ;;  %v11090_v19 = vld [vmem:[%s15529_s1 + $0x1cf0] ss:$8 sps:$4 sm:$0xff]   ;;  %v41_v20 = vld [vmem:[%s15530_s0 + $0xa0] sm:$0xff] }
 0x284   :  { %8238 = vmatpush1.bf16.msra.mxu0 %v11000_v21  ;;  %7501 = vmatprep.subr.bf16.mxu1 %v11005_v22  ;;  %v77_v21 = vld [vmem:[%s15530_s0 + $0x1c0] sm:$0xff] }
 0x285   :  { %8239 = vmatprep.subr.bf16.mxu0 %v11008_v23  ;;  %7531 = vmatprep.mubr.bf16.mxu1 %v114_v24  ;;  %v11095_v22 = vld [vmem:[%s15529_s1 + $0xb04] ss:$8 sps:$4 sm:$0xff]   ;;  %v113_v24 = vpack.c.bf16 %v41_v20, %v41_v20 }
 0x286   :  { %8269 = vmatprep.mubr.bf16.mxu0 %v150_v25  ;;  %v11098_v23 = vld [vmem:[%s15529_s1 + $0x1d04] ss:$8 sps:$4 sm:$0xff]   ;;  %v149_v25 = vpack.c.bf16 %v77_v21, %v77_v21 }
 0x287   :  { %7502 = vmatpush1.bf16.msra.mxu1 %v11003_v26  ;;  %v44_v26 = vld [vmem:[%s15530_s0 + $0xb8] sm:$0xff]  ;;  %v11179_v20 = vld [vmem:[%s15529_s1 + $0xbe4] ss:$8 sps:$4 sm:$0xff]  }
 0x288   :  { %8240 = vmatpush1.bf16.msra.mxu0 %v11006_v27  ;;  %7503 = vmatprep.subr.bf16.mxu1 %v11011_v28  ;;  %v80_v27 = vld [vmem:[%s15530_s0 + $0x1d8] sm:$0xff]  ;;  %v11093_v28 = vld [vmem:[%s15529_s1 + $0xb00] ss:$8 sps:$4 sm:$0xff]   ;;  %v11182_v21 = vld [vmem:[%s15529_s1 + $0x1de4] ss:$8 sps:$4 sm:$0xff]  }
 0x289   :  { %8241 = vmatprep.subr.bf16.mxu0 %v11014_v29  ;;  %v11096_v29 = vld [vmem:[%s15529_s1 + $0x1d00] ss:$8 sps:$4 sm:$0xff]  }
 0x28b   :  { %7504 = vmatpush1.bf16.msra.mxu1 %v11009_v30  ;;  %v11101_v30 = vld [vmem:[%s15529_s1 + $0xb14] ss:$8 sps:$4 sm:$0xff]  }
 0x28c   :  { %8242 = vmatpush1.bf16.msra.mxu0 %v11012_v31  ;;  %7505 = vmatprep.subr.bf16.mxu1 %v11017_v32  ;;  %v11104_v31 = vld [vmem:[%s15529_s1 + $0x1d14] ss:$8 sps:$4 sm:$0xff]   ;;  %v116_v32 = vpack.c.bf16 %v44_v26, %v44_v26  ;;  %v11183_v26 = vld [vmem:[%s15529_s1 + $0xbf0] ss:$8 sps:$4 sm:$0xff]  }
 0x28d   :  { %8243 = vmatprep.subr.bf16.mxu0 %v11020_v33  ;;  %v152_v33 = vpack.c.bf16 %v80_v27, %v80_v27  ;;  %v11186_v27 = vld [vmem:[%s15529_s1 + $0x1df0] ss:$8 sps:$4 sm:$0xff]  }
 0x28f   :  { %7506 = vmatpush1.bf16.msra.mxu1 %v11015_v34  ;;  %v11099_v34 = vld [vmem:[%s15529_s1 + $0xb10] ss:$8 sps:$4 sm:$0xff]  }
 0x290   :  { %8244 = vmatpush1.bf16.msra.mxu0 %v11018_v35  ;;  %7507 = vmatprep.subr.bf16.mxu1 %v11023_v36  ;;  %v11102_v35 = vld [vmem:[%s15529_s1 + $0x1d10] ss:$8 sps:$4 sm:$0xff]   ;;  %v11107_v36 = vld [vmem:[%s15529_s1 + $0xb24] ss:$8 sps:$4 sm:$0xff]  }
 0x291   :  { %8245 = vmatprep.subr.bf16.mxu0 %v11026_v37  ;;  %v11110_v37 = vld [vmem:[%s15529_s1 + $0x1d24] ss:$8 sps:$4 sm:$0xff]  }
 0x293   :  { %7508 = vmatpush1.bf16.msra.mxu1 %v11021_v38  ;;  %v11105_v38 = vld [vmem:[%s15529_s1 + $0xb20] ss:$8 sps:$4 sm:$0xff]  }
 0x294   :  { %8246 = vmatpush1.bf16.msra.mxu0 %v11024_v39  ;;  %7509 = vmatprep.subr.bf16.mxu1 %v11029_v40  ;;  %v11108_v39 = vld [vmem:[%s15529_s1 + $0x1d20] ss:$8 sps:$4 sm:$0xff]   ;;  %v11113_v40 = vld [vmem:[%s15529_s1 + $0xb34] ss:$8 sps:$4 sm:$0xff]  }
 0x295   :  { %8247 = vmatprep.subr.bf16.mxu0 %v11032_v41  ;;  %v11116_v41 = vld [vmem:[%s15529_s1 + $0x1d34] ss:$8 sps:$4 sm:$0xff]  }
 0x297   :  { %7510 = vmatpush1.bf16.msra.mxu1 %v11027_v42  ;;  %v11111_v42 = vld [vmem:[%s15529_s1 + $0xb30] ss:$8 sps:$4 sm:$0xff]  }
 0x298   :  { %8248 = vmatpush1.bf16.msra.mxu0 %v11030_v43  ;;  %7511 = vmatprep.subr.bf16.mxu1 %v11035_v44  ;;  %v11114_v43 = vld [vmem:[%s15529_s1 + $0x1d30] ss:$8 sps:$4 sm:$0xff]   ;;  %v11119_v44 = vld [vmem:[%s15529_s1 + $0xb44] ss:$8 sps:$4 sm:$0xff]  }
 0x299   :  { %8249 = vmatprep.subr.bf16.mxu0 %v11038_v45  ;;  %v11122_v45 = vld [vmem:[%s15529_s1 + $0x1d44] ss:$8 sps:$4 sm:$0xff]  }
 0x29b   :  { %7512 = vmatpush1.bf16.msra.mxu1 %v11033_v46  ;;  %v11117_v46 = vld [vmem:[%s15529_s1 + $0xb40] ss:$8 sps:$4 sm:$0xff]  }
 0x29c   :  { %8250 = vmatpush1.bf16.msra.mxu0 %v11036_v47  ;;  %7513 = vmatprep.subr.bf16.mxu1 %v11041_v48  ;;  %v11120_v47 = vld [vmem:[%s15529_s1 + $0x1d40] ss:$8 sps:$4 sm:$0xff]   ;;  %v11125_v48 = vld [vmem:[%s15529_s1 + $0xb54] ss:$8 sps:$4 sm:$0xff]  }
 0x29d   :  { %8251 = vmatprep.subr.bf16.mxu0 %v11044_v49  ;;  %v11128_v49 = vld [vmem:[%s15529_s1 + $0x1d54] ss:$8 sps:$4 sm:$0xff]  }
 0x29f   :  { %7514 = vmatpush1.bf16.msra.mxu1 %v11039_v50  ;;  %v11123_v50 = vld [vmem:[%s15529_s1 + $0xb50] ss:$8 sps:$4 sm:$0xff]  }
 0x2a0   :  { %8252 = vmatpush1.bf16.msra.mxu0 %v11042_v51  ;;  %7515 = vmatprep.subr.bf16.mxu1 %v11047_v52  ;;  %v11126_v51 = vld [vmem:[%s15529_s1 + $0x1d50] ss:$8 sps:$4 sm:$0xff]   ;;  %v11131_v52 = vld [vmem:[%s15529_s1 + $0xb64] ss:$8 sps:$4 sm:$0xff]  }
 0x2a1   :  { %8253 = vmatprep.subr.bf16.mxu0 %v11050_v53  ;;  %v11134_v53 = vld [vmem:[%s15529_s1 + $0x1d64] ss:$8 sps:$4 sm:$0xff]  }
 0x2a3   :  { %7516 = vmatpush1.bf16.msra.mxu1 %v11045_v54  ;;  %v11129_v54 = vld [vmem:[%s15529_s1 + $0xb60] ss:$8 sps:$4 sm:$0xff]  }
 0x2a4   :  { %8254 = vmatpush1.bf16.msra.mxu0 %v11048_v55  ;;  %7517 = vmatprep.subr.bf16.mxu1 %v11053_v56  ;;  %v11132_v55 = vld [vmem:[%s15529_s1 + $0x1d60] ss:$8 sps:$4 sm:$0xff]   ;;  %v11137_v56 = vld [vmem:[%s15529_s1 + $0xb74] ss:$8 sps:$4 sm:$0xff]  }
 0x2a5   :  { %8255 = vmatprep.subr.bf16.mxu0 %v11056_v57  ;;  %v11140_v57 = vld [vmem:[%s15529_s1 + $0x1d74] ss:$8 sps:$4 sm:$0xff]  }
 0x2a7   :  { %7518 = vmatpush1.bf16.msra.mxu1 %v11051_v58  ;;  %v11135_v58 = vld [vmem:[%s15529_s1 + $0xb70] ss:$8 sps:$4 sm:$0xff]  }
 0x2a8   :  { %8256 = vmatpush1.bf16.msra.mxu0 %v11054_v59  ;;  %7519 = vmatprep.subr.bf16.mxu1 %v11059_v60  ;;  %v11138_v59 = vld [vmem:[%s15529_s1 + $0x1d70] ss:$8 sps:$4 sm:$0xff]   ;;  %v11143_v60 = vld [vmem:[%s15529_s1 + $0xb84] ss:$8 sps:$4 sm:$0xff]  }
 0x2a9   :  { %8257 = vmatprep.subr.bf16.mxu0 %v11062_v61  ;;  %v11146_v61 = vld [vmem:[%s15529_s1 + $0x1d84] ss:$8 sps:$4 sm:$0xff]  }
 0x2ab   :  { %7520 = vmatpush1.bf16.msra.mxu1 %v11057_v62  ;;  %v11141_v62 = vld [vmem:[%s15529_s1 + $0xb80] ss:$8 sps:$4 sm:$0xff]  }
 0x2ac   :  { %8258 = vmatpush1.bf16.msra.mxu0 %v11060_v63  ;;  %7521 = vmatprep.subr.bf16.mxu1 %v11065_v0  ;;  %v11144_v63 = vld [vmem:[%s15529_s1 + $0x1d80] ss:$8 sps:$4 sm:$0xff]   ;;  %v11149_v0 = vld [vmem:[%s15529_s1 + $0xb94] ss:$8 sps:$4 sm:$0xff]  }
 0x2ad   :  { %8259 = vmatprep.subr.bf16.mxu0 %v11068_v1  ;;  %v11152_v1 = vld [vmem:[%s15529_s1 + $0x1d94] ss:$8 sps:$4 sm:$0xff]  }
 0x2af   :  { %7522 = vmatpush1.bf16.msra.mxu1 %v11063_v2  ;;  %v11147_v2 = vld [vmem:[%s15529_s1 + $0xb90] ss:$8 sps:$4 sm:$0xff]  }
 0x2b0   :  { %8260 = vmatpush1.bf16.msra.mxu0 %v11066_v3  ;;  %7523 = vmatprep.subr.bf16.mxu1 %v11071_v4  ;;  %v11150_v3 = vld [vmem:[%s15529_s1 + $0x1d90] ss:$8 sps:$4 sm:$0xff]   ;;  %v11155_v4 = vld [vmem:[%s15529_s1 + $0xba4] ss:$8 sps:$4 sm:$0xff]  }
 0x2b1   :  { %8261 = vmatprep.subr.bf16.mxu0 %v11074_v5  ;;  %v11158_v5 = vld [vmem:[%s15529_s1 + $0x1da4] ss:$8 sps:$4 sm:$0xff]  }
 0x2b3   :  { %7524 = vmatpush1.bf16.msra.mxu1 %v11069_v6  ;;  %v11153_v6 = vld [vmem:[%s15529_s1 + $0xba0] ss:$8 sps:$4 sm:$0xff]  }
 0x2b4   :  { %8262 = vmatpush1.bf16.msra.mxu0 %v11072_v7  ;;  %7525 = vmatprep.subr.bf16.mxu1 %v11077_v8  ;;  %v11156_v7 = vld [vmem:[%s15529_s1 + $0x1da0] ss:$8 sps:$4 sm:$0xff]   ;;  %v11161_v8 = vld [vmem:[%s15529_s1 + $0xbb4] ss:$8 sps:$4 sm:$0xff]  }
 0x2b5   :  { %8263 = vmatprep.subr.bf16.mxu0 %v11080_v9  ;;  %v11164_v9 = vld [vmem:[%s15529_s1 + $0x1db4] ss:$8 sps:$4 sm:$0xff]  }
 0x2b7   :  { %7526 = vmatpush1.bf16.msra.mxu1 %v11075_v10  ;;  %v11159_v10 = vld [vmem:[%s15529_s1 + $0xbb0] ss:$8 sps:$4 sm:$0xff]  }
 0x2b8   :  { %8264 = vmatpush1.bf16.msra.mxu0 %v11078_v11  ;;  %7527 = vmatprep.subr.bf16.mxu1 %v11083_v12  ;;  %v11162_v11 = vld [vmem:[%s15529_s1 + $0x1db0] ss:$8 sps:$4 sm:$0xff]   ;;  %v11167_v12 = vld [vmem:[%s15529_s1 + $0xbc4] ss:$8 sps:$4 sm:$0xff]  }
 0x2b9   :  { %8265 = vmatprep.subr.bf16.mxu0 %v11086_v13  ;;  %v11170_v13 = vld [vmem:[%s15529_s1 + $0x1dc4] ss:$8 sps:$4 sm:$0xff]  }
 0x2bb   :  { %7528 = vmatpush1.bf16.msra.mxu1 %v11081_v14  ;;  %v11165_v14 = vld [vmem:[%s15529_s1 + $0xbc0] ss:$8 sps:$4 sm:$0xff]  }
 0x2bc   :  { %8266 = vmatpush1.bf16.msra.mxu0 %v11084_v15  ;;  %7529 = vmatprep.subr.bf16.mxu1 %v11089_v16  ;;  %v11168_v15 = vld [vmem:[%s15529_s1 + $0x1dc0] ss:$8 sps:$4 sm:$0xff]   ;;  %v11173_v16 = vld [vmem:[%s15529_s1 + $0xbd4] ss:$8 sps:$4 sm:$0xff]  }
 0x2bd   :  { %8267 = vmatprep.subr.bf16.mxu0 %v11092_v17  ;;  %v11176_v17 = vld [vmem:[%s15529_s1 + $0x1dd4] ss:$8 sps:$4 sm:$0xff]  }
 0x2bf   :  { %7530 = vmatpush1.bf16.msra.mxu1 %v11087_v18  ;;  %v11171_v18 = vld [vmem:[%s15529_s1 + $0xbd0] ss:$8 sps:$4 sm:$0xff]  }
 0x2c0   :  { %8268 = vmatpush1.bf16.msra.mxu0 %v11090_v19  ;;  %7540 = vmatprep.subr.bf16.mxu1 %v11095_v22  ;;  %v11174_v19 = vld [vmem:[%s15529_s1 + $0x1dd0] ss:$8 sps:$4 sm:$0xff]   ;;  %v11177_v22 = vld [vmem:[%s15529_s1 + $0xbe0] ss:$8 sps:$4 sm:$0xff]  }
 0x2c1   :  { %8278 = vmatprep.subr.bf16.mxu0 %v11098_v23  ;;  %v11180_v23 = vld [vmem:[%s15529_s1 + $0x1de0] ss:$8 sps:$4 sm:$0xff]  }
 0x2c2   :  { %7532 = vmatmul.mubr.bf16.vlgmr.msra.gmra.mrb[0].mxu1 %v113_v24  ;;  %v11185_v24 = vld [vmem:[%s15529_s1 + $0xbf4] ss:$8 sps:$4 sm:$0xff]  }
 0x2c3   :  { %8270 = vmatmul.mubr.bf16.vlgmr.msra.gmra.mrb[0].mxu0 %v149_v25  ;;  %7541 = vmatpush1.bf16.msra.mxu1 %v11093_v28  ;;  %v11188_v25 = vld [vmem:[%s15529_s1 + $0x1df4] ss:$8 sps:$4 sm:$0xff]  }
 0x2c4   :  { %8279 = vmatpush1.bf16.msra.mxu0 %v11096_v29  ;;  %7542 = vmatprep.subr.bf16.mxu1 %v11101_v30  ;;  %v43_v28 = vld [vmem:[%s15530_s0 + $0xb0] sm:$0xff]  ;;  %v11191_v30 = vld [vmem:[%s15529_s1 + $0xc04] ss:$8 sps:$4 sm:$0xff]  }
 0x2c5   :  { %8280 = vmatprep.subr.bf16.mxu0 %v11104_v31  ;;  %7572 = vmatprep.mubr.bf16.mxu1 %v116_v32  ;;  %v79_v29 = vld [vmem:[%s15530_s0 + $0x1d0] sm:$0xff]  ;;  %v11194_v31 = vld [vmem:[%s15529_s1 + $0x1e04] ss:$8 sps:$4 sm:$0xff]   ;;  %v115_v32 = vpack.c.bf16 %v43_v28, %v43_v28 }
 0x2c6   :  { %8310 = vmatprep.mubr.bf16.mxu0 %v152_v33  ;;  %v151_v33 = vpack.c.bf16 %v79_v29, %v79_v29  ;;  %v11275_v28 = vld [vmem:[%s15529_s1 + $0xce4] ss:$8 sps:$4 sm:$0xff]  }
 0x2c7   :  { %7543 = vmatpush1.bf16.msra.mxu1 %v11099_v34  ;;  %v46_v34 = vld [vmem:[%s15530_s0 + $0xc8] sm:$0xff] }
 0x2c8   :  { %8281 = vmatpush1.bf16.msra.mxu0 %v11102_v35  ;;  %7544 = vmatprep.subr.bf16.mxu1 %v11107_v36  ;;  %v82_v35 = vld [vmem:[%s15530_s0 + $0x1e8] sm:$0xff] }
 0x2c9   :  { %8282 = vmatprep.subr.bf16.mxu0 %v11110_v37  ;;  %v11189_v36 = vld [vmem:[%s15529_s1 + $0xc00] ss:$8 sps:$4 sm:$0xff]   ;;  %v11278_v29 = vld [vmem:[%s15529_s1 + $0x1ee4] ss:$8 sps:$4 sm:$0xff]  }
 0x2ca   :  { %v11192_v37 = vld [vmem:[%s15529_s1 + $0x1e00] ss:$8 sps:$4 sm:$0xff]  }
 0x2cb   :  { %7545 = vmatpush1.bf16.msra.mxu1 %v11105_v38  ;;  %v11197_v38 = vld [vmem:[%s15529_s1 + $0xc14] ss:$8 sps:$4 sm:$0xff]  }
 0x2cc   :  { %8283 = vmatpush1.bf16.msra.mxu0 %v11108_v39  ;;  %7546 = vmatprep.subr.bf16.mxu1 %v11113_v40  ;;  %v11200_v39 = vld [vmem:[%s15529_s1 + $0x1e14] ss:$8 sps:$4 sm:$0xff]   ;;  %v118_v40 = vpack.c.bf16 %v46_v34, %v46_v34  ;;  %v11279_v34 = vld [vmem:[%s15529_s1 + $0xcf0] ss:$8 sps:$4 sm:$0xff]  }
 0x2cd   :  { %8284 = vmatprep.subr.bf16.mxu0 %v11116_v41  ;;  %v154_v41 = vpack.c.bf16 %v82_v35, %v82_v35  ;;  %v11282_v35 = vld [vmem:[%s15529_s1 + $0x1ef0] ss:$8 sps:$4 sm:$0xff]  }
 0x2cf   :  { %7547 = vmatpush1.bf16.msra.mxu1 %v11111_v42  ;;  %v11195_v42 = vld [vmem:[%s15529_s1 + $0xc10] ss:$8 sps:$4 sm:$0xff]  }
 0x2d0   :  { %8285 = vmatpush1.bf16.msra.mxu0 %v11114_v43  ;;  %7548 = vmatprep.subr.bf16.mxu1 %v11119_v44  ;;  %v11198_v43 = vld [vmem:[%s15529_s1 + $0x1e10] ss:$8 sps:$4 sm:$0xff]   ;;  %v11203_v44 = vld [vmem:[%s15529_s1 + $0xc24] ss:$8 sps:$4 sm:$0xff]  }
 0x2d1   :  { %8286 = vmatprep.subr.bf16.mxu0 %v11122_v45  ;;  %v11206_v45 = vld [vmem:[%s15529_s1 + $0x1e24] ss:$8 sps:$4 sm:$0xff]  }
 0x2d3   :  { %7549 = vmatpush1.bf16.msra.mxu1 %v11117_v46  ;;  %v11201_v46 = vld [vmem:[%s15529_s1 + $0xc20] ss:$8 sps:$4 sm:$0xff]  }
 0x2d4   :  { %8287 = vmatpush1.bf16.msra.mxu0 %v11120_v47  ;;  %7550 = vmatprep.subr.bf16.mxu1 %v11125_v48  ;;  %v11204_v47 = vld [vmem:[%s15529_s1 + $0x1e20] ss:$8 sps:$4 sm:$0xff]   ;;  %v11209_v48 = vld [vmem:[%s15529_s1 + $0xc34] ss:$8 sps:$4 sm:$0xff]  }
 0x2d5   :  { %8288 = vmatprep.subr.bf16.mxu0 %v11128_v49  ;;  %v11212_v49 = vld [vmem:[%s15529_s1 + $0x1e34] ss:$8 sps:$4 sm:$0xff]  }
 0x2d7   :  { %7551 = vmatpush1.bf16.msra.mxu1 %v11123_v50  ;;  %v11207_v50 = vld [vmem:[%s15529_s1 + $0xc30] ss:$8 sps:$4 sm:$0xff]  }
 0x2d8   :  { %8289 = vmatpush1.bf16.msra.mxu0 %v11126_v51  ;;  %7552 = vmatprep.subr.bf16.mxu1 %v11131_v52  ;;  %v11210_v51 = vld [vmem:[%s15529_s1 + $0x1e30] ss:$8 sps:$4 sm:$0xff]   ;;  %v11215_v52 = vld [vmem:[%s15529_s1 + $0xc44] ss:$8 sps:$4 sm:$0xff]  }
 0x2d9   :  { %8290 = vmatprep.subr.bf16.mxu0 %v11134_v53  ;;  %v11218_v53 = vld [vmem:[%s15529_s1 + $0x1e44] ss:$8 sps:$4 sm:$0xff]  }
 0x2db   :  { %7553 = vmatpush1.bf16.msra.mxu1 %v11129_v54  ;;  %v11213_v54 = vld [vmem:[%s15529_s1 + $0xc40] ss:$8 sps:$4 sm:$0xff]  }
 0x2dc   :  { %8291 = vmatpush1.bf16.msra.mxu0 %v11132_v55  ;;  %7554 = vmatprep.subr.bf16.mxu1 %v11137_v56  ;;  %v11216_v55 = vld [vmem:[%s15529_s1 + $0x1e40] ss:$8 sps:$4 sm:$0xff]   ;;  %v11221_v56 = vld [vmem:[%s15529_s1 + $0xc54] ss:$8 sps:$4 sm:$0xff]  }
 0x2dd   :  { %8292 = vmatprep.subr.bf16.mxu0 %v11140_v57  ;;  %v11224_v57 = vld [vmem:[%s15529_s1 + $0x1e54] ss:$8 sps:$4 sm:$0xff]  }
 0x2df   :  { %7555 = vmatpush1.bf16.msra.mxu1 %v11135_v58  ;;  %v11219_v58 = vld [vmem:[%s15529_s1 + $0xc50] ss:$8 sps:$4 sm:$0xff]  }
 0x2e0   :  { %8293 = vmatpush1.bf16.msra.mxu0 %v11138_v59  ;;  %7556 = vmatprep.subr.bf16.mxu1 %v11143_v60  ;;  %v11222_v59 = vld [vmem:[%s15529_s1 + $0x1e50] ss:$8 sps:$4 sm:$0xff]   ;;  %v11227_v60 = vld [vmem:[%s15529_s1 + $0xc64] ss:$8 sps:$4 sm:$0xff]  }
 0x2e1   :  { %8294 = vmatprep.subr.bf16.mxu0 %v11146_v61  ;;  %v11230_v61 = vld [vmem:[%s15529_s1 + $0x1e64] ss:$8 sps:$4 sm:$0xff]  }
 0x2e3   :  { %7557 = vmatpush1.bf16.msra.mxu1 %v11141_v62  ;;  %v11225_v62 = vld [vmem:[%s15529_s1 + $0xc60] ss:$8 sps:$4 sm:$0xff]  }
 0x2e4   :  { %8295 = vmatpush1.bf16.msra.mxu0 %v11144_v63  ;;  %7558 = vmatprep.subr.bf16.mxu1 %v11149_v0  ;;  %v11228_v63 = vld [vmem:[%s15529_s1 + $0x1e60] ss:$8 sps:$4 sm:$0xff]   ;;  %v11233_v0 = vld [vmem:[%s15529_s1 + $0xc74] ss:$8 sps:$4 sm:$0xff]  }
 0x2e5   :  { %8296 = vmatprep.subr.bf16.mxu0 %v11152_v1  ;;  %v11236_v1 = vld [vmem:[%s15529_s1 + $0x1e74] ss:$8 sps:$4 sm:$0xff]  }
 0x2e7   :  { %7559 = vmatpush1.bf16.msra.mxu1 %v11147_v2  ;;  %v11231_v2 = vld [vmem:[%s15529_s1 + $0xc70] ss:$8 sps:$4 sm:$0xff]  }
 0x2e8   :  { %8297 = vmatpush1.bf16.msra.mxu0 %v11150_v3  ;;  %7560 = vmatprep.subr.bf16.mxu1 %v11155_v4  ;;  %v11234_v3 = vld [vmem:[%s15529_s1 + $0x1e70] ss:$8 sps:$4 sm:$0xff]   ;;  %v11239_v4 = vld [vmem:[%s15529_s1 + $0xc84] ss:$8 sps:$4 sm:$0xff]  }
 0x2e9   :  { %8298 = vmatprep.subr.bf16.mxu0 %v11158_v5  ;;  %v11242_v5 = vld [vmem:[%s15529_s1 + $0x1e84] ss:$8 sps:$4 sm:$0xff]  }
 0x2eb   :  { %7561 = vmatpush1.bf16.msra.mxu1 %v11153_v6  ;;  %v11237_v6 = vld [vmem:[%s15529_s1 + $0xc80] ss:$8 sps:$4 sm:$0xff]  }
 0x2ec   :  { %8299 = vmatpush1.bf16.msra.mxu0 %v11156_v7  ;;  %7562 = vmatprep.subr.bf16.mxu1 %v11161_v8  ;;  %v11240_v7 = vld [vmem:[%s15529_s1 + $0x1e80] ss:$8 sps:$4 sm:$0xff]   ;;  %v11245_v8 = vld [vmem:[%s15529_s1 + $0xc94] ss:$8 sps:$4 sm:$0xff]  }
 0x2ed   :  { %8300 = vmatprep.subr.bf16.mxu0 %v11164_v9  ;;  %v11248_v9 = vld [vmem:[%s15529_s1 + $0x1e94] ss:$8 sps:$4 sm:$0xff]  }
 0x2ef   :  { %7563 = vmatpush1.bf16.msra.mxu1 %v11159_v10  ;;  %v11243_v10 = vld [vmem:[%s15529_s1 + $0xc90] ss:$8 sps:$4 sm:$0xff]  }
 0x2f0   :  { %8301 = vmatpush1.bf16.msra.mxu0 %v11162_v11  ;;  %7564 = vmatprep.subr.bf16.mxu1 %v11167_v12  ;;  %v11246_v11 = vld [vmem:[%s15529_s1 + $0x1e90] ss:$8 sps:$4 sm:$0xff]   ;;  %v11251_v12 = vld [vmem:[%s15529_s1 + $0xca4] ss:$8 sps:$4 sm:$0xff]  }
 0x2f1   :  { %8302 = vmatprep.subr.bf16.mxu0 %v11170_v13  ;;  %v11254_v13 = vld [vmem:[%s15529_s1 + $0x1ea4] ss:$8 sps:$4 sm:$0xff]  }
 0x2f3   :  { %7565 = vmatpush1.bf16.msra.mxu1 %v11165_v14  ;;  %v11249_v14 = vld [vmem:[%s15529_s1 + $0xca0] ss:$8 sps:$4 sm:$0xff]  }
 0x2f4   :  { %8303 = vmatpush1.bf16.msra.mxu0 %v11168_v15  ;;  %7566 = vmatprep.subr.bf16.mxu1 %v11173_v16  ;;  %v11252_v15 = vld [vmem:[%s15529_s1 + $0x1ea0] ss:$8 sps:$4 sm:$0xff]   ;;  %v11257_v16 = vld [vmem:[%s15529_s1 + $0xcb4] ss:$8 sps:$4 sm:$0xff]  }
 0x2f5   :  { %8304 = vmatprep.subr.bf16.mxu0 %v11176_v17  ;;  %v11260_v17 = vld [vmem:[%s15529_s1 + $0x1eb4] ss:$8 sps:$4 sm:$0xff]  }
 0x2f7   :  { %7567 = vmatpush1.bf16.msra.mxu1 %v11171_v18  ;;  %v11255_v18 = vld [vmem:[%s15529_s1 + $0xcb0] ss:$8 sps:$4 sm:$0xff]  }
 0x2f8   :  { %8305 = vmatpush1.bf16.msra.mxu0 %v11174_v19  ;;  %7568 = vmatprep.subr.bf16.mxu1 %v11179_v20  ;;  %v11258_v19 = vld [vmem:[%s15529_s1 + $0x1eb0] ss:$8 sps:$4 sm:$0xff]   ;;  %v11263_v20 = vld [vmem:[%s15529_s1 + $0xcc4] ss:$8 sps:$4 sm:$0xff]  }
 0x2f9   :  { %8306 = vmatprep.subr.bf16.mxu0 %v11182_v21  ;;  %v11266_v21 = vld [vmem:[%s15529_s1 + $0x1ec4] ss:$8 sps:$4 sm:$0xff]  }
 0x2fb   :  { %7569 = vmatpush1.bf16.msra.mxu1 %v11177_v22  ;;  %v11261_v22 = vld [vmem:[%s15529_s1 + $0xcc0] ss:$8 sps:$4 sm:$0xff]  }
 0x2fc   :  { %8307 = vmatpush1.bf16.msra.mxu0 %v11180_v23  ;;  %7570 = vmatprep.subr.bf16.mxu1 %v11185_v24  ;;  %v11264_v23 = vld [vmem:[%s15529_s1 + $0x1ec0] ss:$8 sps:$4 sm:$0xff]   ;;  %v11269_v24 = vld [vmem:[%s15529_s1 + $0xcd4] ss:$8 sps:$4 sm:$0xff]  }
 0x2fd   :  { %8308 = vmatprep.subr.bf16.mxu0 %v11188_v25  ;;  %v11272_v25 = vld [vmem:[%s15529_s1 + $0x1ed4] ss:$8 sps:$4 sm:$0xff]  }
 0x2ff   :  { %7571 = vmatpush1.bf16.msra.mxu1 %v11183_v26  ;;  %v11267_v26 = vld [vmem:[%s15529_s1 + $0xcd0] ss:$8 sps:$4 sm:$0xff]  }
 0x300   :  { %8309 = vmatpush1.bf16.msra.mxu0 %v11186_v27  ;;  %7581 = vmatprep.subr.bf16.mxu1 %v11191_v30  ;;  %v11270_v27 = vld [vmem:[%s15529_s1 + $0x1ed0] ss:$8 sps:$4 sm:$0xff]   ;;  %v11273_v30 = vld [vmem:[%s15529_s1 + $0xce0] ss:$8 sps:$4 sm:$0xff]  }
 0x301   :  { %8319 = vmatprep.subr.bf16.mxu0 %v11194_v31  ;;  %v11276_v31 = vld [vmem:[%s15529_s1 + $0x1ee0] ss:$8 sps:$4 sm:$0xff]  }
 0x302   :  { %7573 = vmatmul.mubr.bf16.vlgmr.msra.gmra.mrb[0].mxu1 %v115_v32  ;;  %v11281_v32 = vld [vmem:[%s15529_s1 + $0xcf4] ss:$8 sps:$4 sm:$0xff]  }
 0x303   :  { %8311 = vmatmul.mubr.bf16.vlgmr.msra.gmra.mrb[0].mxu0 %v151_v33  ;;  %7582 = vmatpush1.bf16.msra.mxu1 %v11189_v36  ;;  %v11284_v33 = vld [vmem:[%s15529_s1 + $0x1ef4] ss:$8 sps:$4 sm:$0xff]   ;;  %v45_v36 = vld [vmem:[%s15530_s0 + $0xc0] sm:$0xff] }
 0x304   :  { %8320 = vmatpush1.bf16.msra.mxu0 %v11192_v37  ;;  %7583 = vmatprep.subr.bf16.mxu1 %v11197_v38  ;;  %v81_v37 = vld [vmem:[%s15530_s0 + $0x1e0] sm:$0xff] }
 0x305   :  { %8321 = vmatprep.subr.bf16.mxu0 %v11200_v39  ;;  %7613 = vmatprep.mubr.bf16.mxu1 %v118_v40  ;;  %v11287_v38 = vld [vmem:[%s15529_s1 + $0xd04] ss:$8 sps:$4 sm:$0xff]   ;;  %v117_v40 = vpack.c.bf16 %v45_v36, %v45_v36 }
 0x306   :  { %8351 = vmatprep.mubr.bf16.mxu0 %v154_v41  ;;  %v11290_v39 = vld [vmem:[%s15529_s1 + $0x1f04] ss:$8 sps:$4 sm:$0xff]   ;;  %v153_v41 = vpack.c.bf16 %v81_v37, %v81_v37 }
 0x307   :  { %7584 = vmatpush1.bf16.msra.mxu1 %v11195_v42  ;;  %v48_v42 = vld [vmem:[%s15530_s0 + $0xd8] sm:$0xff]  ;;  %v11371_v36 = vld [vmem:[%s15529_s1 + $0xde4] ss:$8 sps:$4 sm:$0xff]  }
 0x308   :  { %8322 = vmatpush1.bf16.msra.mxu0 %v11198_v43  ;;  %7585 = vmatprep.subr.bf16.mxu1 %v11203_v44  ;;  %v84_v43 = vld [vmem:[%s15530_s0 + $0x1f8] sm:$0xff]  ;;  %v11285_v44 = vld [vmem:[%s15529_s1 + $0xd00] ss:$8 sps:$4 sm:$0xff]   ;;  %v11374_v37 = vld [vmem:[%s15529_s1 + $0x1fe4] ss:$8 sps:$4 sm:$0xff]  }
 0x309   :  { %8323 = vmatprep.subr.bf16.mxu0 %v11206_v45  ;;  %v11288_v45 = vld [vmem:[%s15529_s1 + $0x1f00] ss:$8 sps:$4 sm:$0xff]  }
 0x30b   :  { %7586 = vmatpush1.bf16.msra.mxu1 %v11201_v46  ;;  %v11293_v46 = vld [vmem:[%s15529_s1 + $0xd14] ss:$8 sps:$4 sm:$0xff]  }
 0x30c   :  { %8324 = vmatpush1.bf16.msra.mxu0 %v11204_v47  ;;  %7587 = vmatprep.subr.bf16.mxu1 %v11209_v48  ;;  %v11296_v47 = vld [vmem:[%s15529_s1 + $0x1f14] ss:$8 sps:$4 sm:$0xff]   ;;  %v120_v48 = vpack.c.bf16 %v48_v42, %v48_v42  ;;  %v11375_v42 = vld [vmem:[%s15529_s1 + $0xdf0] ss:$8 sps:$4 sm:$0xff]  }
 0x30d   :  { %8325 = vmatprep.subr.bf16.mxu0 %v11212_v49  ;;  %v156_v49 = vpack.c.bf16 %v84_v43, %v84_v43  ;;  %v11378_v43 = vld [vmem:[%s15529_s1 + $0x1ff0] ss:$8 sps:$4 sm:$0xff]  }
 0x30f   :  { %7588 = vmatpush1.bf16.msra.mxu1 %v11207_v50  ;;  %v11291_v50 = vld [vmem:[%s15529_s1 + $0xd10] ss:$8 sps:$4 sm:$0xff]  }
 0x310   :  { %8326 = vmatpush1.bf16.msra.mxu0 %v11210_v51  ;;  %7589 = vmatprep.subr.bf16.mxu1 %v11215_v52  ;;  %v11294_v51 = vld [vmem:[%s15529_s1 + $0x1f10] ss:$8 sps:$4 sm:$0xff]   ;;  %v11299_v52 = vld [vmem:[%s15529_s1 + $0xd24] ss:$8 sps:$4 sm:$0xff]  }
 0x311   :  { %8327 = vmatprep.subr.bf16.mxu0 %v11218_v53  ;;  %v11302_v53 = vld [vmem:[%s15529_s1 + $0x1f24] ss:$8 sps:$4 sm:$0xff]  }
 0x313   :  { %7590 = vmatpush1.bf16.msra.mxu1 %v11213_v54  ;;  %v11297_v54 = vld [vmem:[%s15529_s1 + $0xd20] ss:$8 sps:$4 sm:$0xff]  }
 0x314   :  { %8328 = vmatpush1.bf16.msra.mxu0 %v11216_v55  ;;  %7591 = vmatprep.subr.bf16.mxu1 %v11221_v56  ;;  %v11300_v55 = vld [vmem:[%s15529_s1 + $0x1f20] ss:$8 sps:$4 sm:$0xff]   ;;  %v11305_v56 = vld [vmem:[%s15529_s1 + $0xd34] ss:$8 sps:$4 sm:$0xff]  }
 0x315   :  { %8329 = vmatprep.subr.bf16.mxu0 %v11224_v57  ;;  %v11308_v57 = vld [vmem:[%s15529_s1 + $0x1f34] ss:$8 sps:$4 sm:$0xff]  }
 0x317   :  { %7592 = vmatpush1.bf16.msra.mxu1 %v11219_v58  ;;  %v11303_v58 = vld [vmem:[%s15529_s1 + $0xd30] ss:$8 sps:$4 sm:$0xff]  }
 0x318   :  { %8330 = vmatpush1.bf16.msra.mxu0 %v11222_v59  ;;  %7593 = vmatprep.subr.bf16.mxu1 %v11227_v60  ;;  %v11306_v59 = vld [vmem:[%s15529_s1 + $0x1f30] ss:$8 sps:$4 sm:$0xff]   ;;  %v11311_v60 = vld [vmem:[%s15529_s1 + $0xd44] ss:$8 sps:$4 sm:$0xff]  }
 0x319   :  { %8331 = vmatprep.subr.bf16.mxu0 %v11230_v61  ;;  %v11314_v61 = vld [vmem:[%s15529_s1 + $0x1f44] ss:$8 sps:$4 sm:$0xff]  }
 0x31b   :  { %7594 = vmatpush1.bf16.msra.mxu1 %v11225_v62  ;;  %v11309_v62 = vld [vmem:[%s15529_s1 + $0xd40] ss:$8 sps:$4 sm:$0xff]  }
 0x31c   :  { %8332 = vmatpush1.bf16.msra.mxu0 %v11228_v63  ;;  %7595 = vmatprep.subr.bf16.mxu1 %v11233_v0  ;;  %v11312_v63 = vld [vmem:[%s15529_s1 + $0x1f40] ss:$8 sps:$4 sm:$0xff]   ;;  %v11317_v0 = vld [vmem:[%s15529_s1 + $0xd54] ss:$8 sps:$4 sm:$0xff]  }
 0x31d   :  { %8333 = vmatprep.subr.bf16.mxu0 %v11236_v1  ;;  %v11320_v1 = vld [vmem:[%s15529_s1 + $0x1f54] ss:$8 sps:$4 sm:$0xff]  }
 0x31f   :  { %7596 = vmatpush1.bf16.msra.mxu1 %v11231_v2  ;;  %v11315_v2 = vld [vmem:[%s15529_s1 + $0xd50] ss:$8 sps:$4 sm:$0xff]  }
 0x320   :  { %8334 = vmatpush1.bf16.msra.mxu0 %v11234_v3  ;;  %7597 = vmatprep.subr.bf16.mxu1 %v11239_v4  ;;  %v11318_v3 = vld [vmem:[%s15529_s1 + $0x1f50] ss:$8 sps:$4 sm:$0xff]   ;;  %v11323_v4 = vld [vmem:[%s15529_s1 + $0xd64] ss:$8 sps:$4 sm:$0xff]  }
 0x321   :  { %8335 = vmatprep.subr.bf16.mxu0 %v11242_v5  ;;  %v11326_v5 = vld [vmem:[%s15529_s1 + $0x1f64] ss:$8 sps:$4 sm:$0xff]  }
 0x323   :  { %7598 = vmatpush1.bf16.msra.mxu1 %v11237_v6  ;;  %v11321_v6 = vld [vmem:[%s15529_s1 + $0xd60] ss:$8 sps:$4 sm:$0xff]  }
 0x324   :  { %8336 = vmatpush1.bf16.msra.mxu0 %v11240_v7  ;;  %7599 = vmatprep.subr.bf16.mxu1 %v11245_v8  ;;  %v11324_v7 = vld [vmem:[%s15529_s1 + $0x1f60] ss:$8 sps:$4 sm:$0xff]   ;;  %v11329_v8 = vld [vmem:[%s15529_s1 + $0xd74] ss:$8 sps:$4 sm:$0xff]  }
 0x325   :  { %8337 = vmatprep.subr.bf16.mxu0 %v11248_v9  ;;  %v11332_v9 = vld [vmem:[%s15529_s1 + $0x1f74] ss:$8 sps:$4 sm:$0xff]  }
 0x327   :  { %7600 = vmatpush1.bf16.msra.mxu1 %v11243_v10  ;;  %v11327_v10 = vld [vmem:[%s15529_s1 + $0xd70] ss:$8 sps:$4 sm:$0xff]  }
 0x328   :  { %8338 = vmatpush1.bf16.msra.mxu0 %v11246_v11  ;;  %7601 = vmatprep.subr.bf16.mxu1 %v11251_v12  ;;  %v11330_v11 = vld [vmem:[%s15529_s1 + $0x1f70] ss:$8 sps:$4 sm:$0xff]   ;;  %v11335_v12 = vld [vmem:[%s15529_s1 + $0xd84] ss:$8 sps:$4 sm:$0xff]  }
 0x329   :  { %8339 = vmatprep.subr.bf16.mxu0 %v11254_v13  ;;  %v11338_v13 = vld [vmem:[%s15529_s1 + $0x1f84] ss:$8 sps:$4 sm:$0xff]  }
 0x32b   :  { %7602 = vmatpush1.bf16.msra.mxu1 %v11249_v14  ;;  %v11333_v14 = vld [vmem:[%s15529_s1 + $0xd80] ss:$8 sps:$4 sm:$0xff]  }
 0x32c   :  { %8340 = vmatpush1.bf16.msra.mxu0 %v11252_v15  ;;  %7603 = vmatprep.subr.bf16.mxu1 %v11257_v16  ;;  %v11336_v15 = vld [vmem:[%s15529_s1 + $0x1f80] ss:$8 sps:$4 sm:$0xff]   ;;  %v11341_v16 = vld [vmem:[%s15529_s1 + $0xd94] ss:$8 sps:$4 sm:$0xff]  }
 0x32d   :  { %8341 = vmatprep.subr.bf16.mxu0 %v11260_v17  ;;  %v11344_v17 = vld [vmem:[%s15529_s1 + $0x1f94] ss:$8 sps:$4 sm:$0xff]  }
 0x32f   :  { %7604 = vmatpush1.bf16.msra.mxu1 %v11255_v18  ;;  %v11339_v18 = vld [vmem:[%s15529_s1 + $0xd90] ss:$8 sps:$4 sm:$0xff]  }
 0x330   :  { %8342 = vmatpush1.bf16.msra.mxu0 %v11258_v19  ;;  %7605 = vmatprep.subr.bf16.mxu1 %v11263_v20  ;;  %v11342_v19 = vld [vmem:[%s15529_s1 + $0x1f90] ss:$8 sps:$4 sm:$0xff]   ;;  %v11347_v20 = vld [vmem:[%s15529_s1 + $0xda4] ss:$8 sps:$4 sm:$0xff]  }
 0x331   :  { %8343 = vmatprep.subr.bf16.mxu0 %v11266_v21  ;;  %v11350_v21 = vld [vmem:[%s15529_s1 + $0x1fa4] ss:$8 sps:$4 sm:$0xff]  }
 0x333   :  { %7606 = vmatpush1.bf16.msra.mxu1 %v11261_v22  ;;  %v11345_v22 = vld [vmem:[%s15529_s1 + $0xda0] ss:$8 sps:$4 sm:$0xff]  }
 0x334   :  { %8344 = vmatpush1.bf16.msra.mxu0 %v11264_v23  ;;  %7607 = vmatprep.subr.bf16.mxu1 %v11269_v24  ;;  %v11348_v23 = vld [vmem:[%s15529_s1 + $0x1fa0] ss:$8 sps:$4 sm:$0xff]   ;;  %v11353_v24 = vld [vmem:[%s15529_s1 + $0xdb4] ss:$8 sps:$4 sm:$0xff]  }
 0x335   :  { %8345 = vmatprep.subr.bf16.mxu0 %v11272_v25  ;;  %v11356_v25 = vld [vmem:[%s15529_s1 + $0x1fb4] ss:$8 sps:$4 sm:$0xff]  }
 0x337   :  { %7608 = vmatpush1.bf16.msra.mxu1 %v11267_v26  ;;  %v11351_v26 = vld [vmem:[%s15529_s1 + $0xdb0] ss:$8 sps:$4 sm:$0xff]  }
 0x338   :  { %8346 = vmatpush1.bf16.msra.mxu0 %v11270_v27  ;;  %7609 = vmatprep.subr.bf16.mxu1 %v11275_v28  ;;  %v11354_v27 = vld [vmem:[%s15529_s1 + $0x1fb0] ss:$8 sps:$4 sm:$0xff]   ;;  %v11359_v28 = vld [vmem:[%s15529_s1 + $0xdc4] ss:$8 sps:$4 sm:$0xff]  }
 0x339   :  { %8347 = vmatprep.subr.bf16.mxu0 %v11278_v29  ;;  %v11362_v29 = vld [vmem:[%s15529_s1 + $0x1fc4] ss:$8 sps:$4 sm:$0xff]  }
 0x33b   :  { %7610 = vmatpush1.bf16.msra.mxu1 %v11273_v30  ;;  %v11357_v30 = vld [vmem:[%s15529_s1 + $0xdc0] ss:$8 sps:$4 sm:$0xff]  }
 0x33c   :  { %8348 = vmatpush1.bf16.msra.mxu0 %v11276_v31  ;;  %7611 = vmatprep.subr.bf16.mxu1 %v11281_v32  ;;  %v11360_v31 = vld [vmem:[%s15529_s1 + $0x1fc0] ss:$8 sps:$4 sm:$0xff]   ;;  %v11365_v32 = vld [vmem:[%s15529_s1 + $0xdd4] ss:$8 sps:$4 sm:$0xff]  }
 0x33d   :  { %8349 = vmatprep.subr.bf16.mxu0 %v11284_v33  ;;  %v11368_v33 = vld [vmem:[%s15529_s1 + $0x1fd4] ss:$8 sps:$4 sm:$0xff]  }
 0x33f   :  { %7612 = vmatpush1.bf16.msra.mxu1 %v11279_v34  ;;  %v11363_v34 = vld [vmem:[%s15529_s1 + $0xdd0] ss:$8 sps:$4 sm:$0xff]  }
 0x340   :  { %8350 = vmatpush1.bf16.msra.mxu0 %v11282_v35  ;;  %7622 = vmatprep.subr.bf16.mxu1 %v11287_v38  ;;  %v11366_v35 = vld [vmem:[%s15529_s1 + $0x1fd0] ss:$8 sps:$4 sm:$0xff]   ;;  %v11369_v38 = vld [vmem:[%s15529_s1 + $0xde0] ss:$8 sps:$4 sm:$0xff]  }
 0x341   :  { %8360 = vmatprep.subr.bf16.mxu0 %v11290_v39  ;;  %v11372_v39 = vld [vmem:[%s15529_s1 + $0x1fe0] ss:$8 sps:$4 sm:$0xff]  }
 0x342   :  { %7614 = vmatmul.mubr.bf16.vlgmr.msra.gmra.mrb[0].mxu1 %v117_v40  ;;  %v11377_v40 = vld [vmem:[%s15529_s1 + $0xdf4] ss:$8 sps:$4 sm:$0xff]  }
 0x343   :  { %8352 = vmatmul.mubr.bf16.vlgmr.msra.gmra.mrb[0].mxu0 %v153_v41  ;;  %7623 = vmatpush1.bf16.msra.mxu1 %v11285_v44  ;;  %v11380_v41 = vld [vmem:[%s15529_s1 + $0x1ff4] ss:$8 sps:$4 sm:$0xff]  }
 0x344   :  { %8361 = vmatpush1.bf16.msra.mxu0 %v11288_v45  ;;  %7624 = vmatprep.subr.bf16.mxu1 %v11293_v46  ;;  %v47_v44 = vld [vmem:[%s15530_s0 + $0xd0] sm:$0xff]  ;;  %v11383_v46 = vld [vmem:[%s15529_s1 + $0xe04] ss:$8 sps:$4 sm:$0xff]  }
 0x345   :  { %8362 = vmatprep.subr.bf16.mxu0 %v11296_v47  ;;  %7654 = vmatprep.mubr.bf16.mxu1 %v120_v48  ;;  %v83_v45 = vld [vmem:[%s15530_s0 + $0x1f0] sm:$0xff]  ;;  %v11386_v47 = vld [vmem:[%s15529_s1 + $0x2004] ss:$8 sps:$4 sm:$0xff]   ;;  %v119_v48 = vpack.c.bf16 %v47_v44, %v47_v44 }
 0x346   :  { %8392 = vmatprep.mubr.bf16.mxu0 %v156_v49  ;;  %v155_v49 = vpack.c.bf16 %v83_v45, %v83_v45  ;;  %v11467_v44 = vld [vmem:[%s15529_s1 + $0xee4] ss:$8 sps:$4 sm:$0xff]  }
 0x347   :  { %7625 = vmatpush1.bf16.msra.mxu1 %v11291_v50  ;;  %v50_v50 = vld [vmem:[%s15530_s0 + $0xe8] sm:$0xff] }
 0x348   :  { %8363 = vmatpush1.bf16.msra.mxu0 %v11294_v51  ;;  %7626 = vmatprep.subr.bf16.mxu1 %v11299_v52  ;;  %v86_v51 = vld [vmem:[%s15530_s0 + $0x208] sm:$0xff] }
 0x349   :  { %8364 = vmatprep.subr.bf16.mxu0 %v11302_v53  ;;  %v11381_v52 = vld [vmem:[%s15529_s1 + $0xe00] ss:$8 sps:$4 sm:$0xff]   ;;  %v11470_v45 = vld [vmem:[%s15529_s1 + $0x20e4] ss:$8 sps:$4 sm:$0xff]  }
 0x34a   :  { %v11384_v53 = vld [vmem:[%s15529_s1 + $0x2000] ss:$8 sps:$4 sm:$0xff]  }
 0x34b   :  { %7627 = vmatpush1.bf16.msra.mxu1 %v11297_v54  ;;  %v11389_v54 = vld [vmem:[%s15529_s1 + $0xe14] ss:$8 sps:$4 sm:$0xff]  }
 0x34c   :  { %8365 = vmatpush1.bf16.msra.mxu0 %v11300_v55  ;;  %7628 = vmatprep.subr.bf16.mxu1 %v11305_v56  ;;  %v11392_v55 = vld [vmem:[%s15529_s1 + $0x2014] ss:$8 sps:$4 sm:$0xff]   ;;  %v122_v56 = vpack.c.bf16 %v50_v50, %v50_v50  ;;  %v11471_v50 = vld [vmem:[%s15529_s1 + $0xef0] ss:$8 sps:$4 sm:$0xff]  }
 0x34d   :  { %8366 = vmatprep.subr.bf16.mxu0 %v11308_v57  ;;  %v158_v57 = vpack.c.bf16 %v86_v51, %v86_v51  ;;  %v11474_v51 = vld [vmem:[%s15529_s1 + $0x20f0] ss:$8 sps:$4 sm:$0xff]  }
 0x34f   :  { %7629 = vmatpush1.bf16.msra.mxu1 %v11303_v58  ;;  %v11387_v58 = vld [vmem:[%s15529_s1 + $0xe10] ss:$8 sps:$4 sm:$0xff]  }
 0x350   :  { %8367 = vmatpush1.bf16.msra.mxu0 %v11306_v59  ;;  %7630 = vmatprep.subr.bf16.mxu1 %v11311_v60  ;;  %v11390_v59 = vld [vmem:[%s15529_s1 + $0x2010] ss:$8 sps:$4 sm:$0xff]   ;;  %v11395_v60 = vld [vmem:[%s15529_s1 + $0xe24] ss:$8 sps:$4 sm:$0xff]  }
 0x351   :  { %8368 = vmatprep.subr.bf16.mxu0 %v11314_v61  ;;  %v11398_v61 = vld [vmem:[%s15529_s1 + $0x2024] ss:$8 sps:$4 sm:$0xff]  }
 0x353   :  { %7631 = vmatpush1.bf16.msra.mxu1 %v11309_v62  ;;  %v11393_v62 = vld [vmem:[%s15529_s1 + $0xe20] ss:$8 sps:$4 sm:$0xff]  }
 0x354   :  { %8369 = vmatpush1.bf16.msra.mxu0 %v11312_v63  ;;  %7632 = vmatprep.subr.bf16.mxu1 %v11317_v0  ;;  %v11396_v63 = vld [vmem:[%s15529_s1 + $0x2020] ss:$8 sps:$4 sm:$0xff]   ;;  %v11401_v0 = vld [vmem:[%s15529_s1 + $0xe34] ss:$8 sps:$4 sm:$0xff]  }
 0x355   :  { %8370 = vmatprep.subr.bf16.mxu0 %v11320_v1  ;;  %v11404_v1 = vld [vmem:[%s15529_s1 + $0x2034] ss:$8 sps:$4 sm:$0xff]  }
 0x357   :  { %7633 = vmatpush1.bf16.msra.mxu1 %v11315_v2  ;;  %v11399_v2 = vld [vmem:[%s15529_s1 + $0xe30] ss:$8 sps:$4 sm:$0xff]  }
 0x358   :  { %8371 = vmatpush1.bf16.msra.mxu0 %v11318_v3  ;;  %7634 = vmatprep.subr.bf16.mxu1 %v11323_v4  ;;  %v11402_v3 = vld [vmem:[%s15529_s1 + $0x2030] ss:$8 sps:$4 sm:$0xff]   ;;  %v11407_v4 = vld [vmem:[%s15529_s1 + $0xe44] ss:$8 sps:$4 sm:$0xff]  }
 0x359   :  { %8372 = vmatprep.subr.bf16.mxu0 %v11326_v5  ;;  %v11410_v5 = vld [vmem:[%s15529_s1 + $0x2044] ss:$8 sps:$4 sm:$0xff]  }
 0x35b   :  { %7635 = vmatpush1.bf16.msra.mxu1 %v11321_v6  ;;  %v11405_v6 = vld [vmem:[%s15529_s1 + $0xe40] ss:$8 sps:$4 sm:$0xff]  }
 0x35c   :  { %8373 = vmatpush1.bf16.msra.mxu0 %v11324_v7  ;;  %7636 = vmatprep.subr.bf16.mxu1 %v11329_v8  ;;  %v11408_v7 = vld [vmem:[%s15529_s1 + $0x2040] ss:$8 sps:$4 sm:$0xff]   ;;  %v11413_v8 = vld [vmem:[%s15529_s1 + $0xe54] ss:$8 sps:$4 sm:$0xff]  }
 0x35d   :  { %8374 = vmatprep.subr.bf16.mxu0 %v11332_v9  ;;  %v11416_v9 = vld [vmem:[%s15529_s1 + $0x2054] ss:$8 sps:$4 sm:$0xff]  }
 0x35f   :  { %7637 = vmatpush1.bf16.msra.mxu1 %v11327_v10  ;;  %v11411_v10 = vld [vmem:[%s15529_s1 + $0xe50] ss:$8 sps:$4 sm:$0xff]  }
 0x360   :  { %8375 = vmatpush1.bf16.msra.mxu0 %v11330_v11  ;;  %7638 = vmatprep.subr.bf16.mxu1 %v11335_v12  ;;  %v11414_v11 = vld [vmem:[%s15529_s1 + $0x2050] ss:$8 sps:$4 sm:$0xff]   ;;  %v11419_v12 = vld [vmem:[%s15529_s1 + $0xe64] ss:$8 sps:$4 sm:$0xff]  }
 0x361   :  { %8376 = vmatprep.subr.bf16.mxu0 %v11338_v13  ;;  %v11422_v13 = vld [vmem:[%s15529_s1 + $0x2064] ss:$8 sps:$4 sm:$0xff]  }
 0x363   :  { %7639 = vmatpush1.bf16.msra.mxu1 %v11333_v14  ;;  %v11417_v14 = vld [vmem:[%s15529_s1 + $0xe60] ss:$8 sps:$4 sm:$0xff]  }
 0x364   :  { %8377 = vmatpush1.bf16.msra.mxu0 %v11336_v15  ;;  %7640 = vmatprep.subr.bf16.mxu1 %v11341_v16  ;;  %v11420_v15 = vld [vmem:[%s15529_s1 + $0x2060] ss:$8 sps:$4 sm:$0xff]   ;;  %v11425_v16 = vld [vmem:[%s15529_s1 + $0xe74] ss:$8 sps:$4 sm:$0xff]  }
 0x365   :  { %8378 = vmatprep.subr.bf16.mxu0 %v11344_v17  ;;  %v11428_v17 = vld [vmem:[%s15529_s1 + $0x2074] ss:$8 sps:$4 sm:$0xff]  }
 0x367   :  { %7641 = vmatpush1.bf16.msra.mxu1 %v11339_v18  ;;  %v11423_v18 = vld [vmem:[%s15529_s1 + $0xe70] ss:$8 sps:$4 sm:$0xff]  }
 0x368   :  { %8379 = vmatpush1.bf16.msra.mxu0 %v11342_v19  ;;  %7642 = vmatprep.subr.bf16.mxu1 %v11347_v20  ;;  %v11426_v19 = vld [vmem:[%s15529_s1 + $0x2070] ss:$8 sps:$4 sm:$0xff]   ;;  %v11431_v20 = vld [vmem:[%s15529_s1 + $0xe84] ss:$8 sps:$4 sm:$0xff]  }
 0x369   :  { %8380 = vmatprep.subr.bf16.mxu0 %v11350_v21  ;;  %v11434_v21 = vld [vmem:[%s15529_s1 + $0x2084] ss:$8 sps:$4 sm:$0xff]  }
 0x36b   :  { %7643 = vmatpush1.bf16.msra.mxu1 %v11345_v22  ;;  %v11429_v22 = vld [vmem:[%s15529_s1 + $0xe80] ss:$8 sps:$4 sm:$0xff]  }
 0x36c   :  { %8381 = vmatpush1.bf16.msra.mxu0 %v11348_v23  ;;  %7644 = vmatprep.subr.bf16.mxu1 %v11353_v24  ;;  %v11432_v23 = vld [vmem:[%s15529_s1 + $0x2080] ss:$8 sps:$4 sm:$0xff]   ;;  %v11437_v24 = vld [vmem:[%s15529_s1 + $0xe94] ss:$8 sps:$4 sm:$0xff]  }
 0x36d   :  { %8382 = vmatprep.subr.bf16.mxu0 %v11356_v25  ;;  %v11440_v25 = vld [vmem:[%s15529_s1 + $0x2094] ss:$8 sps:$4 sm:$0xff]  }
 0x36f   :  { %7645 = vmatpush1.bf16.msra.mxu1 %v11351_v26  ;;  %v11435_v26 = vld [vmem:[%s15529_s1 + $0xe90] ss:$8 sps:$4 sm:$0xff]  }
 0x370   :  { %8383 = vmatpush1.bf16.msra.mxu0 %v11354_v27  ;;  %7646 = vmatprep.subr.bf16.mxu1 %v11359_v28  ;;  %v11438_v27 = vld [vmem:[%s15529_s1 + $0x2090] ss:$8 sps:$4 sm:$0xff]   ;;  %v11443_v28 = vld [vmem:[%s15529_s1 + $0xea4] ss:$8 sps:$4 sm:$0xff]  }
 0x371   :  { %8384 = vmatprep.subr.bf16.mxu0 %v11362_v29  ;;  %v11446_v29 = vld [vmem:[%s15529_s1 + $0x20a4] ss:$8 sps:$4 sm:$0xff]  }
 0x373   :  { %7647 = vmatpush1.bf16.msra.mxu1 %v11357_v30  ;;  %v11441_v30 = vld [vmem:[%s15529_s1 + $0xea0] ss:$8 sps:$4 sm:$0xff]  }
 0x374   :  { %8385 = vmatpush1.bf16.msra.mxu0 %v11360_v31  ;;  %7648 = vmatprep.subr.bf16.mxu1 %v11365_v32  ;;  %v11444_v31 = vld [vmem:[%s15529_s1 + $0x20a0] ss:$8 sps:$4 sm:$0xff]   ;;  %v11449_v32 = vld [vmem:[%s15529_s1 + $0xeb4] ss:$8 sps:$4 sm:$0xff]  }
 0x375   :  { %8386 = vmatprep.subr.bf16.mxu0 %v11368_v33  ;;  %v11452_v33 = vld [vmem:[%s15529_s1 + $0x20b4] ss:$8 sps:$4 sm:$0xff]  }
 0x377   :  { %7649 = vmatpush1.bf16.msra.mxu1 %v11363_v34  ;;  %v11447_v34 = vld [vmem:[%s15529_s1 + $0xeb0] ss:$8 sps:$4 sm:$0xff]  }
 0x378   :  { %8387 = vmatpush1.bf16.msra.mxu0 %v11366_v35  ;;  %7650 = vmatprep.subr.bf16.mxu1 %v11371_v36  ;;  %v11450_v35 = vld [vmem:[%s15529_s1 + $0x20b0] ss:$8 sps:$4 sm:$0xff]   ;;  %v11455_v36 = vld [vmem:[%s15529_s1 + $0xec4] ss:$8 sps:$4 sm:$0xff]  }
 0x379   :  { %8388 = vmatprep.subr.bf16.mxu0 %v11374_v37  ;;  %v11458_v37 = vld [vmem:[%s15529_s1 + $0x20c4] ss:$8 sps:$4 sm:$0xff]  }
 0x37b   :  { %7651 = vmatpush1.bf16.msra.mxu1 %v11369_v38  ;;  %v11453_v38 = vld [vmem:[%s15529_s1 + $0xec0] ss:$8 sps:$4 sm:$0xff]  }
 0x37c   :  { %8389 = vmatpush1.bf16.msra.mxu0 %v11372_v39  ;;  %7652 = vmatprep.subr.bf16.mxu1 %v11377_v40  ;;  %v11456_v39 = vld [vmem:[%s15529_s1 + $0x20c0] ss:$8 sps:$4 sm:$0xff]   ;;  %v11461_v40 = vld [vmem:[%s15529_s1 + $0xed4] ss:$8 sps:$4 sm:$0xff]  }
 0x37d   :  { %8390 = vmatprep.subr.bf16.mxu0 %v11380_v41  ;;  %v11464_v41 = vld [vmem:[%s15529_s1 + $0x20d4] ss:$8 sps:$4 sm:$0xff]  }
 0x37f   :  { %7653 = vmatpush1.bf16.msra.mxu1 %v11375_v42  ;;  %v11459_v42 = vld [vmem:[%s15529_s1 + $0xed0] ss:$8 sps:$4 sm:$0xff]  }
 0x380   :  { %8391 = vmatpush1.bf16.msra.mxu0 %v11378_v43  ;;  %7663 = vmatprep.subr.bf16.mxu1 %v11383_v46  ;;  %v11462_v43 = vld [vmem:[%s15529_s1 + $0x20d0] ss:$8 sps:$4 sm:$0xff]   ;;  %v11465_v46 = vld [vmem:[%s15529_s1 + $0xee0] ss:$8 sps:$4 sm:$0xff]  }
 0x381   :  { %8401 = vmatprep.subr.bf16.mxu0 %v11386_v47  ;;  %v11468_v47 = vld [vmem:[%s15529_s1 + $0x20e0] ss:$8 sps:$4 sm:$0xff]  }
 0x382   :  { %7655 = vmatmul.mubr.bf16.vlgmr.msra.gmra.mrb[0].mxu1 %v119_v48  ;;  %v11473_v48 = vld [vmem:[%s15529_s1 + $0xef4] ss:$8 sps:$4 sm:$0xff]  }
 0x383   :  { %8393 = vmatmul.mubr.bf16.vlgmr.msra.gmra.mrb[0].mxu0 %v155_v49  ;;  %7664 = vmatpush1.bf16.msra.mxu1 %v11381_v52  ;;  %v11476_v49 = vld [vmem:[%s15529_s1 + $0x20f4] ss:$8 sps:$4 sm:$0xff]   ;;  %v49_v52 = vld [vmem:[%s15530_s0 + $0xe0] sm:$0xff] }
 0x384   :  { %8402 = vmatpush1.bf16.msra.mxu0 %v11384_v53  ;;  %7665 = vmatprep.subr.bf16.mxu1 %v11389_v54  ;;  %v85_v53 = vld [vmem:[%s15530_s0 + $0x200] sm:$0xff] }
 0x385   :  { %8403 = vmatprep.subr.bf16.mxu0 %v11392_v55  ;;  %7695 = vmatprep.mubr.bf16.mxu1 %v122_v56  ;;  %v11479_v54 = vld [vmem:[%s15529_s1 + $0xf04] ss:$8 sps:$4 sm:$0xff]   ;;  %v121_v56 = vpack.c.bf16 %v49_v52, %v49_v52 }
 0x386   :  { %8433 = vmatprep.mubr.bf16.mxu0 %v158_v57  ;;  %v11482_v55 = vld [vmem:[%s15529_s1 + $0x2104] ss:$8 sps:$4 sm:$0xff]   ;;  %v157_v57 = vpack.c.bf16 %v85_v53, %v85_v53 }
 0x387   :  { %7666 = vmatpush1.bf16.msra.mxu1 %v11387_v58  ;;  %v52_v58 = vld [vmem:[%s15530_s0 + $0xf8] sm:$0xff]  ;;  %v11563_v52 = vld [vmem:[%s15529_s1 + $0xfe4] ss:$8 sps:$4 sm:$0xff]  }
 0x388   :  { %8404 = vmatpush1.bf16.msra.mxu0 %v11390_v59  ;;  %7667 = vmatprep.subr.bf16.mxu1 %v11395_v60  ;;  %v88_v59 = vld [vmem:[%s15530_s0 + $0x218] sm:$0xff]  ;;  %v11477_v60 = vld [vmem:[%s15529_s1 + $0xf00] ss:$8 sps:$4 sm:$0xff]   ;;  %v11566_v53 = vld [vmem:[%s15529_s1 + $0x21e4] ss:$8 sps:$4 sm:$0xff]  }
 0x389   :  { %8405 = vmatprep.subr.bf16.mxu0 %v11398_v61  ;;  %v11480_v61 = vld [vmem:[%s15529_s1 + $0x2100] ss:$8 sps:$4 sm:$0xff]  }
 0x38b   :  { %7668 = vmatpush1.bf16.msra.mxu1 %v11393_v62  ;;  %v11485_v62 = vld [vmem:[%s15529_s1 + $0xf14] ss:$8 sps:$4 sm:$0xff]  }
 0x38c   :  { %8406 = vmatpush1.bf16.msra.mxu0 %v11396_v63  ;;  %7669 = vmatprep.subr.bf16.mxu1 %v11401_v0  ;;  %v11488_v63 = vld [vmem:[%s15529_s1 + $0x2114] ss:$8 sps:$4 sm:$0xff]   ;;  %v124_v0 = vpack.c.bf16 %v52_v58, %v52_v58  ;;  %v11567_v58 = vld [vmem:[%s15529_s1 + $0xff0] ss:$8 sps:$4 sm:$0xff]  }
 0x38d   :  { %8407 = vmatprep.subr.bf16.mxu0 %v11404_v1  ;;  %v160_v1 = vpack.c.bf16 %v88_v59, %v88_v59  ;;  %v11570_v59 = vld [vmem:[%s15529_s1 + $0x21f0] ss:$8 sps:$4 sm:$0xff]  }
 0x38f   :  { %7670 = vmatpush1.bf16.msra.mxu1 %v11399_v2  ;;  %v11483_v2 = vld [vmem:[%s15529_s1 + $0xf10] ss:$8 sps:$4 sm:$0xff]  }
 0x390   :  { %8408 = vmatpush1.bf16.msra.mxu0 %v11402_v3  ;;  %7671 = vmatprep.subr.bf16.mxu1 %v11407_v4  ;;  %v11486_v3 = vld [vmem:[%s15529_s1 + $0x2110] ss:$8 sps:$4 sm:$0xff]   ;;  %v11491_v4 = vld [vmem:[%s15529_s1 + $0xf24] ss:$8 sps:$4 sm:$0xff]  }
 0x391   :  { %8409 = vmatprep.subr.bf16.mxu0 %v11410_v5  ;;  %v11494_v5 = vld [vmem:[%s15529_s1 + $0x2124] ss:$8 sps:$4 sm:$0xff]  }
 0x393   :  { %7672 = vmatpush1.bf16.msra.mxu1 %v11405_v6  ;;  %v11489_v6 = vld [vmem:[%s15529_s1 + $0xf20] ss:$8 sps:$4 sm:$0xff]  }
 0x394   :  { %8410 = vmatpush1.bf16.msra.mxu0 %v11408_v7  ;;  %7673 = vmatprep.subr.bf16.mxu1 %v11413_v8  ;;  %v11492_v7 = vld [vmem:[%s15529_s1 + $0x2120] ss:$8 sps:$4 sm:$0xff]   ;;  %v11497_v8 = vld [vmem:[%s15529_s1 + $0xf34] ss:$8 sps:$4 sm:$0xff]  }
 0x395   :  { %8411 = vmatprep.subr.bf16.mxu0 %v11416_v9  ;;  %v11500_v9 = vld [vmem:[%s15529_s1 + $0x2134] ss:$8 sps:$4 sm:$0xff]  }
 0x397   :  { %7674 = vmatpush1.bf16.msra.mxu1 %v11411_v10  ;;  %v11495_v10 = vld [vmem:[%s15529_s1 + $0xf30] ss:$8 sps:$4 sm:$0xff]  }
 0x398   :  { %8412 = vmatpush1.bf16.msra.mxu0 %v11414_v11  ;;  %7675 = vmatprep.subr.bf16.mxu1 %v11419_v12  ;;  %v11498_v11 = vld [vmem:[%s15529_s1 + $0x2130] ss:$8 sps:$4 sm:$0xff]   ;;  %v11503_v12 = vld [vmem:[%s15529_s1 + $0xf44] ss:$8 sps:$4 sm:$0xff]  }
 0x399   :  { %8413 = vmatprep.subr.bf16.mxu0 %v11422_v13  ;;  %v11506_v13 = vld [vmem:[%s15529_s1 + $0x2144] ss:$8 sps:$4 sm:$0xff]  }
 0x39b   :  { %7676 = vmatpush1.bf16.msra.mxu1 %v11417_v14  ;;  %v11501_v14 = vld [vmem:[%s15529_s1 + $0xf40] ss:$8 sps:$4 sm:$0xff]  }
 0x39c   :  { %8414 = vmatpush1.bf16.msra.mxu0 %v11420_v15  ;;  %7677 = vmatprep.subr.bf16.mxu1 %v11425_v16  ;;  %v11504_v15 = vld [vmem:[%s15529_s1 + $0x2140] ss:$8 sps:$4 sm:$0xff]   ;;  %v11509_v16 = vld [vmem:[%s15529_s1 + $0xf54] ss:$8 sps:$4 sm:$0xff]  }
 0x39d   :  { %8415 = vmatprep.subr.bf16.mxu0 %v11428_v17  ;;  %v11512_v17 = vld [vmem:[%s15529_s1 + $0x2154] ss:$8 sps:$4 sm:$0xff]  }
 0x39f   :  { %7678 = vmatpush1.bf16.msra.mxu1 %v11423_v18  ;;  %v11507_v18 = vld [vmem:[%s15529_s1 + $0xf50] ss:$8 sps:$4 sm:$0xff]  }
 0x3a0   :  { %8416 = vmatpush1.bf16.msra.mxu0 %v11426_v19  ;;  %7679 = vmatprep.subr.bf16.mxu1 %v11431_v20  ;;  %v11510_v19 = vld [vmem:[%s15529_s1 + $0x2150] ss:$8 sps:$4 sm:$0xff]   ;;  %v11515_v20 = vld [vmem:[%s15529_s1 + $0xf64] ss:$8 sps:$4 sm:$0xff]  }
 0x3a1   :  { %8417 = vmatprep.subr.bf16.mxu0 %v11434_v21  ;;  %v11518_v21 = vld [vmem:[%s15529_s1 + $0x2164] ss:$8 sps:$4 sm:$0xff]  }
 0x3a3   :  { %7680 = vmatpush1.bf16.msra.mxu1 %v11429_v22  ;;  %v11513_v22 = vld [vmem:[%s15529_s1 + $0xf60] ss:$8 sps:$4 sm:$0xff]  }
 0x3a4   :  { %8418 = vmatpush1.bf16.msra.mxu0 %v11432_v23  ;;  %7681 = vmatprep.subr.bf16.mxu1 %v11437_v24  ;;  %v11516_v23 = vld [vmem:[%s15529_s1 + $0x2160] ss:$8 sps:$4 sm:$0xff]   ;;  %v11521_v24 = vld [vmem:[%s15529_s1 + $0xf74] ss:$8 sps:$4 sm:$0xff]  }
 0x3a5   :  { %8419 = vmatprep.subr.bf16.mxu0 %v11440_v25  ;;  %v11524_v25 = vld [vmem:[%s15529_s1 + $0x2174] ss:$8 sps:$4 sm:$0xff]  }
 0x3a7   :  { %7682 = vmatpush1.bf16.msra.mxu1 %v11435_v26  ;;  %v11519_v26 = vld [vmem:[%s15529_s1 + $0xf70] ss:$8 sps:$4 sm:$0xff]  }
 0x3a8   :  { %8420 = vmatpush1.bf16.msra.mxu0 %v11438_v27  ;;  %7683 = vmatprep.subr.bf16.mxu1 %v11443_v28  ;;  %v11522_v27 = vld [vmem:[%s15529_s1 + $0x2170] ss:$8 sps:$4 sm:$0xff]   ;;  %v11527_v28 = vld [vmem:[%s15529_s1 + $0xf84] ss:$8 sps:$4 sm:$0xff]  }
 0x3a9   :  { %8421 = vmatprep.subr.bf16.mxu0 %v11446_v29  ;;  %v11530_v29 = vld [vmem:[%s15529_s1 + $0x2184] ss:$8 sps:$4 sm:$0xff]  }
 0x3ab   :  { %7684 = vmatpush1.bf16.msra.mxu1 %v11441_v30  ;;  %v11525_v30 = vld [vmem:[%s15529_s1 + $0xf80] ss:$8 sps:$4 sm:$0xff]  }
 0x3ac   :  { %8422 = vmatpush1.bf16.msra.mxu0 %v11444_v31  ;;  %7685 = vmatprep.subr.bf16.mxu1 %v11449_v32  ;;  %v11528_v31 = vld [vmem:[%s15529_s1 + $0x2180] ss:$8 sps:$4 sm:$0xff]   ;;  %v11533_v32 = vld [vmem:[%s15529_s1 + $0xf94] ss:$8 sps:$4 sm:$0xff]  }
 0x3ad   :  { %8423 = vmatprep.subr.bf16.mxu0 %v11452_v33  ;;  %v11536_v33 = vld [vmem:[%s15529_s1 + $0x2194] ss:$8 sps:$4 sm:$0xff]  }
 0x3af   :  { %7686 = vmatpush1.bf16.msra.mxu1 %v11447_v34  ;;  %v11531_v34 = vld [vmem:[%s15529_s1 + $0xf90] ss:$8 sps:$4 sm:$0xff]  }
 0x3b0   :  { %8424 = vmatpush1.bf16.msra.mxu0 %v11450_v35  ;;  %7687 = vmatprep.subr.bf16.mxu1 %v11455_v36  ;;  %v11534_v35 = vld [vmem:[%s15529_s1 + $0x2190] ss:$8 sps:$4 sm:$0xff]   ;;  %v11539_v36 = vld [vmem:[%s15529_s1 + $0xfa4] ss:$8 sps:$4 sm:$0xff]  }
 0x3b1   :  { %8425 = vmatprep.subr.bf16.mxu0 %v11458_v37  ;;  %v11542_v37 = vld [vmem:[%s15529_s1 + $0x21a4] ss:$8 sps:$4 sm:$0xff]  }
 0x3b3   :  { %7688 = vmatpush1.bf16.msra.mxu1 %v11453_v38  ;;  %v11537_v38 = vld [vmem:[%s15529_s1 + $0xfa0] ss:$8 sps:$4 sm:$0xff]  }
 0x3b4   :  { %8426 = vmatpush1.bf16.msra.mxu0 %v11456_v39  ;;  %7689 = vmatprep.subr.bf16.mxu1 %v11461_v40  ;;  %v11540_v39 = vld [vmem:[%s15529_s1 + $0x21a0] ss:$8 sps:$4 sm:$0xff]   ;;  %v11545_v40 = vld [vmem:[%s15529_s1 + $0xfb4] ss:$8 sps:$4 sm:$0xff]  }
 0x3b5   :  { %8427 = vmatprep.subr.bf16.mxu0 %v11464_v41  ;;  %v11548_v41 = vld [vmem:[%s15529_s1 + $0x21b4] ss:$8 sps:$4 sm:$0xff]  }
 0x3b7   :  { %7690 = vmatpush1.bf16.msra.mxu1 %v11459_v42  ;;  %v11543_v42 = vld [vmem:[%s15529_s1 + $0xfb0] ss:$8 sps:$4 sm:$0xff]  }
 0x3b8   :  { %8428 = vmatpush1.bf16.msra.mxu0 %v11462_v43  ;;  %7691 = vmatprep.subr.bf16.mxu1 %v11467_v44  ;;  %v11546_v43 = vld [vmem:[%s15529_s1 + $0x21b0] ss:$8 sps:$4 sm:$0xff]   ;;  %v11551_v44 = vld [vmem:[%s15529_s1 + $0xfc4] ss:$8 sps:$4 sm:$0xff]  }
 0x3b9   :  { %8429 = vmatprep.subr.bf16.mxu0 %v11470_v45  ;;  %v11554_v45 = vld [vmem:[%s15529_s1 + $0x21c4] ss:$8 sps:$4 sm:$0xff]  }
 0x3bb   :  { %7692 = vmatpush1.bf16.msra.mxu1 %v11465_v46  ;;  %v11549_v46 = vld [vmem:[%s15529_s1 + $0xfc0] ss:$8 sps:$4 sm:$0xff]  }
 0x3bc   :  { %8430 = vmatpush1.bf16.msra.mxu0 %v11468_v47  ;;  %7693 = vmatprep.subr.bf16.mxu1 %v11473_v48  ;;  %v11552_v47 = vld [vmem:[%s15529_s1 + $0x21c0] ss:$8 sps:$4 sm:$0xff]   ;;  %v11557_v48 = vld [vmem:[%s15529_s1 + $0xfd4] ss:$8 sps:$4 sm:$0xff]  }
 0x3bd   :  { %8431 = vmatprep.subr.bf16.mxu0 %v11476_v49  ;;  %v11560_v49 = vld [vmem:[%s15529_s1 + $0x21d4] ss:$8 sps:$4 sm:$0xff]  }
 0x3bf   :  { %7694 = vmatpush1.bf16.msra.mxu1 %v11471_v50  ;;  %v11555_v50 = vld [vmem:[%s15529_s1 + $0xfd0] ss:$8 sps:$4 sm:$0xff]  }
 0x3c0   :  { %8432 = vmatpush1.bf16.msra.mxu0 %v11474_v51  ;;  %7704 = vmatprep.subr.bf16.mxu1 %v11479_v54  ;;  %v11558_v51 = vld [vmem:[%s15529_s1 + $0x21d0] ss:$8 sps:$4 sm:$0xff]   ;;  %v11561_v54 = vld [vmem:[%s15529_s1 + $0xfe0] ss:$8 sps:$4 sm:$0xff]  }
 0x3c1   :  { %8442 = vmatprep.subr.bf16.mxu0 %v11482_v55  ;;  %v11564_v55 = vld [vmem:[%s15529_s1 + $0x21e0] ss:$8 sps:$4 sm:$0xff]  }
 0x3c2   :  { %7696 = vmatmul.mubr.bf16.vlgmr.msra.gmra.mrb[0].mxu1 %v121_v56  ;;  %v11569_v56 = vld [vmem:[%s15529_s1 + $0xff4] ss:$8 sps:$4 sm:$0xff]  }
 0x3c3   :  { %8434 = vmatmul.mubr.bf16.vlgmr.msra.gmra.mrb[0].mxu0 %v157_v57  ;;  %7705 = vmatpush1.bf16.msra.mxu1 %v11477_v60  ;;  %v11572_v57 = vld [vmem:[%s15529_s1 + $0x21f4] ss:$8 sps:$4 sm:$0xff]  }
 0x3c4   :  { %8443 = vmatpush1.bf16.msra.mxu0 %v11480_v61  ;;  %7706 = vmatprep.subr.bf16.mxu1 %v11485_v62  ;;  %v51_v60 = vld [vmem:[%s15530_s0 + $0xf0] sm:$0xff]  ;;  %v11575_v62 = vld [vmem:[%s15529_s1 + $0x1004] ss:$8 sps:$4 sm:$0xff]  }
 0x3c5   :  { %8444 = vmatprep.subr.bf16.mxu0 %v11488_v63  ;;  %7736 = vmatprep.mubr.bf16.mxu1 %v124_v0  ;;  %v87_v61 = vld [vmem:[%s15530_s0 + $0x210] sm:$0xff]  ;;  %v11578_v63 = vld [vmem:[%s15529_s1 + $0x2204] ss:$8 sps:$4 sm:$0xff]   ;;  %v123_v0 = vpack.c.bf16 %v51_v60, %v51_v60 }
 0x3c6   :  { %8474 = vmatprep.mubr.bf16.mxu0 %v160_v1  ;;  %v159_v1 = vpack.c.bf16 %v87_v61, %v87_v61  ;;  %v11659_v60 = vld [vmem:[%s15529_s1 + $0x10e4] ss:$8 sps:$4 sm:$0xff]  }
 0x3c7   :  { %7707 = vmatpush1.bf16.msra.mxu1 %v11483_v2  ;;  %v54_v2 = vld [vmem:[%s15530_s0 + $0x108] sm:$0xff] }
 0x3c8   :  { %8445 = vmatpush1.bf16.msra.mxu0 %v11486_v3  ;;  %7708 = vmatprep.subr.bf16.mxu1 %v11491_v4  ;;  %v90_v3 = vld [vmem:[%s15530_s0 + $0x228] sm:$0xff] }
 0x3c9   :  { %8446 = vmatprep.subr.bf16.mxu0 %v11494_v5  ;;  %v11573_v4 = vld [vmem:[%s15529_s1 + $0x1000] ss:$8 sps:$4 sm:$0xff]   ;;  %v11662_v61 = vld [vmem:[%s15529_s1 + $0x22e4] ss:$8 sps:$4 sm:$0xff]  }
 0x3ca   :  { %v11576_v5 = vld [vmem:[%s15529_s1 + $0x2200] ss:$8 sps:$4 sm:$0xff]  }
 0x3cb   :  { %7709 = vmatpush1.bf16.msra.mxu1 %v11489_v6  ;;  %v11581_v6 = vld [vmem:[%s15529_s1 + $0x1014] ss:$8 sps:$4 sm:$0xff]  }
 0x3cc   :  { %8447 = vmatpush1.bf16.msra.mxu0 %v11492_v7  ;;  %7710 = vmatprep.subr.bf16.mxu1 %v11497_v8  ;;  %v11584_v7 = vld [vmem:[%s15529_s1 + $0x2214] ss:$8 sps:$4 sm:$0xff]   ;;  %v126_v8 = vpack.c.bf16 %v54_v2, %v54_v2  ;;  %v11663_v2 = vld [vmem:[%s15529_s1 + $0x10f0] ss:$8 sps:$4 sm:$0xff]  }
 0x3cd   :  { %8448 = vmatprep.subr.bf16.mxu0 %v11500_v9  ;;  %v162_v9 = vpack.c.bf16 %v90_v3, %v90_v3  ;;  %v11666_v3 = vld [vmem:[%s15529_s1 + $0x22f0] ss:$8 sps:$4 sm:$0xff]  }
 0x3cf   :  { %7711 = vmatpush1.bf16.msra.mxu1 %v11495_v10  ;;  %v11579_v10 = vld [vmem:[%s15529_s1 + $0x1010] ss:$8 sps:$4 sm:$0xff]  }
 0x3d0   :  { %8449 = vmatpush1.bf16.msra.mxu0 %v11498_v11  ;;  %7712 = vmatprep.subr.bf16.mxu1 %v11503_v12  ;;  %v11582_v11 = vld [vmem:[%s15529_s1 + $0x2210] ss:$8 sps:$4 sm:$0xff]   ;;  %v11587_v12 = vld [vmem:[%s15529_s1 + $0x1024] ss:$8 sps:$4 sm:$0xff]  }
 0x3d1   :  { %8450 = vmatprep.subr.bf16.mxu0 %v11506_v13  ;;  %v11590_v13 = vld [vmem:[%s15529_s1 + $0x2224] ss:$8 sps:$4 sm:$0xff]  }
 0x3d3   :  { %7713 = vmatpush1.bf16.msra.mxu1 %v11501_v14  ;;  %v11585_v14 = vld [vmem:[%s15529_s1 + $0x1020] ss:$8 sps:$4 sm:$0xff]  }
 0x3d4   :  { %8451 = vmatpush1.bf16.msra.mxu0 %v11504_v15  ;;  %7714 = vmatprep.subr.bf16.mxu1 %v11509_v16  ;;  %v11588_v15 = vld [vmem:[%s15529_s1 + $0x2220] ss:$8 sps:$4 sm:$0xff]   ;;  %v11593_v16 = vld [vmem:[%s15529_s1 + $0x1034] ss:$8 sps:$4 sm:$0xff]  }
 0x3d5   :  { %8452 = vmatprep.subr.bf16.mxu0 %v11512_v17  ;;  %v11596_v17 = vld [vmem:[%s15529_s1 + $0x2234] ss:$8 sps:$4 sm:$0xff]  }
 0x3d7   :  { %7715 = vmatpush1.bf16.msra.mxu1 %v11507_v18  ;;  %v11591_v18 = vld [vmem:[%s15529_s1 + $0x1030] ss:$8 sps:$4 sm:$0xff]  }
 0x3d8   :  { %8453 = vmatpush1.bf16.msra.mxu0 %v11510_v19  ;;  %7716 = vmatprep.subr.bf16.mxu1 %v11515_v20  ;;  %v11594_v19 = vld [vmem:[%s15529_s1 + $0x2230] ss:$8 sps:$4 sm:$0xff]   ;;  %v11599_v20 = vld [vmem:[%s15529_s1 + $0x1044] ss:$8 sps:$4 sm:$0xff]  }
 0x3d9   :  { %8454 = vmatprep.subr.bf16.mxu0 %v11518_v21  ;;  %v11602_v21 = vld [vmem:[%s15529_s1 + $0x2244] ss:$8 sps:$4 sm:$0xff]  }
 0x3db   :  { %7717 = vmatpush1.bf16.msra.mxu1 %v11513_v22  ;;  %v11597_v22 = vld [vmem:[%s15529_s1 + $0x1040] ss:$8 sps:$4 sm:$0xff]  }
 0x3dc   :  { %8455 = vmatpush1.bf16.msra.mxu0 %v11516_v23  ;;  %7718 = vmatprep.subr.bf16.mxu1 %v11521_v24  ;;  %v11600_v23 = vld [vmem:[%s15529_s1 + $0x2240] ss:$8 sps:$4 sm:$0xff]   ;;  %v11605_v24 = vld [vmem:[%s15529_s1 + $0x1054] ss:$8 sps:$4 sm:$0xff]  }
 0x3dd   :  { %8456 = vmatprep.subr.bf16.mxu0 %v11524_v25  ;;  %v11608_v25 = vld [vmem:[%s15529_s1 + $0x2254] ss:$8 sps:$4 sm:$0xff]  }
 0x3df   :  { %7719 = vmatpush1.bf16.msra.mxu1 %v11519_v26  ;;  %v11603_v26 = vld [vmem:[%s15529_s1 + $0x1050] ss:$8 sps:$4 sm:$0xff]  }
 0x3e0   :  { %8457 = vmatpush1.bf16.msra.mxu0 %v11522_v27  ;;  %7720 = vmatprep.subr.bf16.mxu1 %v11527_v28  ;;  %v11606_v27 = vld [vmem:[%s15529_s1 + $0x2250] ss:$8 sps:$4 sm:$0xff]   ;;  %v11611_v28 = vld [vmem:[%s15529_s1 + $0x1064] ss:$8 sps:$4 sm:$0xff]  }
 0x3e1   :  { %8458 = vmatprep.subr.bf16.mxu0 %v11530_v29  ;;  %v11614_v29 = vld [vmem:[%s15529_s1 + $0x2264] ss:$8 sps:$4 sm:$0xff]  }
 0x3e3   :  { %7721 = vmatpush1.bf16.msra.mxu1 %v11525_v30  ;;  %v11609_v30 = vld [vmem:[%s15529_s1 + $0x1060] ss:$8 sps:$4 sm:$0xff]  }
 0x3e4   :  { %8459 = vmatpush1.bf16.msra.mxu0 %v11528_v31  ;;  %7722 = vmatprep.subr.bf16.mxu1 %v11533_v32  ;;  %v11612_v31 = vld [vmem:[%s15529_s1 + $0x2260] ss:$8 sps:$4 sm:$0xff]   ;;  %v11617_v32 = vld [vmem:[%s15529_s1 + $0x1074] ss:$8 sps:$4 sm:$0xff]  }
 0x3e5   :  { %8460 = vmatprep.subr.bf16.mxu0 %v11536_v33  ;;  %v11620_v33 = vld [vmem:[%s15529_s1 + $0x2274] ss:$8 sps:$4 sm:$0xff]  }
 0x3e7   :  { %7723 = vmatpush1.bf16.msra.mxu1 %v11531_v34  ;;  %v11615_v34 = vld [vmem:[%s15529_s1 + $0x1070] ss:$8 sps:$4 sm:$0xff]  }
 0x3e8   :  { %8461 = vmatpush1.bf16.msra.mxu0 %v11534_v35  ;;  %7724 = vmatprep.subr.bf16.mxu1 %v11539_v36  ;;  %v11618_v35 = vld [vmem:[%s15529_s1 + $0x2270] ss:$8 sps:$4 sm:$0xff]   ;;  %v11623_v36 = vld [vmem:[%s15529_s1 + $0x1084] ss:$8 sps:$4 sm:$0xff]  }
 0x3e9   :  { %8462 = vmatprep.subr.bf16.mxu0 %v11542_v37  ;;  %v11626_v37 = vld [vmem:[%s15529_s1 + $0x2284] ss:$8 sps:$4 sm:$0xff]  }
 0x3eb   :  { %7725 = vmatpush1.bf16.msra.mxu1 %v11537_v38  ;;  %v11621_v38 = vld [vmem:[%s15529_s1 + $0x1080] ss:$8 sps:$4 sm:$0xff]  }
 0x3ec   :  { %8463 = vmatpush1.bf16.msra.mxu0 %v11540_v39  ;;  %7726 = vmatprep.subr.bf16.mxu1 %v11545_v40  ;;  %v11624_v39 = vld [vmem:[%s15529_s1 + $0x2280] ss:$8 sps:$4 sm:$0xff]   ;;  %v11629_v40 = vld [vmem:[%s15529_s1 + $0x1094] ss:$8 sps:$4 sm:$0xff]  }
 0x3ed   :  { %8464 = vmatprep.subr.bf16.mxu0 %v11548_v41  ;;  %v11632_v41 = vld [vmem:[%s15529_s1 + $0x2294] ss:$8 sps:$4 sm:$0xff]  }
 0x3ef   :  { %7727 = vmatpush1.bf16.msra.mxu1 %v11543_v42  ;;  %v11627_v42 = vld [vmem:[%s15529_s1 + $0x1090] ss:$8 sps:$4 sm:$0xff]  }
 0x3f0   :  { %8465 = vmatpush1.bf16.msra.mxu0 %v11546_v43  ;;  %7728 = vmatprep.subr.bf16.mxu1 %v11551_v44  ;;  %v11630_v43 = vld [vmem:[%s15529_s1 + $0x2290] ss:$8 sps:$4 sm:$0xff]   ;;  %v11635_v44 = vld [vmem:[%s15529_s1 + $0x10a4] ss:$8 sps:$4 sm:$0xff]  }
 0x3f1   :  { %8466 = vmatprep.subr.bf16.mxu0 %v11554_v45  ;;  %v11638_v45 = vld [vmem:[%s15529_s1 + $0x22a4] ss:$8 sps:$4 sm:$0xff]  }
 0x3f3   :  { %7729 = vmatpush1.bf16.msra.mxu1 %v11549_v46  ;;  %v11633_v46 = vld [vmem:[%s15529_s1 + $0x10a0] ss:$8 sps:$4 sm:$0xff]  }
 0x3f4   :  { %8467 = vmatpush1.bf16.msra.mxu0 %v11552_v47  ;;  %7730 = vmatprep.subr.bf16.mxu1 %v11557_v48  ;;  %v11636_v47 = vld [vmem:[%s15529_s1 + $0x22a0] ss:$8 sps:$4 sm:$0xff]   ;;  %v11641_v48 = vld [vmem:[%s15529_s1 + $0x10b4] ss:$8 sps:$4 sm:$0xff]  }
 0x3f5   :  { %8468 = vmatprep.subr.bf16.mxu0 %v11560_v49  ;;  %v11644_v49 = vld [vmem:[%s15529_s1 + $0x22b4] ss:$8 sps:$4 sm:$0xff]  }
 0x3f7   :  { %7731 = vmatpush1.bf16.msra.mxu1 %v11555_v50  ;;  %v11639_v50 = vld [vmem:[%s15529_s1 + $0x10b0] ss:$8 sps:$4 sm:$0xff]  }
 0x3f8   :  { %8469 = vmatpush1.bf16.msra.mxu0 %v11558_v51  ;;  %7732 = vmatprep.subr.bf16.mxu1 %v11563_v52  ;;  %v11642_v51 = vld [vmem:[%s15529_s1 + $0x22b0] ss:$8 sps:$4 sm:$0xff]   ;;  %v11647_v52 = vld [vmem:[%s15529_s1 + $0x10c4] ss:$8 sps:$4 sm:$0xff]  }
 0x3f9   :  { %8470 = vmatprep.subr.bf16.mxu0 %v11566_v53  ;;  %v11650_v53 = vld [vmem:[%s15529_s1 + $0x22c4] ss:$8 sps:$4 sm:$0xff]  }
 0x3fb   :  { %7733 = vmatpush1.bf16.msra.mxu1 %v11561_v54  ;;  %v11645_v54 = vld [vmem:[%s15529_s1 + $0x10c0] ss:$8 sps:$4 sm:$0xff]  }
 0x3fc   :  { %8471 = vmatpush1.bf16.msra.mxu0 %v11564_v55  ;;  %7734 = vmatprep.subr.bf16.mxu1 %v11569_v56  ;;  %v11648_v55 = vld [vmem:[%s15529_s1 + $0x22c0] ss:$8 sps:$4 sm:$0xff]   ;;  %v11653_v56 = vld [vmem:[%s15529_s1 + $0x10d4] ss:$8 sps:$4 sm:$0xff]  }
 0x3fd   :  { %8472 = vmatprep.subr.bf16.mxu0 %v11572_v57  ;;  %v11656_v57 = vld [vmem:[%s15529_s1 + $0x22d4] ss:$8 sps:$4 sm:$0xff]  }
 0x3ff   :  { %7735 = vmatpush1.bf16.msra.mxu1 %v11567_v58  ;;  %v11651_v58 = vld [vmem:[%s15529_s1 + $0x10d0] ss:$8 sps:$4 sm:$0xff]  }
 0x400   :  { %8473 = vmatpush1.bf16.msra.mxu0 %v11570_v59  ;;  %7745 = vmatprep.subr.bf16.mxu1 %v11575_v62  ;;  %v11654_v59 = vld [vmem:[%s15529_s1 + $0x22d0] ss:$8 sps:$4 sm:$0xff]   ;;  %v11657_v62 = vld [vmem:[%s15529_s1 + $0x10e0] ss:$8 sps:$4 sm:$0xff]  }
 0x401   :  { %8483 = vmatprep.subr.bf16.mxu0 %v11578_v63  ;;  %v11660_v63 = vld [vmem:[%s15529_s1 + $0x22e0] ss:$8 sps:$4 sm:$0xff]  }
 0x402   :  { %7737 = vmatmul.mubr.bf16.vlgmr.msra.gmra.mrb[0].mxu1 %v123_v0  ;;  %v11665_v0 = vld [vmem:[%s15529_s1 + $0x10f4] ss:$8 sps:$4 sm:$0xff]  }
 0x403   :  { %8475 = vmatmul.mubr.bf16.vlgmr.msra.gmra.mrb[0].mxu0 %v159_v1  ;;  %7746 = vmatpush1.bf16.msra.mxu1 %v11573_v4  ;;  %v11668_v1 = vld [vmem:[%s15529_s1 + $0x22f4] ss:$8 sps:$4 sm:$0xff]   ;;  %v53_v4 = vld [vmem:[%s15530_s0 + $0x100] sm:$0xff] }
 0x404   :  { %8484 = vmatpush1.bf16.msra.mxu0 %v11576_v5  ;;  %7747 = vmatprep.subr.bf16.mxu1 %v11581_v6  ;;  %v89_v5 = vld [vmem:[%s15530_s0 + $0x220] sm:$0xff] }
 0x405   :  { %8485 = vmatprep.subr.bf16.mxu0 %v11584_v7  ;;  %7777 = vmatprep.mubr.bf16.mxu1 %v126_v8  ;;  %v11671_v6 = vld [vmem:[%s15529_s1 + $0x1104] ss:$8 sps:$4 sm:$0xff]   ;;  %v125_v8 = vpack.c.bf16 %v53_v4, %v53_v4 }
 0x406   :  { %8515 = vmatprep.mubr.bf16.mxu0 %v162_v9  ;;  %v11674_v7 = vld [vmem:[%s15529_s1 + $0x2304] ss:$8 sps:$4 sm:$0xff]   ;;  %v161_v9 = vpack.c.bf16 %v89_v5, %v89_v5 }
 0x407   :  { %7748 = vmatpush1.bf16.msra.mxu1 %v11579_v10  ;;  %v56_v10 = vld [vmem:[%s15530_s0 + $0x118] sm:$0xff]  ;;  %v11755_v4 = vld [vmem:[%s15529_s1 + $0x11e4] ss:$8 sps:$4 sm:$0xff]  }
 0x408   :  { %8486 = vmatpush1.bf16.msra.mxu0 %v11582_v11  ;;  %7749 = vmatprep.subr.bf16.mxu1 %v11587_v12  ;;  %v92_v11 = vld [vmem:[%s15530_s0 + $0x238] sm:$0xff]  ;;  %v11669_v12 = vld [vmem:[%s15529_s1 + $0x1100] ss:$8 sps:$4 sm:$0xff]   ;;  %v11758_v5 = vld [vmem:[%s15529_s1 + $0x23e4] ss:$8 sps:$4 sm:$0xff]  }
 0x409   :  { %8487 = vmatprep.subr.bf16.mxu0 %v11590_v13  ;;  %v11672_v13 = vld [vmem:[%s15529_s1 + $0x2300] ss:$8 sps:$4 sm:$0xff]  }
 0x40b   :  { %7750 = vmatpush1.bf16.msra.mxu1 %v11585_v14  ;;  %v11677_v14 = vld [vmem:[%s15529_s1 + $0x1114] ss:$8 sps:$4 sm:$0xff]  }
 0x40c   :  { %8488 = vmatpush1.bf16.msra.mxu0 %v11588_v15  ;;  %7751 = vmatprep.subr.bf16.mxu1 %v11593_v16  ;;  %v11680_v15 = vld [vmem:[%s15529_s1 + $0x2314] ss:$8 sps:$4 sm:$0xff]   ;;  %v128_v16 = vpack.c.bf16 %v56_v10, %v56_v10  ;;  %v11759_v10 = vld [vmem:[%s15529_s1 + $0x11f0] ss:$8 sps:$4 sm:$0xff]  }
 0x40d   :  { %8489 = vmatprep.subr.bf16.mxu0 %v11596_v17  ;;  %v164_v17 = vpack.c.bf16 %v92_v11, %v92_v11  ;;  %v11762_v11 = vld [vmem:[%s15529_s1 + $0x23f0] ss:$8 sps:$4 sm:$0xff]  }
 0x40f   :  { %7752 = vmatpush1.bf16.msra.mxu1 %v11591_v18  ;;  %v11675_v18 = vld [vmem:[%s15529_s1 + $0x1110] ss:$8 sps:$4 sm:$0xff]  }
 0x410   :  { %8490 = vmatpush1.bf16.msra.mxu0 %v11594_v19  ;;  %7753 = vmatprep.subr.bf16.mxu1 %v11599_v20  ;;  %v11678_v19 = vld [vmem:[%s15529_s1 + $0x2310] ss:$8 sps:$4 sm:$0xff]   ;;  %v11683_v20 = vld [vmem:[%s15529_s1 + $0x1124] ss:$8 sps:$4 sm:$0xff]  }
 0x411   :  { %8491 = vmatprep.subr.bf16.mxu0 %v11602_v21  ;;  %v11686_v21 = vld [vmem:[%s15529_s1 + $0x2324] ss:$8 sps:$4 sm:$0xff]  }
 0x413   :  { %7754 = vmatpush1.bf16.msra.mxu1 %v11597_v22  ;;  %v11681_v22 = vld [vmem:[%s15529_s1 + $0x1120] ss:$8 sps:$4 sm:$0xff]  }
 0x414   :  { %8492 = vmatpush1.bf16.msra.mxu0 %v11600_v23  ;;  %7755 = vmatprep.subr.bf16.mxu1 %v11605_v24  ;;  %v11684_v23 = vld [vmem:[%s15529_s1 + $0x2320] ss:$8 sps:$4 sm:$0xff]   ;;  %v11689_v24 = vld [vmem:[%s15529_s1 + $0x1134] ss:$8 sps:$4 sm:$0xff]  }
 0x415   :  { %8493 = vmatprep.subr.bf16.mxu0 %v11608_v25  ;;  %v11692_v25 = vld [vmem:[%s15529_s1 + $0x2334] ss:$8 sps:$4 sm:$0xff]  }
 0x417   :  { %7756 = vmatpush1.bf16.msra.mxu1 %v11603_v26  ;;  %v11687_v26 = vld [vmem:[%s15529_s1 + $0x1130] ss:$8 sps:$4 sm:$0xff]  }
 0x418   :  { %8494 = vmatpush1.bf16.msra.mxu0 %v11606_v27  ;;  %7757 = vmatprep.subr.bf16.mxu1 %v11611_v28  ;;  %v11690_v27 = vld [vmem:[%s15529_s1 + $0x2330] ss:$8 sps:$4 sm:$0xff]   ;;  %v11695_v28 = vld [vmem:[%s15529_s1 + $0x1144] ss:$8 sps:$4 sm:$0xff]  }
 0x419   :  { %8495 = vmatprep.subr.bf16.mxu0 %v11614_v29  ;;  %v11698_v29 = vld [vmem:[%s15529_s1 + $0x2344] ss:$8 sps:$4 sm:$0xff]  }
 0x41b   :  { %7758 = vmatpush1.bf16.msra.mxu1 %v11609_v30  ;;  %v11693_v30 = vld [vmem:[%s15529_s1 + $0x1140] ss:$8 sps:$4 sm:$0xff]  }
 0x41c   :  { %8496 = vmatpush1.bf16.msra.mxu0 %v11612_v31  ;;  %7759 = vmatprep.subr.bf16.mxu1 %v11617_v32  ;;  %v11696_v31 = vld [vmem:[%s15529_s1 + $0x2340] ss:$8 sps:$4 sm:$0xff]   ;;  %v11701_v32 = vld [vmem:[%s15529_s1 + $0x1154] ss:$8 sps:$4 sm:$0xff]  }
 0x41d   :  { %8497 = vmatprep.subr.bf16.mxu0 %v11620_v33  ;;  %v11704_v33 = vld [vmem:[%s15529_s1 + $0x2354] ss:$8 sps:$4 sm:$0xff]  }
 0x41f   :  { %7760 = vmatpush1.bf16.msra.mxu1 %v11615_v34  ;;  %v11699_v34 = vld [vmem:[%s15529_s1 + $0x1150] ss:$8 sps:$4 sm:$0xff]  }
 0x420   :  { %8498 = vmatpush1.bf16.msra.mxu0 %v11618_v35  ;;  %7761 = vmatprep.subr.bf16.mxu1 %v11623_v36  ;;  %v11702_v35 = vld [vmem:[%s15529_s1 + $0x2350] ss:$8 sps:$4 sm:$0xff]   ;;  %v11707_v36 = vld [vmem:[%s15529_s1 + $0x1164] ss:$8 sps:$4 sm:$0xff]  }
 0x421   :  { %8499 = vmatprep.subr.bf16.mxu0 %v11626_v37  ;;  %v11710_v37 = vld [vmem:[%s15529_s1 + $0x2364] ss:$8 sps:$4 sm:$0xff]  }
 0x423   :  { %7762 = vmatpush1.bf16.msra.mxu1 %v11621_v38  ;;  %v11705_v38 = vld [vmem:[%s15529_s1 + $0x1160] ss:$8 sps:$4 sm:$0xff]  }
 0x424   :  { %8500 = vmatpush1.bf16.msra.mxu0 %v11624_v39  ;;  %7763 = vmatprep.subr.bf16.mxu1 %v11629_v40  ;;  %v11708_v39 = vld [vmem:[%s15529_s1 + $0x2360] ss:$8 sps:$4 sm:$0xff]   ;;  %v11713_v40 = vld [vmem:[%s15529_s1 + $0x1174] ss:$8 sps:$4 sm:$0xff]  }
 0x425   :  { %8501 = vmatprep.subr.bf16.mxu0 %v11632_v41  ;;  %v11716_v41 = vld [vmem:[%s15529_s1 + $0x2374] ss:$8 sps:$4 sm:$0xff]  }
 0x427   :  { %7764 = vmatpush1.bf16.msra.mxu1 %v11627_v42  ;;  %v11711_v42 = vld [vmem:[%s15529_s1 + $0x1170] ss:$8 sps:$4 sm:$0xff]  }
 0x428   :  { %8502 = vmatpush1.bf16.msra.mxu0 %v11630_v43  ;;  %7765 = vmatprep.subr.bf16.mxu1 %v11635_v44  ;;  %v11714_v43 = vld [vmem:[%s15529_s1 + $0x2370] ss:$8 sps:$4 sm:$0xff]   ;;  %v11719_v44 = vld [vmem:[%s15529_s1 + $0x1184] ss:$8 sps:$4 sm:$0xff]  }
 0x429   :  { %8503 = vmatprep.subr.bf16.mxu0 %v11638_v45  ;;  %v11722_v45 = vld [vmem:[%s15529_s1 + $0x2384] ss:$8 sps:$4 sm:$0xff]  }
 0x42b   :  { %7766 = vmatpush1.bf16.msra.mxu1 %v11633_v46  ;;  %v11717_v46 = vld [vmem:[%s15529_s1 + $0x1180] ss:$8 sps:$4 sm:$0xff]  }
 0x42c   :  { %8504 = vmatpush1.bf16.msra.mxu0 %v11636_v47  ;;  %7767 = vmatprep.subr.bf16.mxu1 %v11641_v48  ;;  %v11720_v47 = vld [vmem:[%s15529_s1 + $0x2380] ss:$8 sps:$4 sm:$0xff]   ;;  %v11725_v48 = vld [vmem:[%s15529_s1 + $0x1194] ss:$8 sps:$4 sm:$0xff]  }
 0x42d   :  { %8505 = vmatprep.subr.bf16.mxu0 %v11644_v49  ;;  %v11728_v49 = vld [vmem:[%s15529_s1 + $0x2394] ss:$8 sps:$4 sm:$0xff]  }
 0x42f   :  { %7768 = vmatpush1.bf16.msra.mxu1 %v11639_v50  ;;  %v11723_v50 = vld [vmem:[%s15529_s1 + $0x1190] ss:$8 sps:$4 sm:$0xff]  }
 0x430   :  { %8506 = vmatpush1.bf16.msra.mxu0 %v11642_v51  ;;  %7769 = vmatprep.subr.bf16.mxu1 %v11647_v52  ;;  %v11726_v51 = vld [vmem:[%s15529_s1 + $0x2390] ss:$8 sps:$4 sm:$0xff]   ;;  %v11731_v52 = vld [vmem:[%s15529_s1 + $0x11a4] ss:$8 sps:$4 sm:$0xff]  }
 0x431   :  { %8507 = vmatprep.subr.bf16.mxu0 %v11650_v53  ;;  %v11734_v53 = vld [vmem:[%s15529_s1 + $0x23a4] ss:$8 sps:$4 sm:$0xff]  }
 0x433   :  { %7770 = vmatpush1.bf16.msra.mxu1 %v11645_v54  ;;  %v11729_v54 = vld [vmem:[%s15529_s1 + $0x11a0] ss:$8 sps:$4 sm:$0xff]  }
 0x434   :  { %8508 = vmatpush1.bf16.msra.mxu0 %v11648_v55  ;;  %7771 = vmatprep.subr.bf16.mxu1 %v11653_v56  ;;  %v11732_v55 = vld [vmem:[%s15529_s1 + $0x23a0] ss:$8 sps:$4 sm:$0xff]   ;;  %v11737_v56 = vld [vmem:[%s15529_s1 + $0x11b4] ss:$8 sps:$4 sm:$0xff]  }
 0x435   :  { %8509 = vmatprep.subr.bf16.mxu0 %v11656_v57  ;;  %v11740_v57 = vld [vmem:[%s15529_s1 + $0x23b4] ss:$8 sps:$4 sm:$0xff]  }
 0x437   :  { %7772 = vmatpush1.bf16.msra.mxu1 %v11651_v58  ;;  %v11735_v58 = vld [vmem:[%s15529_s1 + $0x11b0] ss:$8 sps:$4 sm:$0xff]  }
 0x438   :  { %8510 = vmatpush1.bf16.msra.mxu0 %v11654_v59  ;;  %7773 = vmatprep.subr.bf16.mxu1 %v11659_v60  ;;  %v11738_v59 = vld [vmem:[%s15529_s1 + $0x23b0] ss:$8 sps:$4 sm:$0xff]   ;;  %v11743_v60 = vld [vmem:[%s15529_s1 + $0x11c4] ss:$8 sps:$4 sm:$0xff]  }
 0x439   :  { %8511 = vmatprep.subr.bf16.mxu0 %v11662_v61  ;;  %v11746_v61 = vld [vmem:[%s15529_s1 + $0x23c4] ss:$8 sps:$4 sm:$0xff]  }
 0x43b   :  { %7774 = vmatpush1.bf16.msra.mxu1 %v11657_v62  ;;  %v11741_v62 = vld [vmem:[%s15529_s1 + $0x11c0] ss:$8 sps:$4 sm:$0xff]  }
 0x43c   :  { %8512 = vmatpush1.bf16.msra.mxu0 %v11660_v63  ;;  %7775 = vmatprep.subr.bf16.mxu1 %v11665_v0  ;;  %v11744_v63 = vld [vmem:[%s15529_s1 + $0x23c0] ss:$8 sps:$4 sm:$0xff]   ;;  %v11749_v0 = vld [vmem:[%s15529_s1 + $0x11d4] ss:$8 sps:$4 sm:$0xff]  }
 0x43d   :  { %8513 = vmatprep.subr.bf16.mxu0 %v11668_v1  ;;  %v11752_v1 = vld [vmem:[%s15529_s1 + $0x23d4] ss:$8 sps:$4 sm:$0xff]  }
 0x43f   :  { %7776 = vmatpush1.bf16.msra.mxu1 %v11663_v2  ;;  %v11747_v2 = vld [vmem:[%s15529_s1 + $0x11d0] ss:$8 sps:$4 sm:$0xff]  }
 0x440   :  { %8514 = vmatpush1.bf16.msra.mxu0 %v11666_v3  ;;  %7786 = vmatprep.subr.bf16.mxu1 %v11671_v6  ;;  %v11750_v3 = vld [vmem:[%s15529_s1 + $0x23d0] ss:$8 sps:$4 sm:$0xff]   ;;  %v11753_v6 = vld [vmem:[%s15529_s1 + $0x11e0] ss:$8 sps:$4 sm:$0xff]  }
 0x441   :  { %8524 = vmatprep.subr.bf16.mxu0 %v11674_v7  ;;  %v11756_v7 = vld [vmem:[%s15529_s1 + $0x23e0] ss:$8 sps:$4 sm:$0xff]  }
 0x442   :  { %7778 = vmatmul.mubr.bf16.vlgmr.msra.gmra.mrb[0].mxu1 %v125_v8  ;;  %v11761_v8 = vld [vmem:[%s15529_s1 + $0x11f4] ss:$8 sps:$4 sm:$0xff]  }
 0x443   :  { %8516 = vmatmul.mubr.bf16.vlgmr.msra.gmra.mrb[0].mxu0 %v161_v9  ;;  %7787 = vmatpush1.bf16.msra.mxu1 %v11669_v12  ;;  %v11764_v9 = vld [vmem:[%s15529_s1 + $0x23f4] ss:$8 sps:$4 sm:$0xff]  }
 0x444   :  { %8525 = vmatpush1.bf16.msra.mxu0 %v11672_v13  ;;  %7788 = vmatprep.subr.bf16.mxu1 %v11677_v14  ;;  %v55_v12 = vld [vmem:[%s15530_s0 + $0x110] sm:$0xff] }
 0x445   :  { %8526 = vmatprep.subr.bf16.mxu0 %v11680_v15  ;;  %7818 = vmatprep.mubr.bf16.mxu1 %v128_v16  ;;  %v91_v13 = vld [vmem:[%s15530_s0 + $0x230] sm:$0xff]  ;;  %v127_v14 = vpack.c.bf16 %v55_v12, %v55_v12  ;;  %v11765_v16 = vld [vmem:[%s15531_s3] sm:$0xff]  }
 0x446   :  { %8556 = vmatprep.mubr.bf16.mxu0 %v164_v17  ;;  %v163_v15 = vpack.c.bf16 %v91_v13, %v91_v13  ;;  %v11778_v17 = vmov 0  }
 0x447   :  { %7789 = vmatpush1.bf16.msra.mxu1 %v11675_v18  ;;  %v11766_v18 = vld [vmem:[%s15531_s3 + $0x8] sm:$0xff]  }
 0x448   :  { %8527 = vmatpush1.bf16.msra.mxu0 %v11678_v19  ;;  %7790 = vmatprep.subr.bf16.mxu1 %v11683_v20  ;;  %v11767_v19 = vld [vmem:[%s15531_s3 + $0x10] sm:$0xff]   ;;  %v11768_v20 = vld [vmem:[%s15531_s3 + $0x18] sm:$0xff]  }
 0x449   :  { %8528 = vmatprep.subr.bf16.mxu0 %v11686_v21  ;;  %v11769_v21 = vld [vmem:[%s15531_s3 + $0x20] sm:$0xff]  }
 0x44b   :  { %7791 = vmatpush1.bf16.msra.mxu1 %v11681_v22  ;;  %v11770_v22 = vld [vmem:[%s15531_s3 + $0x28] sm:$0xff]  }
 0x44c   :  { %8529 = vmatpush1.bf16.msra.mxu0 %v11684_v23  ;;  %7792 = vmatprep.subr.bf16.mxu1 %v11689_v24  ;;  %v11771_v23 = vld [vmem:[%s15531_s3 + $0x30] sm:$0xff]   ;;  %v11772_v24 = vld [vmem:[%s15531_s3 + $0x38] sm:$0xff]  }
 0x44d   :  { %8530 = vmatprep.subr.bf16.mxu0 %v11692_v25  ;;  %v11773_v25 = vld [vmem:[%s15531_s3 + $0x40] sm:$0xff]  }
 0x44f   :  { %7793 = vmatpush1.bf16.msra.mxu1 %v11687_v26  ;;  %v11774_v26 = vld [vmem:[%s15531_s3 + $0x48] sm:$0xff]  }
 0x450   :  { %8531 = vmatpush1.bf16.msra.mxu0 %v11690_v27  ;;  %7794 = vmatprep.subr.bf16.mxu1 %v11695_v28  ;;  %v11775_v27 = vld [vmem:[%s15531_s3 + $0x50] sm:$0xff]   ;;  %v11776_v28 = vld [vmem:[%s15531_s3 + $0x58] sm:$0xff]  }
 0x451   :  { %8532 = vmatprep.subr.bf16.mxu0 %v11698_v29  ;;  %v11777_v29 = vld [vmem:[%s15531_s3 + $0x60] ss:$0 sps:$4 sm:$0xff]  }
 0x453   :  { %7795 = vmatpush1.bf16.msra.mxu1 %v11693_v30  ;;  %v8682_v30 = vsel %vm8680_vm0, %v11777_v29, 0 }
 0x454   :  { %8533 = vmatpush1.bf16.msra.mxu0 %v11696_v31  ;;  %7796 = vmatprep.subr.bf16.mxu1 %v11701_v32  ;;  %v1319_v31 = vlaneseq }
 0x455   :  { %8534 = vmatprep.subr.bf16.mxu0 %v11704_v33 }
 0x456   :  { %v1320_v32 = vshrl.u32 %v1319_v31, 7 }
 0x457   :  { %7797 = vmatpush1.bf16.msra.mxu1 %v11699_v34  ;;  %v1317_v34 = vld [vmem:[%s15532_s2] sm:$0x3] }
 0x458   :  { %8535 = vmatpush1.bf16.msra.mxu0 %v11702_v35  ;;  %7798 = vmatprep.subr.bf16.mxu1 %v11707_v36  ;;  %v1321_v33 = vsub.s32 0, %v1320_v32  ;;  %v1325_v35 = vsub.s32 1, %v1320_v32 }
 0x459   :  { %8536 = vmatprep.subr.bf16.mxu0 %v11710_v37 }
 0x45a   :  { %v1322_v36 = vrot.slane %v1317_v34, %v1321_v33  ;;  %v1326_v37 = vrot.slane %v1317_v34, %v1325_v35 }
 0x45b   :  { %7799 = vmatpush1.bf16.msra.mxu1 %v11705_v38 }
 0x45c   :  { %8537 = vmatpush1.bf16.msra.mxu0 %v11708_v39  ;;  %7800 = vmatprep.subr.bf16.mxu1 %v11713_v40 }
 0x45d   :  { %8538 = vmatprep.subr.bf16.mxu0 %v11716_v41 }
 0x45f   :  { %7801 = vmatpush1.bf16.msra.mxu1 %v11711_v42 }
 0x460   :  { %8539 = vmatpush1.bf16.msra.mxu0 %v11714_v43  ;;  %7802 = vmatprep.subr.bf16.mxu1 %v11719_v44 }
 0x461   :  { %8540 = vmatprep.subr.bf16.mxu0 %v11722_v45 }
 0x463   :  { %7803 = vmatpush1.bf16.msra.mxu1 %v11717_v46 }
 0x464   :  { %8541 = vmatpush1.bf16.msra.mxu0 %v11720_v47  ;;  %7804 = vmatprep.subr.bf16.mxu1 %v11725_v48 }
 0x465   :  { %8542 = vmatprep.subr.bf16.mxu0 %v11728_v49 }
 0x467   :  { %7805 = vmatpush1.bf16.msra.mxu1 %v11723_v50 }
 0x468   :  { %8543 = vmatpush1.bf16.msra.mxu0 %v11726_v51  ;;  %7806 = vmatprep.subr.bf16.mxu1 %v11731_v52 }
 0x469   :  { %8544 = vmatprep.subr.bf16.mxu0 %v11734_v53 }
 0x46b   :  { %7807 = vmatpush1.bf16.msra.mxu1 %v11729_v54  ;;  %v9881_v54 = vld [vmem:[%s15533_s4] ss:$0 sm:$0xff] }
 0x46c   :  { %8545 = vmatpush1.bf16.msra.mxu0 %v11732_v55  ;;  %7808 = vmatprep.subr.bf16.mxu1 %v11737_v56 }
 0x46d   :  { %8546 = vmatprep.subr.bf16.mxu0 %v11740_v57 }
 0x46f   :  { %7809 = vmatpush1.bf16.msra.mxu1 %v11735_v58 }
 0x470   :  { %8547 = vmatpush1.bf16.msra.mxu0 %v11738_v59  ;;  %7810 = vmatprep.subr.bf16.mxu1 %v11743_v60 }
 0x471   :  { %8548 = vmatprep.subr.bf16.mxu0 %v11746_v61 }
 0x473   :  { %7811 = vmatpush1.bf16.msra.mxu1 %v11741_v62 }
 0x474   :  { %8549 = vmatpush1.bf16.msra.mxu0 %v11744_v63  ;;  %7812 = vmatprep.subr.bf16.mxu1 %v11749_v0 }
 0x475   :  { %8550 = vmatprep.subr.bf16.mxu0 %v11752_v1 }
 0x477   :  { %7813 = vmatpush1.bf16.msra.mxu1 %v11747_v2 }
 0x478   :  { %8551 = vmatpush1.bf16.msra.mxu0 %v11750_v3  ;;  %7814 = vmatprep.subr.bf16.mxu1 %v11755_v4 }
 0x479   :  { %8552 = vmatprep.subr.bf16.mxu0 %v11758_v5 }
 0x47b   :  { %7815 = vmatpush1.bf16.msra.mxu1 %v11753_v6 }
 0x47c   :  { %8553 = vmatpush1.bf16.msra.mxu0 %v11756_v7  ;;  %7816 = vmatprep.subr.bf16.mxu1 %v11761_v8 }
 0x47d   :  { %8554 = vmatprep.subr.bf16.mxu0 %v11764_v9 }
 0x47f   :  { %7817 = vmatpush1.bf16.msra.mxu1 %v11759_v10 }
 0x480   :  { %8555 = vmatpush1.bf16.msra.mxu0 %v11762_v11  ;;  %8684 = vmatprep.subr.bf16.mxu1 %v11778_v17 }
 0x482   :  { %7819 = vmatmul.mubr.bf16.vlgmr.msra.gmra.mrb[0].mxu1 %v127_v14 }
 0x483   :  { %8557 = vmatmul.mubr.bf16.vlgmr.msra.gmra.mrb[0].mxu0 %v163_v15  ;;  %8685 = vmatpush1.bf16.msra.mxu1 %v11765_v16 }
 0x484   :  { %8686 = vmatprep.subr.bf16.mxu1 %v11778_v17 }
 0x487   :  { %8687 = vmatpush1.bf16.msra.mxu1 %v11766_v18 }
 0x488   :  { %8688 = vmatprep.subr.bf16.mxu1 %v11778_v17 }
 0x48b   :  { %8689 = vmatpush1.bf16.msra.mxu1 %v11767_v19 }
 0x48c   :  { %8690 = vmatprep.subr.bf16.mxu1 %v11778_v17 }
 0x48f   :  { %8691 = vmatpush1.bf16.msra.mxu1 %v11768_v20 }
 0x490   :  { %8692 = vmatprep.subr.bf16.mxu1 %v11778_v17 }
 0x493   :  { %8693 = vmatpush1.bf16.msra.mxu1 %v11769_v21 }
 0x494   :  { %8694 = vmatprep.subr.bf16.mxu1 %v11778_v17 }
 0x497   :  { %8695 = vmatpush1.bf16.msra.mxu1 %v11770_v22 }
 0x498   :  { %8696 = vmatprep.subr.bf16.mxu1 %v11778_v17 }
 0x49b   :  { %8697 = vmatpush1.bf16.msra.mxu1 %v11771_v23 }
 0x49c   :  { %8698 = vmatprep.subr.bf16.mxu1 %v11778_v17 }
 0x49f   :  { %8699 = vmatpush1.bf16.msra.mxu1 %v11772_v24 }
 0x4a0   :  { %8700 = vmatprep.subr.bf16.mxu1 %v11778_v17 }
 0x4a3   :  { %8701 = vmatpush1.bf16.msra.mxu1 %v11773_v25 }
 0x4a4   :  { %8702 = vmatprep.subr.bf16.mxu1 %v11778_v17 }
 0x4a7   :  { %8703 = vmatpush1.bf16.msra.mxu1 %v11774_v26 }
 0x4a8   :  { %8704 = vmatprep.subr.bf16.mxu1 %v11778_v17 }
 0x4ab   :  { %8705 = vmatpush1.bf16.msra.mxu1 %v11775_v27 }
 0x4ac   :  { %8706 = vmatprep.subr.bf16.mxu1 %v11778_v17 }
 0x4af   :  { %8707 = vmatpush1.bf16.msra.mxu1 %v11776_v28 }
 0x4b0   :  { %8708 = vmatprep.subr.bf16.mxu1 %v11778_v17 }
 0x4b3   :  { %8709 = vmatpush1.bf16.msra.mxu1 %v8682_v30 }
 0x555   :  { %v7820_v38 = vpop.f32.mrb[0].mxu1 }
 0x556   :  { %v8558_v39 = vpop.f32.mrb[0].mxu0  ;;  %v9896_v40 = vadd.f32 %v7820_v38, %v1322_v36  ;;  %v7822_v41 = vpop.f32.mrb[1].mxu1 }
 0x557   :  { %v8560_v42 = vpop.f32.mrb[1].mxu0  ;;  %v9898_v43 = vadd.f32 %v7822_v41, %v1326_v37  ;;  %v7824_v44 = vpop.f32.mrb[2].mxu1 }
 0x558   :  { %v8562_v45 = vpop.f32.mrb[2].mxu0  ;;  %v9897_v46 = vadd.f32 %v9896_v40, %v8558_v39  ;;  %v7825_v47 = vpop.f32.mrb[3].mxu1 }
 0x559   :  { %v8563_v48 = vpop.f32.mrb[3].mxu0  ;;  %v9899_v49 = vadd.f32 %v9898_v43, %v8560_v42 }
 0x55a   :  { %v8565_v50 = vmax.f32 %v9897_v46, 0.0 }
 0x55b   :  { %v8566_v51 = vmax.f32 %v9899_v49, 0.0 }
 0x55c   :  { %v8567_v53 = vpack.c.bf16 %v8565_v50, %v8565_v50 }
 0x55d   :  { %v8568_v52 = vpack.c.bf16 %v8566_v51, %v8566_v51 }
 0x55f   :  { %9895 = vmatprep.mubr.msk.bf16.mxu1 %vm8676_vm1, %v8568_v52 }
 0x560   :  { %8717 = vmatmul.mubr.bf16.vlgmr.msra.gmra.mrb[4].mxu1 %v8567_v53 }
 0x633   :  { %v8718_v55 = vpop.f32.mrb[4].mxu1 }
 0x634   :  { %v8719_v56 = vadd.f32 %v9881_v54, %v8718_v55  ;;  %v8720_v57 = vpop.f32.mrb[5].mxu1 }
 0x635   :  { %v8721_v58 = vpop.f32.mrb[6].mxu1 }
 0x636   :  { %8724 = vst [vmem:[%s15534_s5] sm:$0xff] %v8719_v56  ;;  %v8722_v59 = vpop.f32.mrb[7].mxu1 }

</bundles_post_ra>
